<compile_context>
chip_gen: v6e
topology: v6e:2x2x1
jax: 0.10.0
libtpu: 0.0.40
codegen_flags: <defaults>
</compile_context>

<pallas_src>
import functools

import jax
import jax.numpy as jnp
from jax.experimental import pallas as pl
from jax.experimental.pallas import tpu as pltpu


# ----------------------------------------------------------------------------
# Kernel: grid axis k tiles the reduction dim of sk_ln1. All other weights are
# resident (constant block index). The rest of the network runs on the last step.
# ----------------------------------------------------------------------------
def _linear_model_kernel(
    acc_ref, skl_ref,
    wacc_ref, bacc_ref,
    w1_ref, b1_ref,
    w2_ref, b2_ref,
    w3_ref, b3_ref,
    w4_ref, b4_ref,
    w5_ref, b5_ref,
    w6_ref, b6_ref,
    out_ref,
    sk1_acc_ref,
):
    f32 = jnp.float32
    k = pl.program_id(0)
    k_last = pl.num_programs(0) - 1

    @pl.when(k == 0)
    def _():
        sk1_acc_ref[...] = jnp.zeros_like(sk1_acc_ref)

    # K-tiled dominant matmul: (B, tk) @ (tk, 1024); bf16 inputs, f32 accumulation.
    sk1_acc_ref[...] += jnp.dot(
        skl_ref[...], w1_ref[...], preferred_element_type=f32
    )

    @pl.when(k == k_last)
    def _():
        relu = lambda v: jnp.maximum(v, 0.0)

        def lin(x_f32, w_ref, b_ref):
            return jnp.dot(
                x_f32.astype(w_ref.dtype), w_ref[...],
                preferred_element_type=f32,
            ) + b_ref[...]

        # accelerometer branch: (B, 300) -> 64
        acc_embed = relu(
            jnp.dot(acc_ref[...], wacc_ref[...], preferred_element_type=f32)
            + bacc_ref[...]
        )

        # skeleton branch: accumulated sk_ln1 -> 512 -> 128 -> 64
        h = relu(sk1_acc_ref[...] + b1_ref[...])
        h = relu(lin(h, w2_ref, b2_ref))
        h = relu(lin(h, w3_ref, b3_ref))
        h = lin(h, w4_ref, b4_ref)

        # fusion + head: (B, 64) -> 32 -> num_classes
        x = relu(h + acc_embed)
        x = relu(lin(x, w5_ref, b5_ref))
        x = lin(x, w6_ref, b6_ref)
        out_ref[...] = x.astype(out_ref.dtype)


def _resident_spec(shape):
    # full-array block, same block index at every grid step -> stays resident
    return pl.BlockSpec(shape, lambda k: tuple(0 for _ in shape))


@functools.partial(jax.jit, static_argnames=("num_classes",))
def linear_model_forward(acc_data, skl_data, params, num_classes=27):
    """acc_data: (B, F_acc, C), skl_data: (B, F_sk, J, C), params: flat list of (W, b)."""
    bf16 = jnp.bfloat16
    B = acc_data.shape[0]
    acc_flat = acc_data.reshape(B, -1)                # 'b f c -> b (f c)'
    skl_flat = skl_data.reshape(B, -1)                # 'b f j c -> b (f j c)'
    F_acc = acc_flat.shape[1]
    K = skl_flat.shape[1]

    # Pad batch to a multiple of 8 sublanes.
    B_pad = max(8, ((B + 7) // 8) * 8)
    # Tile the sk_ln1 reduction dim.
    TK = 1280
    KT = (K + TK - 1) // TK
    K_pad = KT * TK

    acc_p = jnp.zeros((B_pad, F_acc), bf16).at[:B].set(acc_flat.astype(bf16))
    skl_p = jnp.zeros((B_pad, K_pad), bf16).at[:B, :K].set(skl_flat.astype(bf16))

    (wacc, bacc), (w1, b1), (w2, b2), (w3, b3), (w4, b4), (w5, b5), (w6, b6) = params
    w1_p = jnp.zeros((K_pad, w1.shape[1]), bf16).at[:K, :].set(w1.astype(bf16))

    def wb(w, b):
        return w.astype(bf16), b.reshape(1, -1).astype(jnp.float32)

    wacc_b, bacc_b = wb(wacc, bacc)
    _, b1_b = wb(w1, b1)
    w2_b, b2_b = wb(w2, b2)
    w3_b, b3_b = wb(w3, b3)
    w4_b, b4_b = wb(w4, b4)
    w5_b, b5_b = wb(w5, b5)
    w6_b, b6_b = wb(w6, b6)

    operands = [
        acc_p, skl_p,
        wacc_b, bacc_b,
        w1_p, b1_b,
        w2_b, b2_b,
        w3_b, b3_b,
        w4_b, b4_b,
        w5_b, b5_b,
        w6_b, b6_b,
    ]

    in_specs = []
    for idx, op in enumerate(operands):
        if idx == 1:      # skl_p : K-tiled
            in_specs.append(pl.BlockSpec((B_pad, TK), lambda k: (0, k)))
        elif idx == 4:    # w1_p  : K-tiled
            in_specs.append(pl.BlockSpec((TK, w1.shape[1]), lambda k: (k, 0)))
        else:             # everything else stays resident
            in_specs.append(_resident_spec(op.shape))

    out_shape = jax.ShapeDtypeStruct((B_pad, num_classes), jnp.float32)

    # Cost hint for XLA's scheduler (weight-streaming dominated).
    flops = 2 * B_pad * sum(int(w.shape[0]) * int(w.shape[1]) for w, _ in params)
    bytes_accessed = sum(int(op.size) * op.dtype.itemsize for op in operands)
    bytes_accessed += B_pad * num_classes * 4
    cost = pl.CostEstimate(
        flops=flops, transcendentals=0, bytes_accessed=bytes_accessed
    )

    out = pl.pallas_call(
        _linear_model_kernel,
        grid=(KT,),
        in_specs=in_specs,
        out_specs=_resident_spec((B_pad, num_classes)),
        out_shape=out_shape,
        scratch_shapes=[pltpu.VMEM((B_pad, w1.shape[1]), jnp.float32)],
        compiler_params=pltpu.CompilerParams(
            dimension_semantics=("arbitrary",),
        ),
        cost_estimate=cost,
    )(*operands)

    return out[:B]


# ----------------------------------------------------------------------------
# Deterministic parameter init (PyTorch nn.Linear default: U(-1/sqrt(in), 1/sqrt(in)))
# Weights are stored transposed, i.e. (in_features, out_features), in float32.
# ----------------------------------------------------------------------------
def init_params(key, layer_dims):
    params = []
    for (fan_in, fan_out) in layer_dims:
        key, kw, kb = jax.random.split(key, 3)
        bound = 1.0 / jnp.sqrt(fan_in)
        w = jax.random.uniform(kw, (fan_in, fan_out), jnp.float32, -bound, bound)
        b = jax.random.uniform(kb, (fan_out,), jnp.float32, -bound, bound)
        params.append((w, b))
    return params


def reference_forward(acc_data, skl_data, params):
    """Plain-JAX reference (eval mode) using the same bf16 weight/activation casts."""
    bf16 = jnp.bfloat16
    B = acc_data.shape[0]
    acc = acc_data.reshape(B, -1)
    skl = skl_data.reshape(B, -1)
    relu = lambda v: jnp.maximum(v, 0.0)

    def lin(x, w, b):
        return jnp.dot(x.astype(bf16), w.astype(bf16),
                       preferred_element_type=jnp.float32) + b

    (wacc, bacc), (w1, b1), (w2, b2), (w3, b3), (w4, b4), (w5, b5), (w6, b6) = params
    acc_e = relu(lin(acc, wacc, bacc))
    h = relu(lin(skl, w1, b1))
    h = relu(lin(h, w2, b2))
    h = relu(lin(h, w3, b3))
    h = lin(h, w4, b4)
    x = relu(h + acc_e)
    x = relu(lin(x, w5, b5))
    return lin(x, w6, b6)


if __name__ == "__main__":
    # Module default configuration.
    acc_frames, channel = 100, 3
    mocap_frames, num_joints = 50, 25
    num_classes = 27
    B = 2

    key = jax.random.PRNGKey(0)
    k_acc, k_skl, k_par = jax.random.split(key, 3)

    acc_data = jax.random.normal(k_acc, (B, acc_frames, channel), jnp.float32)
    skl_data = jax.random.normal(k_skl, (B, mocap_frames, num_joints, channel), jnp.float32)

    layer_dims = [
        (acc_frames * channel, 64),                        # acc_ln
        (mocap_frames * num_joints * channel, 1024),       # sk_ln1
        (1024, 512),                                       # sk_ln2
        (512, 128),                                        # sk_ln3
        (128, 64),                                         # sk_ln4
        (64, 32),                                          # ln5
        (32, num_classes),                                 # ln6
    ]
    params = init_params(k_par, layer_dims)

    out = linear_model_forward(acc_data, skl_data, params, num_classes=num_classes)
    out = jax.block_until_ready(out)

    ref = reference_forward(acc_data, skl_data, params)
    assert out.shape == (B, num_classes), out.shape
    assert jnp.allclose(out, ref, atol=5e-3, rtol=5e-3), "mismatch vs JAX reference"

    print("KERNEL_OK")
</pallas_src>

<mosaic_0001>
module attributes {stable_mosaic.version = 11 : i64} {
  func.func @_linear_model_kernel(%arg0: i32, %arg1: memref<8x300xbf16, #tpu.memory_space<vmem>>, %arg2: memref<8x1280xbf16, #tpu.memory_space<vmem>>, %arg3: memref<300x64xbf16, #tpu.memory_space<vmem>>, %arg4: memref<1x64xf32, #tpu.memory_space<vmem>>, %arg5: memref<1280x1024xbf16, #tpu.memory_space<vmem>>, %arg6: memref<1x1024xf32, #tpu.memory_space<vmem>>, %arg7: memref<1024x512xbf16, #tpu.memory_space<vmem>>, %arg8: memref<1x512xf32, #tpu.memory_space<vmem>>, %arg9: memref<512x128xbf16, #tpu.memory_space<vmem>>, %arg10: memref<1x128xf32, #tpu.memory_space<vmem>>, %arg11: memref<128x64xbf16, #tpu.memory_space<vmem>>, %arg12: memref<1x64xf32, #tpu.memory_space<vmem>>, %arg13: memref<64x32xbf16, #tpu.memory_space<vmem>>, %arg14: memref<1x32xf32, #tpu.memory_space<vmem>>, %arg15: memref<32x27xbf16, #tpu.memory_space<vmem>>, %arg16: memref<1x27xf32, #tpu.memory_space<vmem>>, %arg17: memref<8x27xf32, #tpu.memory_space<vmem>>, %arg18: memref<8x1024xf32, #tpu.memory_space<vmem>>) attributes {dimension_semantics = [#tpu.dimension_semantics<arbitrary>], iteration_bounds = array<i64: 3>, scalar_prefetch = 0 : i64, scratch_operands = 1 : i64, tpu.core_type = #tpu.core_type<tc>, window_params = [{pipeline_mode = #tpu.pipeline_mode<synchronous>, transform_indices = @transform_0, window_bounds = array<i64: 8, 300>}, {transform_indices = @transform_1, window_bounds = array<i64: 8, 1280>}, {pipeline_mode = #tpu.pipeline_mode<synchronous>, transform_indices = @transform_2, window_bounds = array<i64: 300, 64>}, {pipeline_mode = #tpu.pipeline_mode<synchronous>, transform_indices = @transform_3, window_bounds = array<i64: 1, 64>}, {transform_indices = @transform_4, window_bounds = array<i64: 1280, 1024>}, {pipeline_mode = #tpu.pipeline_mode<synchronous>, transform_indices = @transform_5, window_bounds = array<i64: 1, 1024>}, {pipeline_mode = #tpu.pipeline_mode<synchronous>, transform_indices = @transform_6, window_bounds = array<i64: 1024, 512>}, {pipeline_mode = #tpu.pipeline_mode<synchronous>, transform_indices = @transform_7, window_bounds = array<i64: 1, 512>}, {pipeline_mode = #tpu.pipeline_mode<synchronous>, transform_indices = @transform_8, window_bounds = array<i64: 512, 128>}, {pipeline_mode = #tpu.pipeline_mode<synchronous>, transform_indices = @transform_9, window_bounds = array<i64: 1, 128>}, {pipeline_mode = #tpu.pipeline_mode<synchronous>, transform_indices = @transform_10, window_bounds = array<i64: 128, 64>}, {pipeline_mode = #tpu.pipeline_mode<synchronous>, transform_indices = @transform_11, window_bounds = array<i64: 1, 64>}, {pipeline_mode = #tpu.pipeline_mode<synchronous>, transform_indices = @transform_12, window_bounds = array<i64: 64, 32>}, {pipeline_mode = #tpu.pipeline_mode<synchronous>, transform_indices = @transform_13, window_bounds = array<i64: 1, 32>}, {pipeline_mode = #tpu.pipeline_mode<synchronous>, transform_indices = @transform_14, window_bounds = array<i64: 32, 27>}, {pipeline_mode = #tpu.pipeline_mode<synchronous>, transform_indices = @transform_15, window_bounds = array<i64: 1, 27>}, {pipeline_mode = #tpu.pipeline_mode<synchronous>, transform_indices = @transform_16, window_bounds = array<i64: 8, 27>}]} {
    %c0_i32 = arith.constant 0 : i32
    %0 = arith.cmpi eq, %arg0, %c0_i32 : i32
    %1 = arith.extui %0 : i1 to i32
    %c0_i32_0 = arith.constant 0 : i32
    %2 = arith.cmpi ne, %1, %c0_i32_0 : i32
    scf.if %2 {
      %cst_9 = arith.constant 0.000000e+00 : f32
      %12 = vector.broadcast %cst_9 : f32 to vector<8x1024xf32>
      %c0_10 = arith.constant 0 : index
      %c0_11 = arith.constant 0 : index
      %13 = vector.load %arg18[%c0_10, %c0_11] : memref<8x1024xf32, #tpu.memory_space<vmem>>, vector<8x1024xf32>
      tpu.vector_store %arg18[%c0_10, %c0_11], %12 {strides = array<i32>} : memref<8x1024xf32, #tpu.memory_space<vmem>>, vector<8x1024xf32>,
    } else {
    }
    %c0 = arith.constant 0 : index
    %c0_1 = arith.constant 0 : index
    %3 = vector.load %arg18[%c0, %c0_1] : memref<8x1024xf32, #tpu.memory_space<vmem>>, vector<8x1024xf32>
    %c0_2 = arith.constant 0 : index
    %c0_3 = arith.constant 0 : index
    %4 = vector.load %arg2[%c0_2, %c0_3] : memref<8x1280xbf16, #tpu.memory_space<vmem>>, vector<8x1280xbf16>
    %c0_4 = arith.constant 0 : index
    %c0_5 = arith.constant 0 : index
    %5 = vector.load %arg5[%c0_4, %c0_5] : memref<1280x1024xbf16, #tpu.memory_space<vmem>>, vector<1280x1024xbf16>
    %cst = arith.constant dense<0.000000e+00> : vector<8x1024xf32>
    %6 = tpu.matmul %4, %5, %cst {dimension_numbers = #tpu.dot_dimension_numbers<[1], [0], [0], [1], [0, 0, 1, 1], [], []>} : vector<8x1280xbf16>, vector<1280x1024xbf16>, vector<8x1024xf32> -> vector<8x1024xf32>
    %7 = arith.addf %3, %6 : vector<8x1024xf32>
    %c0_6 = arith.constant 0 : index
    %c0_7 = arith.constant 0 : index
    %8 = vector.load %arg18[%c0_6, %c0_7] : memref<8x1024xf32, #tpu.memory_space<vmem>>, vector<8x1024xf32>
    tpu.vector_store %arg18[%c0_6, %c0_7], %7 {strides = array<i32>} : memref<8x1024xf32, #tpu.memory_space<vmem>>, vector<8x1024xf32>,
    %c2_i32 = arith.constant 2 : i32
    %9 = arith.cmpi eq, %arg0, %c2_i32 : i32
    %10 = arith.extui %9 : i1 to i32
    %c0_i32_8 = arith.constant 0 : i32
    %11 = arith.cmpi ne, %10, %c0_i32_8 : i32
    scf.if %11 {
      %c0_9 = arith.constant 0 : index
      %c0_10 = arith.constant 0 : index
      %12 = vector.load %arg1[%c0_9, %c0_10] : memref<8x300xbf16, #tpu.memory_space<vmem>>, vector<8x300xbf16>
      %c0_11 = arith.constant 0 : index
      %c0_12 = arith.constant 0 : index
      %13 = vector.load %arg3[%c0_11, %c0_12] : memref<300x64xbf16, #tpu.memory_space<vmem>>, vector<300x64xbf16>
      %cst_13 = arith.constant dense<0.000000e+00> : vector<8x64xf32>
      %14 = tpu.matmul %12, %13, %cst_13 {dimension_numbers = #tpu.dot_dimension_numbers<[1], [0], [0], [1], [0, 0, 1, 1], [], []>} : vector<8x300xbf16>, vector<300x64xbf16>, vector<8x64xf32> -> vector<8x64xf32>
      %c0_14 = arith.constant 0 : index
      %c0_15 = arith.constant 0 : index
      %15 = vector.load %arg4[%c0_14, %c0_15] : memref<1x64xf32, #tpu.memory_space<vmem>>, vector<1x64xf32>
      %16 = vector.broadcast %15 : vector<1x64xf32> to vector<8x64xf32>
      %17 = arith.addf %14, %16 : vector<8x64xf32>
      %cst_16 = arith.constant 0.000000e+00 : f32
      %18 = vector.broadcast %cst_16 : f32 to vector<8x64xf32>
      %19 = arith.maximumf %17, %18 : vector<8x64xf32>
      %c0_17 = arith.constant 0 : index
      %c0_18 = arith.constant 0 : index
      %20 = vector.load %arg18[%c0_17, %c0_18] : memref<8x1024xf32, #tpu.memory_space<vmem>>, vector<8x1024xf32>
      %c0_19 = arith.constant 0 : index
      %c0_20 = arith.constant 0 : index
      %21 = vector.load %arg6[%c0_19, %c0_20] : memref<1x1024xf32, #tpu.memory_space<vmem>>, vector<1x1024xf32>
      %22 = vector.broadcast %21 : vector<1x1024xf32> to vector<8x1024xf32>
      %23 = arith.addf %20, %22 : vector<8x1024xf32>
      %cst_21 = arith.constant 0.000000e+00 : f32
      %24 = vector.broadcast %cst_21 : f32 to vector<8x1024xf32>
      %25 = arith.maximumf %23, %24 : vector<8x1024xf32>
      %26 = arith.truncf %25 : vector<8x1024xf32> to vector<8x1024xbf16>
      %c0_22 = arith.constant 0 : index
      %c0_23 = arith.constant 0 : index
      %27 = vector.load %arg7[%c0_22, %c0_23] : memref<1024x512xbf16, #tpu.memory_space<vmem>>, vector<1024x512xbf16>
      %cst_24 = arith.constant dense<0.000000e+00> : vector<8x512xf32>
      %28 = tpu.matmul %26, %27, %cst_24 {dimension_numbers = #tpu.dot_dimension_numbers<[1], [0], [0], [1], [0, 0, 1, 1], [], []>} : vector<8x1024xbf16>, vector<1024x512xbf16>, vector<8x512xf32> -> vector<8x512xf32>
      %c0_25 = arith.constant 0 : index
      %c0_26 = arith.constant 0 : index
      %29 = vector.load %arg8[%c0_25, %c0_26] : memref<1x512xf32, #tpu.memory_space<vmem>>, vector<1x512xf32>
      %30 = vector.broadcast %29 : vector<1x512xf32> to vector<8x512xf32>
      %31 = arith.addf %28, %30 : vector<8x512xf32>
      %cst_27 = arith.constant 0.000000e+00 : f32
      %32 = vector.broadcast %cst_27 : f32 to vector<8x512xf32>
      %33 = arith.maximumf %31, %32 : vector<8x512xf32>
      %34 = arith.truncf %33 : vector<8x512xf32> to vector<8x512xbf16>
      %c0_28 = arith.constant 0 : index
      %c0_29 = arith.constant 0 : index
      %35 = vector.load %arg9[%c0_28, %c0_29] : memref<512x128xbf16, #tpu.memory_space<vmem>>, vector<512x128xbf16>
      %cst_30 = arith.constant dense<0.000000e+00> : vector<8x128xf32>
      %36 = tpu.matmul %34, %35, %cst_30 {dimension_numbers = #tpu.dot_dimension_numbers<[1], [0], [0], [1], [0, 0, 1, 1], [], []>} : vector<8x512xbf16>, vector<512x128xbf16>, vector<8x128xf32> -> vector<8x128xf32>
      %c0_31 = arith.constant 0 : index
      %c0_32 = arith.constant 0 : index
      %37 = vector.load %arg10[%c0_31, %c0_32] : memref<1x128xf32, #tpu.memory_space<vmem>>, vector<1x128xf32>
      %38 = vector.broadcast %37 : vector<1x128xf32> to vector<8x128xf32>
      %39 = arith.addf %36, %38 : vector<8x128xf32>
      %cst_33 = arith.constant 0.000000e+00 : f32
      %40 = vector.broadcast %cst_33 : f32 to vector<8x128xf32>
      %41 = arith.maximumf %39, %40 : vector<8x128xf32>
      %42 = arith.truncf %41 : vector<8x128xf32> to vector<8x128xbf16>
      %c0_34 = arith.constant 0 : index
      %c0_35 = arith.constant 0 : index
      %43 = vector.load %arg11[%c0_34, %c0_35] : memref<128x64xbf16, #tpu.memory_space<vmem>>, vector<128x64xbf16>
      %cst_36 = arith.constant dense<0.000000e+00> : vector<8x64xf32>
      %44 = tpu.matmul %42, %43, %cst_36 {dimension_numbers = #tpu.dot_dimension_numbers<[1], [0], [0], [1], [0, 0, 1, 1], [], []>} : vector<8x128xbf16>, vector<128x64xbf16>, vector<8x64xf32> -> vector<8x64xf32>
      %c0_37 = arith.constant 0 : index
      %c0_38 = arith.constant 0 : index
      %45 = vector.load %arg12[%c0_37, %c0_38] : memref<1x64xf32, #tpu.memory_space<vmem>>, vector<1x64xf32>
      %46 = vector.broadcast %45 : vector<1x64xf32> to vector<8x64xf32>
      %47 = arith.addf %44, %46 : vector<8x64xf32>
      %48 = arith.addf %47, %19 : vector<8x64xf32>
      %cst_39 = arith.constant 0.000000e+00 : f32
      %49 = vector.broadcast %cst_39 : f32 to vector<8x64xf32>
      %50 = arith.maximumf %48, %49 : vector<8x64xf32>
      %51 = arith.truncf %50 : vector<8x64xf32> to vector<8x64xbf16>
      %c0_40 = arith.constant 0 : index
      %c0_41 = arith.constant 0 : index
      %52 = vector.load %arg13[%c0_40, %c0_41] : memref<64x32xbf16, #tpu.memory_space<vmem>>, vector<64x32xbf16>
      %cst_42 = arith.constant dense<0.000000e+00> : vector<8x32xf32>
      %53 = tpu.matmul %51, %52, %cst_42 {dimension_numbers = #tpu.dot_dimension_numbers<[1], [0], [0], [1], [0, 0, 1, 1], [], []>} : vector<8x64xbf16>, vector<64x32xbf16>, vector<8x32xf32> -> vector<8x32xf32>
      %c0_43 = arith.constant 0 : index
      %c0_44 = arith.constant 0 : index
      %54 = vector.load %arg14[%c0_43, %c0_44] : memref<1x32xf32, #tpu.memory_space<vmem>>, vector<1x32xf32>
      %55 = vector.broadcast %54 : vector<1x32xf32> to vector<8x32xf32>
      %56 = arith.addf %53, %55 : vector<8x32xf32>
      %cst_45 = arith.constant 0.000000e+00 : f32
      %57 = vector.broadcast %cst_45 : f32 to vector<8x32xf32>
      %58 = arith.maximumf %56, %57 : vector<8x32xf32>
      %59 = arith.truncf %58 : vector<8x32xf32> to vector<8x32xbf16>
      %c0_46 = arith.constant 0 : index
      %c0_47 = arith.constant 0 : index
      %60 = vector.load %arg15[%c0_46, %c0_47] : memref<32x27xbf16, #tpu.memory_space<vmem>>, vector<32x27xbf16>
      %cst_48 = arith.constant dense<0.000000e+00> : vector<8x27xf32>
      %61 = tpu.matmul %59, %60, %cst_48 {dimension_numbers = #tpu.dot_dimension_numbers<[1], [0], [0], [1], [0, 0, 1, 1], [], []>} : vector<8x32xbf16>, vector<32x27xbf16>, vector<8x27xf32> -> vector<8x27xf32>
      %c0_49 = arith.constant 0 : index
      %c0_50 = arith.constant 0 : index
      %62 = vector.load %arg16[%c0_49, %c0_50] : memref<1x27xf32, #tpu.memory_space<vmem>>, vector<1x27xf32>
      %63 = vector.broadcast %62 : vector<1x27xf32> to vector<8x27xf32>
      %64 = arith.addf %61, %63 : vector<8x27xf32>
      %c0_51 = arith.constant 0 : index
      %c0_52 = arith.constant 0 : index
      %65 = vector.load %arg17[%c0_51, %c0_52] : memref<8x27xf32, #tpu.memory_space<vmem>>, vector<8x27xf32>
      tpu.vector_store %arg17[%c0_51, %c0_52], %64 {strides = array<i32>} : memref<8x27xf32, #tpu.memory_space<vmem>>, vector<8x27xf32>,
    } else {
    }
    return
  }
  func.func @transform_0(%arg0: i32) -> (i32, i32) {
    %c0_i32 = arith.constant 0 : i32
    %c0_i32_0 = arith.constant 0 : i32
    %c0_i32_1 = arith.constant 0 : i32
    return %c0_i32, %c0_i32_0 : i32, i32
  }
  func.func @transform_1(%arg0: i32) -> (i32, i32) {
    %c0_i32 = arith.constant 0 : i32
    %c0_i32_0 = arith.constant 0 : i32
    return %c0_i32, %arg0 : i32, i32
  }
  func.func @transform_2(%arg0: i32) -> (i32, i32) {
    %c0_i32 = arith.constant 0 : i32
    %c0_i32_0 = arith.constant 0 : i32
    %c0_i32_1 = arith.constant 0 : i32
    return %c0_i32, %c0_i32_0 : i32, i32
  }
  func.func @transform_3(%arg0: i32) -> (i32, i32) {
    %c0_i32 = arith.constant 0 : i32
    %c0_i32_0 = arith.constant 0 : i32
    %c0_i32_1 = arith.constant 0 : i32
    return %c0_i32, %c0_i32_0 : i32, i32
  }
  func.func @transform_4(%arg0: i32) -> (i32, i32) {
    %c0_i32 = arith.constant 0 : i32
    %c0_i32_0 = arith.constant 0 : i32
    return %arg0, %c0_i32 : i32, i32
  }
  func.func @transform_5(%arg0: i32) -> (i32, i32) {
    %c0_i32 = arith.constant 0 : i32
    %c0_i32_0 = arith.constant 0 : i32
    %c0_i32_1 = arith.constant 0 : i32
    return %c0_i32, %c0_i32_0 : i32, i32
  }
  func.func @transform_6(%arg0: i32) -> (i32, i32) {
    %c0_i32 = arith.constant 0 : i32
    %c0_i32_0 = arith.constant 0 : i32
    %c0_i32_1 = arith.constant 0 : i32
    return %c0_i32, %c0_i32_0 : i32, i32
  }
  func.func @transform_7(%arg0: i32) -> (i32, i32) {
    %c0_i32 = arith.constant 0 : i32
    %c0_i32_0 = arith.constant 0 : i32
    %c0_i32_1 = arith.constant 0 : i32
    return %c0_i32, %c0_i32_0 : i32, i32
  }
  func.func @transform_8(%arg0: i32) -> (i32, i32) {
    %c0_i32 = arith.constant 0 : i32
    %c0_i32_0 = arith.constant 0 : i32
    %c0_i32_1 = arith.constant 0 : i32
    return %c0_i32, %c0_i32_0 : i32, i32
  }
  func.func @transform_9(%arg0: i32) -> (i32, i32) {
    %c0_i32 = arith.constant 0 : i32
    %c0_i32_0 = arith.constant 0 : i32
    %c0_i32_1 = arith.constant 0 : i32
    return %c0_i32, %c0_i32_0 : i32, i32
  }
  func.func @transform_10(%arg0: i32) -> (i32, i32) {
    %c0_i32 = arith.constant 0 : i32
    %c0_i32_0 = arith.constant 0 : i32
    %c0_i32_1 = arith.constant 0 : i32
    return %c0_i32, %c0_i32_0 : i32, i32
  }
  func.func @transform_11(%arg0: i32) -> (i32, i32) {
    %c0_i32 = arith.constant 0 : i32
    %c0_i32_0 = arith.constant 0 : i32
    %c0_i32_1 = arith.constant 0 : i32
    return %c0_i32, %c0_i32_0 : i32, i32
  }
  func.func @transform_12(%arg0: i32) -> (i32, i32) {
    %c0_i32 = arith.constant 0 : i32
    %c0_i32_0 = arith.constant 0 : i32
    %c0_i32_1 = arith.constant 0 : i32
    return %c0_i32, %c0_i32_0 : i32, i32
  }
  func.func @transform_13(%arg0: i32) -> (i32, i32) {
    %c0_i32 = arith.constant 0 : i32
    %c0_i32_0 = arith.constant 0 : i32
    %c0_i32_1 = arith.constant 0 : i32
    return %c0_i32, %c0_i32_0 : i32, i32
  }
  func.func @transform_14(%arg0: i32) -> (i32, i32) {
    %c0_i32 = arith.constant 0 : i32
    %c0_i32_0 = arith.constant 0 : i32
    %c0_i32_1 = arith.constant 0 : i32
    return %c0_i32, %c0_i32_0 : i32, i32
  }
  func.func @transform_15(%arg0: i32) -> (i32, i32) {
    %c0_i32 = arith.constant 0 : i32
    %c0_i32_0 = arith.constant 0 : i32
    %c0_i32_1 = arith.constant 0 : i32
    return %c0_i32, %c0_i32_0 : i32, i32
  }
  func.func @transform_16(%arg0: i32) -> (i32, i32) {
    %c0_i32 = arith.constant 0 : i32
    %c0_i32_0 = arith.constant 0 : i32
    %c0_i32_1 = arith.constant 0 : i32
    return %c0_i32, %c0_i32_0 : i32, i32
  }
}

</mosaic_0001>

<bundles_post_ra>
// kernel: linear_model_forward.1
= control target key start
LH: loop header
LB: loop body
LE: loop exit
PB: predicated region body
PF: predicated region fallthrough
CT: control target
= control target key end

     0   :  { %s9855_s21 = smov 0   ;;  %s11766_s0 = inlined_call_operand.vmem [shape: bf16[8,300], index: 0, kind: input, shape index: {}]   ;;  %s11767_s1 = inlined_call_operand.vmem [shape: bf16[8,3840], index: 1, kind: input, shape index: {}]   ;;  %s11768_s2 = inlined_call_operand.vmem [shape: bf16[300,64], index: 2, kind: input, shape index: {}]   ;;  %s11769_s3 = inlined_call_operand.vmem [shape: f32[1,64], index: 3, kind: input, shape index: {}]   ;;  %s11770_s4 = inlined_call_operand.vmem [shape: bf16[3840,1024], index: 4, kind: input, shape index: {}]   ;;  %s11771_s5 = inlined_call_operand.vmem [shape: f32[1,1024], index: 5, kind: input, shape index: {}]   ;;  %s11772_s6 = inlined_call_operand.vmem [shape: bf16[1024,512], index: 6, kind: input, shape index: {}]   ;;  %s11773_s7 = inlined_call_operand.vmem [shape: f32[1,512], index: 7, kind: input, shape index: {}]   ;;  %s11774_s8 = inlined_call_operand.vmem [shape: bf16[512,128], index: 8, kind: input, shape index: {}]   ;;  %s11775_s9 = inlined_call_operand.vmem [shape: f32[1,128], index: 9, kind: input, shape index: {}]   ;;  %s11776_s10 = inlined_call_operand.vmem [shape: bf16[128,64], index: 10, kind: input, shape index: {}]   ;;  %s11777_s11 = inlined_call_operand.vmem [shape: f32[1,64], index: 11, kind: input, shape index: {}]   ;;  %s11778_s12 = inlined_call_operand.vmem [shape: bf16[64,32], index: 12, kind: input, shape index: {}]   ;;  %s11779_s13 = inlined_call_operand.vmem [shape: f32[1,32], index: 13, kind: input, shape index: {}]   ;;  %s11780_s14 = inlined_call_operand.vmem [shape: bf16[32,27], index: 14, kind: input, shape index: {}]   ;;  %s11781_s15 = inlined_call_operand.vmem [shape: f32[1,27], index: 15, kind: input, shape index: {}]   ;;  %s11782_s16 = inlined_call_operand.vmem [shape: f32[8,27], index: 16, kind: output, shape index: {}]  }
   0x1   :  { %11784 = sst [smem:[#allocation3_spill]] %s11766_s0 }
   0x2 LB: > { %s9861_s22 = sadd.s32 4294967295, %s9765_s21   ;;  %p8158_p0 = scmp.ge.s32.totalorder %s9765_s21, 1  ;;  %s9765_s21 = sphi %s9855_s21, %s26_s21  }
   0x3   : > { %p470_p1 = scmp.lt.s32.totalorder %s9765_s21, 4 }
   0x5   : > { %p471_p2 = pnand %p8158_p0, %p470_p1 }
   0x6   : > { %s521_s23 = smul.u32 (!%p471_p2), 10, %s9861_s22  ;;  %p8162_p5 = scmp.ne.s32.totalorder (!%p471_p2), %s9861_s22, 0 }
   0x7   : > { %474 = sbr.rel (%p471_p2) target bundleno = 2166 (0x876), region = 84 }
   0x8   : > { %s527_s24 = smul.u32 (!%p471_p2), 160, %s9861_s22  ;;  %p522_p3 = scmp.lt.s32.totalorder (!%p471_p2), %s521_s23, 29 }
   0xa   : > { %p528_p4 = scmp.lt.s32.totalorder (!%p471_p2), %s527_s24, 479 }
   0xc   : > { %s11787_s23 = smov (!%p522_p3, %s521_s23), 29  ;;  %s11789_s24 = smov (!%p528_p4, %s527_s24), 479 }
   0xd   : > { %s8159_s25 = sshll.u32 %s11787_s23, 2  ;;  %s9148_s29 = sshll.u32 %s11789_s24, 5 }
   0xe   : > { %s9870_s28 = scalar_lea.vmem %s11767_s1, %s8159_s25  ;;  %s9875_s17 = scalar_lea.vmem %s11770_s4, %s9148_s29 }
   0xf   : > { %538 = sbr.rel (%p8162_p5) target bundleno = 25 (0x19), region = 88 }
  0x14   : > { %v9767_v0 = vmov 0.0  }
  0x15   : > { %539 = vst [vmem:[#allocation2 + $0x30] sm:$0xff] %v9767_v0  ;;  %540 = vst [vmem:[#allocation2] sm:$0xff] %v9767_v0 }
  0x16   : > { %541 = vst [vmem:[#allocation2 + $0x18] sm:$0xff] %v9767_v0  ;;  %542 = vst [vmem:[#allocation2 + $0x10] sm:$0xff] %v9767_v0 }
  0x17   : > { %543 = vst [vmem:[#allocation2 + $0x8] sm:$0xff] %v9767_v0  ;;  %544 = vst [vmem:[#allocation2 + $0x20] sm:$0xff] %v9767_v0 }
  0x18   : > { %545 = vst [vmem:[#allocation2 + $0x28] sm:$0xff] %v9767_v0  ;;  %546 = vst [vmem:[#allocation2 + $0x38] sm:$0xff] %v9767_v0 }
  0x19 PF: > { %v616_v1 = vld [vmem:[%s9875_s17 + $0x1c0] sm:$0xff]  ;;  %v9910_v55 = vld [vmem:[%s9870_s28 + $0x8] sm:$0xff]  ;;  %p8813_p6 = scmp.ne.s32.totalorder %s9861_s22, 2 }
  0x1a   : > { %v620_v2 = vld [vmem:[%s9875_s17 + $0x1e0] sm:$0xff]  ;;  %v9920_v60 = vcombine.high %v9910_v55, %v9910_v55  ;;  %s11785_s18 = sld [smem:[#allocation3_spill]] (!%p8813_p6) }
  0x1b   : > { %v744_v3 = vld [vmem:[%s9875_s17 + $0x5c0] sm:$0xff]  ;;  %v8230_v4 = vcombine.high %v616_v1, %v620_v2  ;;  %v8229_v6 = vcombine.low %v616_v1, %v620_v2 }
  0x1c   : > { %v748_v5 = vld [vmem:[%s9875_s17 + $0x5e0] sm:$0xff]  ;;  %4508 = vmatprep.mubr.bf16.mxu1 %v9920_v60 }
  0x1d   : > { %v608_v7 = vld [vmem:[%s9875_s17 + $0x180] sm:$0xff]  ;;  %v8358_v9 = vcombine.high %v744_v3, %v748_v5  ;;  %v8357_v10 = vcombine.low %v744_v3, %v748_v5  ;;  %4435 = vmatprep.subr.bf16.mxu0 %v8230_v4 }
  0x1e   : > { %v612_v8 = vld [vmem:[%s9875_s17 + $0x1a0] sm:$0xff]  ;;  %4436 = vmatpush1.bf16.msra.mxu0 %v8229_v6 }
  0x1f   : > { %v8222_v11 = vcombine.high %v608_v7, %v612_v8  ;;  %v736_v12 = vld [vmem:[%s9875_s17 + $0x580] sm:$0xff]  ;;  %4476 = vmatprep.subr.bf16.mxu1 %v8358_v9  ;;  %v8221_v19 = vcombine.low %v608_v7, %v612_v8 }
  0x20   : > { %v740_v13 = vld [vmem:[%s9875_s17 + $0x5a0] sm:$0xff]  ;;  %4477 = vmatpush1.bf16.msra.mxu1 %v8357_v10 }
  0x21   : > { %v600_v14 = vld [vmem:[%s9875_s17 + $0x140] sm:$0xff]  ;;  %v8350_v15 = vcombine.high %v736_v12, %v740_v13  ;;  %4437 = vmatprep.subr.bf16.mxu0 %v8222_v11  ;;  %v8349_v20 = vcombine.low %v736_v12, %v740_v13 }
  0x22   : > { %v604_v16 = vld [vmem:[%s9875_s17 + $0x160] sm:$0xff]  ;;  %4438 = vmatpush1.bf16.msra.mxu0 %v8221_v19 }
  0x23   : > { %v728_v17 = vld [vmem:[%s9875_s17 + $0x540] sm:$0xff]  ;;  %v8214_v21 = vcombine.high %v600_v14, %v604_v16  ;;  %4478 = vmatprep.subr.bf16.mxu1 %v8350_v15  ;;  %v8213_v27 = vcombine.low %v600_v14, %v604_v16 }
  0x24   : > { %v732_v18 = vld [vmem:[%s9875_s17 + $0x560] sm:$0xff]  ;;  %4479 = vmatpush1.bf16.msra.mxu1 %v8349_v20 }
  0x25   : > { %v8342_v22 = vcombine.high %v728_v17, %v732_v18  ;;  %v592_v23 = vld [vmem:[%s9875_s17 + $0x100] sm:$0xff]  ;;  %4439 = vmatprep.subr.bf16.mxu0 %v8214_v21  ;;  %v8341_v28 = vcombine.low %v728_v17, %v732_v18 }
  0x26   : > { %v596_v24 = vld [vmem:[%s9875_s17 + $0x120] sm:$0xff]  ;;  %4440 = vmatpush1.bf16.msra.mxu0 %v8213_v27 }
  0x27   : > { %v720_v25 = vld [vmem:[%s9875_s17 + $0x500] sm:$0xff]  ;;  %v8206_v29 = vcombine.high %v592_v23, %v596_v24  ;;  %4480 = vmatprep.subr.bf16.mxu1 %v8342_v22  ;;  %v8205_v35 = vcombine.low %v592_v23, %v596_v24 }
  0x28   : > { %v724_v26 = vld [vmem:[%s9875_s17 + $0x520] sm:$0xff]  ;;  %4481 = vmatpush1.bf16.msra.mxu1 %v8341_v28 }
  0x29   : > { %v8334_v30 = vcombine.high %v720_v25, %v724_v26  ;;  %v584_v31 = vld [vmem:[%s9875_s17 + $0xc0] sm:$0xff]  ;;  %4441 = vmatprep.subr.bf16.mxu0 %v8206_v29  ;;  %v8333_v36 = vcombine.low %v720_v25, %v724_v26 }
  0x2a   : > { %v588_v32 = vld [vmem:[%s9875_s17 + $0xe0] sm:$0xff]  ;;  %4442 = vmatpush1.bf16.msra.mxu0 %v8205_v35 }
  0x2b   : > { %v712_v33 = vld [vmem:[%s9875_s17 + $0x4c0] sm:$0xff]  ;;  %v8198_v37 = vcombine.high %v584_v31, %v588_v32  ;;  %4482 = vmatprep.subr.bf16.mxu1 %v8334_v30  ;;  %v8197_v43 = vcombine.low %v584_v31, %v588_v32 }
  0x2c   : > { %v716_v34 = vld [vmem:[%s9875_s17 + $0x4e0] sm:$0xff]  ;;  %4483 = vmatpush1.bf16.msra.mxu1 %v8333_v36 }
  0x2d   : > { %v8326_v38 = vcombine.high %v712_v33, %v716_v34  ;;  %v576_v39 = vld [vmem:[%s9875_s17 + $0x80] sm:$0xff]  ;;  %4443 = vmatprep.subr.bf16.mxu0 %v8198_v37  ;;  %v8325_v44 = vcombine.low %v712_v33, %v716_v34 }
  0x2e   : > { %v580_v40 = vld [vmem:[%s9875_s17 + $0xa0] sm:$0xff]  ;;  %4444 = vmatpush1.bf16.msra.mxu0 %v8197_v43 }
  0x2f   : > { %v704_v41 = vld [vmem:[%s9875_s17 + $0x480] sm:$0xff]  ;;  %v8190_v45 = vcombine.high %v576_v39, %v580_v40  ;;  %4484 = vmatprep.subr.bf16.mxu1 %v8326_v38  ;;  %v8189_v51 = vcombine.low %v576_v39, %v580_v40 }
  0x30   : > { %v708_v42 = vld [vmem:[%s9875_s17 + $0x4a0] sm:$0xff]  ;;  %4485 = vmatpush1.bf16.msra.mxu1 %v8325_v44 }
  0x31   : > { %v8318_v46 = vcombine.high %v704_v41, %v708_v42  ;;  %v568_v47 = vld [vmem:[%s9875_s17 + $0x40] sm:$0xff]  ;;  %4445 = vmatprep.subr.bf16.mxu0 %v8190_v45  ;;  %v8317_v52 = vcombine.low %v704_v41, %v708_v42 }
  0x32   : > { %v572_v48 = vld [vmem:[%s9875_s17 + $0x60] sm:$0xff]  ;;  %4446 = vmatpush1.bf16.msra.mxu0 %v8189_v51 }
  0x33   : > { %v696_v49 = vld [vmem:[%s9875_s17 + $0x440] sm:$0xff]  ;;  %v8182_v53 = vcombine.high %v568_v47, %v572_v48  ;;  %4486 = vmatprep.subr.bf16.mxu1 %v8318_v46  ;;  %v8181_v63 = vcombine.low %v568_v47, %v572_v48 }
  0x34   : > { %v700_v50 = vld [vmem:[%s9875_s17 + $0x460] sm:$0xff]  ;;  %4487 = vmatpush1.bf16.msra.mxu1 %v8317_v52 }
  0x35   : > { %v9907_v54 = vld [vmem:[%s9870_s28] sm:$0xff]  ;;  %v8310_v56 = vcombine.high %v696_v49, %v700_v50  ;;  %4447 = vmatprep.subr.bf16.mxu0 %v8182_v53  ;;  %v8309_v0 = vcombine.low %v696_v49, %v700_v50 }
  0x36   : > { %v560_v57 = vld [vmem:[%s9875_s17] sm:$0xff]  ;;  %v9916_v59 = vcombine.high %v9907_v54, %v9907_v54  ;;  %4448 = vmatpush1.bf16.msra.mxu0 %v8181_v63 }
  0x37   : > { %v564_v58 = vld [vmem:[%s9875_s17 + $0x20] sm:$0xff]  ;;  %4488 = vmatprep.subr.bf16.mxu1 %v8310_v56 }
  0x38   : > { %v688_v61 = vld [vmem:[%s9875_s17 + $0x400] sm:$0xff]  ;;  %4467 = vmatprep.mubr.bf16.mxu0 %v9916_v59  ;;  %v8174_v1 = vcombine.high %v560_v57, %v564_v58  ;;  %v8173_v7 = vcombine.low %v560_v57, %v564_v58  ;;  %4489 = vmatpush1.bf16.msra.mxu1 %v8309_v0 }
  0x39   : > { %v692_v62 = vld [vmem:[%s9875_s17 + $0x420] sm:$0xff] }
  0x3a   : > { %v8302_v2 = vcombine.high %v688_v61, %v692_v62  ;;  %v680_v3 = vld [vmem:[%s9875_s17 + $0x3c0] sm:$0xff]  ;;  %4449 = vmatprep.subr.bf16.mxu0 %v8174_v1  ;;  %v8301_v8 = vcombine.low %v688_v61, %v692_v62 }
  0x3b   : > { %v684_v4 = vld [vmem:[%s9875_s17 + $0x3e0] sm:$0xff]  ;;  %4450 = vmatpush1.bf16.msra.mxu0 %v8173_v7 }
  0x3c   : > { %v808_v5 = vld [vmem:[%s9875_s17 + $0x7c0] sm:$0xff]  ;;  %v8294_v9 = vcombine.high %v680_v3, %v684_v4  ;;  %4490 = vmatprep.subr.bf16.mxu1 %v8302_v2  ;;  %v8293_v15 = vcombine.low %v680_v3, %v684_v4 }
  0x3d   : > { %v812_v6 = vld [vmem:[%s9875_s17 + $0x7e0] sm:$0xff]  ;;  %4491 = vmatpush1.bf16.msra.mxu1 %v8301_v8 }
  0x3e   : > { %v8422_v10 = vcombine.high %v808_v5, %v812_v6  ;;  %v672_v11 = vld [vmem:[%s9875_s17 + $0x380] sm:$0xff]  ;;  %4451 = vmatprep.subr.bf16.mxu0 %v8294_v9  ;;  %v8421_v16 = vcombine.low %v808_v5, %v812_v6 }
  0x3f   : > { %v676_v12 = vld [vmem:[%s9875_s17 + $0x3a0] sm:$0xff]  ;;  %4452 = vmatpush2.bf16.msra.mxu0 %v8293_v15 }
  0x40   : > { %v800_v13 = vld [vmem:[%s9875_s17 + $0x780] sm:$0xff]  ;;  %v8286_v17 = vcombine.high %v672_v11, %v676_v12  ;;  %4492 = vmatprep.subr.bf16.mxu1 %v8422_v10  ;;  %v8285_v23 = vcombine.low %v672_v11, %v676_v12 }
  0x41   : > { %v804_v14 = vld [vmem:[%s9875_s17 + $0x7a0] sm:$0xff]  ;;  %4493 = vmatpush2.bf16.msra.mxu1 %v8421_v16 }
  0x42   : > { %v8414_v18 = vcombine.high %v800_v13, %v804_v14  ;;  %v664_v19 = vld [vmem:[%s9875_s17 + $0x340] sm:$0xff]  ;;  %4453 = vmatprep.subr.bf16.mxu0 %v8286_v17  ;;  %v8413_v24 = vcombine.low %v800_v13, %v804_v14  ;;  %v9966_v17 = vcombine.low %v9907_v54, %v9907_v54 }
  0x43   : > { %v668_v20 = vld [vmem:[%s9875_s17 + $0x360] sm:$0xff]  ;;  %4454 = vmatpush2.bf16.msra.mxu0 %v8285_v23  ;;  %v9978_v23 = vld [vmem:[%s9870_s28 + $0x18] sm:$0xff] }
  0x44   : > { %v792_v21 = vld [vmem:[%s9875_s17 + $0x740] sm:$0xff]  ;;  %v8278_v25 = vcombine.high %v664_v19, %v668_v20  ;;  %4494 = vmatprep.subr.bf16.mxu1 %v8414_v18  ;;  %v8277_v31 = vcombine.low %v664_v19, %v668_v20  ;;  %v9971_v20 = vld [vmem:[%s9870_s28 + $0x10] sm:$0xff] }
  0x45   : > { %v796_v22 = vld [vmem:[%s9875_s17 + $0x760] sm:$0xff]  ;;  %4495 = vmatpush2.bf16.msra.mxu1 %v8413_v24 }
  0x46   : > { %v8406_v26 = vcombine.high %v792_v21, %v796_v22  ;;  %v656_v27 = vld [vmem:[%s9875_s17 + $0x300] sm:$0xff]  ;;  %4455 = vmatprep.subr.bf16.mxu0 %v8278_v25  ;;  %v8405_v32 = vcombine.low %v792_v21, %v796_v22  ;;  %v9975_v21 = vcombine.low %v9910_v55, %v9910_v55 }
  0x47   : > { %v660_v28 = vld [vmem:[%s9875_s17 + $0x320] sm:$0xff]  ;;  %4456 = vmatpush2.bf16.msra.mxu0 %v8277_v31 }
  0x48   : > { %v784_v29 = vld [vmem:[%s9875_s17 + $0x700] sm:$0xff]  ;;  %v8270_v33 = vcombine.high %v656_v27, %v660_v28  ;;  %4496 = vmatprep.subr.bf16.mxu1 %v8406_v26  ;;  %v8269_v39 = vcombine.low %v656_v27, %v660_v28  ;;  %v9984_v28 = vcombine.high %v9971_v20, %v9971_v20 }
  0x49   : > { %v788_v30 = vld [vmem:[%s9875_s17 + $0x720] sm:$0xff]  ;;  %4497 = vmatpush2.bf16.msra.mxu1 %v8405_v32 }
  0x4a   : > { %v8398_v34 = vcombine.high %v784_v29, %v788_v30  ;;  %v648_v35 = vld [vmem:[%s9875_s17 + $0x2c0] sm:$0xff]  ;;  %4457 = vmatprep.subr.bf16.mxu0 %v8270_v33  ;;  %v8397_v40 = vcombine.low %v784_v29, %v788_v30  ;;  %v9991_v30 = vcombine.high %v9978_v23, %v9978_v23 }
  0x4b   : > { %v652_v36 = vld [vmem:[%s9875_s17 + $0x2e0] sm:$0xff]  ;;  %4458 = vmatpush2.bf16.msra.mxu0 %v8269_v39 }
  0x4c   : > { %v776_v37 = vld [vmem:[%s9875_s17 + $0x6c0] sm:$0xff]  ;;  %v8262_v41 = vcombine.high %v648_v35, %v652_v36  ;;  %4498 = vmatprep.subr.bf16.mxu1 %v8398_v34  ;;  %v8261_v47 = vcombine.low %v648_v35, %v652_v36 }
  0x4d   : > { %v780_v38 = vld [vmem:[%s9875_s17 + $0x6e0] sm:$0xff]  ;;  %4499 = vmatpush2.bf16.msra.mxu1 %v8397_v40 }
  0x4e   : > { %v8390_v42 = vcombine.high %v776_v37, %v780_v38  ;;  %v640_v43 = vld [vmem:[%s9875_s17 + $0x280] sm:$0xff]  ;;  %4459 = vmatprep.subr.bf16.mxu0 %v8262_v41  ;;  %v8389_v48 = vcombine.low %v776_v37, %v780_v38 }
  0x4f   : > { %v644_v44 = vld [vmem:[%s9875_s17 + $0x2a0] sm:$0xff]  ;;  %4460 = vmatpush2.bf16.msra.mxu0 %v8261_v47 }
  0x50   : > { %v768_v45 = vld [vmem:[%s9875_s17 + $0x680] sm:$0xff]  ;;  %v8254_v49 = vcombine.high %v640_v43, %v644_v44  ;;  %4500 = vmatprep.subr.bf16.mxu1 %v8390_v42  ;;  %v8253_v57 = vcombine.low %v640_v43, %v644_v44 }
  0x51   : > { %v772_v46 = vld [vmem:[%s9875_s17 + $0x6a0] sm:$0xff]  ;;  %4501 = vmatpush2.bf16.msra.mxu1 %v8389_v48 }
  0x52   : > { %v8382_v50 = vcombine.high %v768_v45, %v772_v46  ;;  %v632_v51 = vld [vmem:[%s9875_s17 + $0x240] sm:$0xff]  ;;  %4461 = vmatprep.subr.bf16.mxu0 %v8254_v49  ;;  %v8381_v58 = vcombine.low %v768_v45, %v772_v46 }
  0x53   : > { %v636_v52 = vld [vmem:[%s9875_s17 + $0x260] sm:$0xff]  ;;  %4462 = vmatpush2.bf16.msra.mxu0 %v8253_v57 }
  0x54   : > { %v760_v53 = vld [vmem:[%s9875_s17 + $0x640] sm:$0xff]  ;;  %v8246_v61 = vcombine.high %v632_v51, %v636_v52  ;;  %4502 = vmatprep.subr.bf16.mxu1 %v8382_v50  ;;  %v8245_v3 = vcombine.low %v632_v51, %v636_v52 }
  0x55   : > { %v764_v56 = vld [vmem:[%s9875_s17 + $0x660] sm:$0xff]  ;;  %4503 = vmatpush2.bf16.msra.mxu1 %v8381_v58 }
  0x56   : > { %v8374_v62 = vcombine.high %v760_v53, %v764_v56  ;;  %v624_v63 = vld [vmem:[%s9875_s17 + $0x200] sm:$0xff]  ;;  %4463 = vmatprep.subr.bf16.mxu0 %v8246_v61  ;;  %v8373_v4 = vcombine.low %v760_v53, %v764_v56 }
  0x57   : > { %v628_v0 = vld [vmem:[%s9875_s17 + $0x220] sm:$0xff]  ;;  %4464 = vmatpush2.bf16.msra.mxu0 %v8245_v3 }
  0x58   : > { %v752_v1 = vld [vmem:[%s9875_s17 + $0x600] sm:$0xff]  ;;  %v8238_v5 = vcombine.high %v624_v63, %v628_v0  ;;  %4504 = vmatprep.subr.bf16.mxu1 %v8374_v62  ;;  %v8237_v11 = vcombine.low %v624_v63, %v628_v0 }
  0x59   : > { %v756_v2 = vld [vmem:[%s9875_s17 + $0x620] sm:$0xff]  ;;  %4505 = vmatpush2.bf16.msra.mxu1 %v8373_v4 }
  0x5a   : > { %v8366_v6 = vcombine.high %v752_v1, %v756_v2  ;;  %v872_v7 = vld [vmem:[%s9875_s17 + $0x9c0] sm:$0xff]  ;;  %4465 = vmatprep.subr.bf16.mxu0 %v8238_v5  ;;  %v8365_v12 = vcombine.low %v752_v1, %v756_v2 }
  0x5b   : > { %v876_v8 = vld [vmem:[%s9875_s17 + $0x9e0] sm:$0xff]  ;;  %4466 = vmatpush2.bf16.msra.mxu0 %v8237_v11 }
  0x5c   : > { %v1000_v9 = vld [vmem:[%s9875_s17 + $0xdc0] sm:$0xff]  ;;  %v8486_v13 = vcombine.high %v872_v7, %v876_v8  ;;  %4506 = vmatprep.subr.bf16.mxu1 %v8366_v6  ;;  %v8485_v22 = vcombine.low %v872_v7, %v876_v8 }
  0x5d   : > { %v1004_v10 = vld [vmem:[%s9875_s17 + $0xde0] sm:$0xff]  ;;  %4507 = vmatpush2.bf16.msra.mxu1 %v8365_v12 }
  0x5e   : > { %v8614_v14 = vcombine.high %v1000_v9, %v1004_v10  ;;  %v864_v15 = vld [vmem:[%s9875_s17 + $0x980] sm:$0xff]  ;;  %4517 = vmatprep.subr.bf16.mxu0 %v8486_v13  ;;  %v8613_v24 = vcombine.low %v1000_v9, %v1004_v10  ;;  %4468 = vmatmul.mubr.bf16.vlgmr.msra.gmra.mxu0 %v9966_v17 }
  0x5f   : > { %v868_v16 = vld [vmem:[%s9875_s17 + $0x9a0] sm:$0xff]  ;;  %4518 = vmatpush1.bf16.msra.mxu0 %v8485_v22  ;;  %4549 = vmatprep.mubr.bf16.mxu0 %v9984_v28 }
  0x60   : > { %v992_v18 = vld [vmem:[%s9875_s17 + $0xd80] sm:$0xff]  ;;  %v8478_v25 = vcombine.high %v864_v15, %v868_v16  ;;  %4558 = vmatprep.subr.bf16.mxu1 %v8614_v14  ;;  %4509 = vmatmul.mubr.bf16.vlgmr.msra.gmra.mxu1 %v9975_v21  ;;  %v8477_v31 = vcombine.low %v864_v15, %v868_v16 }
  0x61   : > { %v996_v19 = vld [vmem:[%s9875_s17 + $0xda0] sm:$0xff]  ;;  %4559 = vmatpush1.bf16.msra.mxu1 %v8613_v24  ;;  %4590 = vmatprep.mubr.bf16.mxu1 %v9991_v30 }
  0x62   : > { %v8606_v54 = vcombine.high %v992_v18, %v996_v19  ;;  %v856_v26 = vld [vmem:[%s9875_s17 + $0x940] sm:$0xff]  ;;  %4519 = vmatprep.subr.bf16.mxu0 %v8478_v25  ;;  %v8605_v32 = vcombine.low %v992_v18, %v996_v19 }
  0x63   : > { %v860_v27 = vld [vmem:[%s9875_s17 + $0x960] sm:$0xff]  ;;  %4520 = vmatpush1.bf16.msra.mxu0 %v8477_v31 }
  0x64   : > { %v984_v55 = vld [vmem:[%s9875_s17 + $0xd40] sm:$0xff]  ;;  %v8470_v33 = vcombine.high %v856_v26, %v860_v27  ;;  %4560 = vmatprep.subr.bf16.mxu1 %v8606_v54  ;;  %v8469_v39 = vcombine.low %v856_v26, %v860_v27 }
  0x65   : > { %v988_v29 = vld [vmem:[%s9875_s17 + $0xd60] sm:$0xff]  ;;  %4561 = vmatpush1.bf16.msra.mxu1 %v8605_v32 }
  0x66   : > { %v8598_v34 = vcombine.high %v984_v55, %v988_v29  ;;  %v848_v35 = vld [vmem:[%s9875_s17 + $0x900] sm:$0xff]  ;;  %4521 = vmatprep.subr.bf16.mxu0 %v8470_v33  ;;  %v8597_v40 = vcombine.low %v984_v55, %v988_v29 }
  0x67   : > { %v852_v36 = vld [vmem:[%s9875_s17 + $0x920] sm:$0xff]  ;;  %4522 = vmatpush1.bf16.msra.mxu0 %v8469_v39 }
  0x68   : > { %v976_v37 = vld [vmem:[%s9875_s17 + $0xd00] sm:$0xff]  ;;  %v8462_v41 = vcombine.high %v848_v35, %v852_v36  ;;  %4562 = vmatprep.subr.bf16.mxu1 %v8598_v34  ;;  %v8461_v47 = vcombine.low %v848_v35, %v852_v36 }
  0x69   : > { %v980_v38 = vld [vmem:[%s9875_s17 + $0xd20] sm:$0xff]  ;;  %4563 = vmatpush1.bf16.msra.mxu1 %v8597_v40 }
  0x6a   : > { %v8590_v42 = vcombine.high %v976_v37, %v980_v38  ;;  %v840_v43 = vld [vmem:[%s9875_s17 + $0x8c0] sm:$0xff]  ;;  %4523 = vmatprep.subr.bf16.mxu0 %v8462_v41  ;;  %v8589_v48 = vcombine.low %v976_v37, %v980_v38 }
  0x6b   : > { %v844_v44 = vld [vmem:[%s9875_s17 + $0x8e0] sm:$0xff]  ;;  %4524 = vmatpush1.bf16.msra.mxu0 %v8461_v47 }
  0x6c   : > { %v968_v45 = vld [vmem:[%s9875_s17 + $0xcc0] sm:$0xff]  ;;  %v8454_v49 = vcombine.high %v840_v43, %v844_v44  ;;  %4564 = vmatprep.subr.bf16.mxu1 %v8590_v42  ;;  %v8453_v57 = vcombine.low %v840_v43, %v844_v44 }
  0x6d   : > { %v972_v46 = vld [vmem:[%s9875_s17 + $0xce0] sm:$0xff]  ;;  %4565 = vmatpush1.bf16.msra.mxu1 %v8589_v48 }
  0x6e   : > { %v8582_v50 = vcombine.high %v968_v45, %v972_v46  ;;  %v832_v51 = vld [vmem:[%s9875_s17 + $0x880] sm:$0xff]  ;;  %4525 = vmatprep.subr.bf16.mxu0 %v8454_v49  ;;  %v8581_v58 = vcombine.low %v968_v45, %v972_v46 }
  0x6f   : > { %v836_v52 = vld [vmem:[%s9875_s17 + $0x8a0] sm:$0xff]  ;;  %4526 = vmatpush1.bf16.msra.mxu0 %v8453_v57 }
  0x70   : > { %v960_v53 = vld [vmem:[%s9875_s17 + $0xc80] sm:$0xff]  ;;  %v8446_v61 = vcombine.high %v832_v51, %v836_v52  ;;  %4566 = vmatprep.subr.bf16.mxu1 %v8582_v50  ;;  %v8445_v3 = vcombine.low %v832_v51, %v836_v52 }
  0x71   : > { %v964_v56 = vld [vmem:[%s9875_s17 + $0xca0] sm:$0xff]  ;;  %4567 = vmatpush1.bf16.msra.mxu1 %v8581_v58 }
  0x72   : > { %v8574_v62 = vcombine.high %v960_v53, %v964_v56  ;;  %v824_v63 = vld [vmem:[%s9875_s17 + $0x840] sm:$0xff]  ;;  %4527 = vmatprep.subr.bf16.mxu0 %v8446_v61  ;;  %v8573_v4 = vcombine.low %v960_v53, %v964_v56 }
  0x73   : > { %v828_v0 = vld [vmem:[%s9875_s17 + $0x860] sm:$0xff]  ;;  %4528 = vmatpush1.bf16.msra.mxu0 %v8445_v3 }
  0x74   : > { %v952_v1 = vld [vmem:[%s9875_s17 + $0xc40] sm:$0xff]  ;;  %v8438_v5 = vcombine.high %v824_v63, %v828_v0  ;;  %4568 = vmatprep.subr.bf16.mxu1 %v8574_v62  ;;  %v8437_v11 = vcombine.low %v824_v63, %v828_v0 }
  0x75   : > { %v956_v2 = vld [vmem:[%s9875_s17 + $0xc60] sm:$0xff]  ;;  %4569 = vmatpush1.bf16.msra.mxu1 %v8573_v4 }
  0x76   : > { %v8566_v6 = vcombine.high %v952_v1, %v956_v2  ;;  %v816_v7 = vld [vmem:[%s9875_s17 + $0x800] sm:$0xff]  ;;  %4529 = vmatprep.subr.bf16.mxu0 %v8438_v5  ;;  %v8565_v12 = vcombine.low %v952_v1, %v956_v2 }
  0x77   : > { %v820_v8 = vld [vmem:[%s9875_s17 + $0x820] sm:$0xff]  ;;  %4530 = vmatpush1.bf16.msra.mxu0 %v8437_v11 }
  0x78   : > { %v944_v9 = vld [vmem:[%s9875_s17 + $0xc00] sm:$0xff]  ;;  %v8430_v13 = vcombine.high %v816_v7, %v820_v8  ;;  %4570 = vmatprep.subr.bf16.mxu1 %v8566_v6  ;;  %v8429_v22 = vcombine.low %v816_v7, %v820_v8 }
  0x79   : > { %v948_v10 = vld [vmem:[%s9875_s17 + $0xc20] sm:$0xff]  ;;  %4571 = vmatpush1.bf16.msra.mxu1 %v8565_v12 }
  0x7a   : > { %v8558_v14 = vcombine.high %v944_v9, %v948_v10  ;;  %v936_v15 = vld [vmem:[%s9875_s17 + $0xbc0] sm:$0xff]  ;;  %4531 = vmatprep.subr.bf16.mxu0 %v8430_v13  ;;  %v8557_v24 = vcombine.low %v944_v9, %v948_v10 }
  0x7b   : > { %v940_v16 = vld [vmem:[%s9875_s17 + $0xbe0] sm:$0xff]  ;;  %4532 = vmatpush1.bf16.msra.mxu0 %v8429_v22 }
  0x7c   : > { %v1064_v18 = vld [vmem:[%s9875_s17 + $0xfc0] sm:$0xff]  ;;  %v8550_v25 = vcombine.high %v936_v15, %v940_v16  ;;  %4572 = vmatprep.subr.bf16.mxu1 %v8558_v14  ;;  %v8549_v31 = vcombine.low %v936_v15, %v940_v16 }
  0x7d   : > { %v1068_v19 = vld [vmem:[%s9875_s17 + $0xfe0] sm:$0xff]  ;;  %4573 = vmatpush1.bf16.msra.mxu1 %v8557_v24 }
  0x7e   : > { %v8678_v54 = vcombine.high %v1064_v18, %v1068_v19  ;;  %v928_v26 = vld [vmem:[%s9875_s17 + $0xb80] sm:$0xff]  ;;  %4533 = vmatprep.subr.bf16.mxu0 %v8550_v25  ;;  %v8677_v32 = vcombine.low %v1064_v18, %v1068_v19 }
  0x7f   : > { %v932_v27 = vld [vmem:[%s9875_s17 + $0xba0] sm:$0xff]  ;;  %4534 = vmatpush2.bf16.msra.mxu0 %v8549_v31 }
  0x80   : > { %v1056_v55 = vld [vmem:[%s9875_s17 + $0xf80] sm:$0xff]  ;;  %v8542_v33 = vcombine.high %v928_v26, %v932_v27  ;;  %4574 = vmatprep.subr.bf16.mxu1 %v8678_v54  ;;  %v8541_v39 = vcombine.low %v928_v26, %v932_v27 }
  0x81   : > { %v1060_v29 = vld [vmem:[%s9875_s17 + $0xfa0] sm:$0xff]  ;;  %4575 = vmatpush2.bf16.msra.mxu1 %v8677_v32 }
  0x82   : > { %v8670_v34 = vcombine.high %v1056_v55, %v1060_v29  ;;  %v920_v35 = vld [vmem:[%s9875_s17 + $0xb40] sm:$0xff]  ;;  %4535 = vmatprep.subr.bf16.mxu0 %v8542_v33  ;;  %v8669_v40 = vcombine.low %v1056_v55, %v1060_v29  ;;  %v617_v55 = vld [vmem:[%s9875_s17 + $0x1c8] sm:$0xff] }
  0x83   : > { %v924_v36 = vld [vmem:[%s9875_s17 + $0xb60] sm:$0xff]  ;;  %4536 = vmatpush2.bf16.msra.mxu0 %v8541_v39  ;;  %v621_v29 = vld [vmem:[%s9875_s17 + $0x1e8] sm:$0xff] }
  0x84   : > { %v1048_v37 = vld [vmem:[%s9875_s17 + $0xf40] sm:$0xff]  ;;  %v8534_v41 = vcombine.high %v920_v35, %v924_v36  ;;  %4576 = vmatprep.subr.bf16.mxu1 %v8670_v34  ;;  %v8533_v47 = vcombine.low %v920_v35, %v924_v36  ;;  %v8232_v34 = vcombine.high %v617_v55, %v621_v29  ;;  %v613_v39 = vld [vmem:[%s9875_s17 + $0x1a8] sm:$0xff] }
  0x85   : > { %v1052_v38 = vld [vmem:[%s9875_s17 + $0xf60] sm:$0xff]  ;;  %4577 = vmatpush2.bf16.msra.mxu1 %v8669_v40 }
  0x86   : > { %v8662_v42 = vcombine.high %v1048_v37, %v1052_v38  ;;  %v912_v43 = vld [vmem:[%s9875_s17 + $0xb00] sm:$0xff]  ;;  %4537 = vmatprep.subr.bf16.mxu0 %v8534_v41  ;;  %v8661_v48 = vcombine.low %v1048_v37, %v1052_v38  ;;  %v10056_v37 = vcombine.low %v9971_v20, %v9971_v20  ;;  %v609_v38 = vld [vmem:[%s9875_s17 + $0x188] sm:$0xff]  ;;  %v10065_v41 = vcombine.low %v9978_v23, %v9978_v23 }
  0x87   : > { %v916_v44 = vld [vmem:[%s9875_s17 + $0xb20] sm:$0xff]  ;;  %4538 = vmatpush2.bf16.msra.mxu0 %v8533_v47  ;;  %v601_v23 = vld [vmem:[%s9875_s17 + $0x148] sm:$0xff] }
  0x88   : > { %v1040_v45 = vld [vmem:[%s9875_s17 + $0xf00] sm:$0xff]  ;;  %v8526_v49 = vcombine.high %v912_v43, %v916_v44  ;;  %4578 = vmatprep.subr.bf16.mxu1 %v8662_v42  ;;  %v8525_v57 = vcombine.low %v912_v43, %v916_v44  ;;  %v8231_v43 = vcombine.low %v617_v55, %v621_v29 }
  0x89   : > { %v1044_v46 = vld [vmem:[%s9875_s17 + $0xf20] sm:$0xff]  ;;  %4579 = vmatpush2.bf16.msra.mxu1 %v8661_v48  ;;  %v605_v48 = vld [vmem:[%s9875_s17 + $0x168] sm:$0xff] }
  0x8a   : > { %v8654_v50 = vcombine.high %v1040_v45, %v1044_v46  ;;  %v904_v51 = vld [vmem:[%s9875_s17 + $0xac0] sm:$0xff]  ;;  %4539 = vmatprep.subr.bf16.mxu0 %v8526_v49  ;;  %v8653_v58 = vcombine.low %v1040_v45, %v1044_v46  ;;  %v8224_v45 = vcombine.high %v609_v38, %v613_v39 }
  0x8b   : > { %v908_v52 = vld [vmem:[%s9875_s17 + $0xae0] sm:$0xff]  ;;  %4540 = vmatpush2.bf16.msra.mxu0 %v8525_v57  ;;  %v593_v57 = vld [vmem:[%s9875_s17 + $0x108] sm:$0xff] }
  0x8c   : > { %v1032_v53 = vld [vmem:[%s9875_s17 + $0xec0] sm:$0xff]  ;;  %v8518_v61 = vcombine.high %v904_v51, %v908_v52  ;;  %4580 = vmatprep.subr.bf16.mxu1 %v8654_v50  ;;  %v8517_v3 = vcombine.low %v904_v51, %v908_v52  ;;  %v8223_v50 = vcombine.low %v609_v38, %v613_v39  ;;  %v8216_v52 = vcombine.high %v601_v23, %v605_v48 }
  0x8d   : > { %v1036_v56 = vld [vmem:[%s9875_s17 + $0xee0] sm:$0xff]  ;;  %4581 = vmatpush2.bf16.msra.mxu1 %v8653_v58  ;;  %v597_v58 = vld [vmem:[%s9875_s17 + $0x128] sm:$0xff] }
  0x8e   : > { %v8646_v62 = vcombine.high %v1032_v53, %v1036_v56  ;;  %v896_v63 = vld [vmem:[%s9875_s17 + $0xa80] sm:$0xff]  ;;  %4541 = vmatprep.subr.bf16.mxu0 %v8518_v61  ;;  %v8645_v4 = vcombine.low %v1032_v53, %v1036_v56 }
  0x8f   : > { %v900_v0 = vld [vmem:[%s9875_s17 + $0xaa0] sm:$0xff]  ;;  %4542 = vmatpush2.bf16.msra.mxu0 %v8517_v3  ;;  %v585_v3 = vld [vmem:[%s9875_s17 + $0xc8] sm:$0xff] }
  0x90   : > { %v1024_v1 = vld [vmem:[%s9875_s17 + $0xe80] sm:$0xff]  ;;  %v8510_v5 = vcombine.high %v896_v63, %v900_v0  ;;  %4582 = vmatprep.subr.bf16.mxu1 %v8646_v62  ;;  %v8509_v11 = vcombine.low %v896_v63, %v900_v0  ;;  %v8215_v62 = vcombine.low %v601_v23, %v605_v48  ;;  %v8208_v0 = vcombine.high %v593_v57, %v597_v58 }
  0x91   : > { %v1028_v2 = vld [vmem:[%s9875_s17 + $0xea0] sm:$0xff]  ;;  %4583 = vmatpush2.bf16.msra.mxu1 %v8645_v4  ;;  %v589_v4 = vld [vmem:[%s9875_s17 + $0xe8] sm:$0xff] }
  0x92   : > { %v8638_v6 = vcombine.high %v1024_v1, %v1028_v2  ;;  %v888_v7 = vld [vmem:[%s9875_s17 + $0xa40] sm:$0xff]  ;;  %4543 = vmatprep.subr.bf16.mxu0 %v8510_v5  ;;  %v8637_v12 = vcombine.low %v1024_v1, %v1028_v2 }
  0x93   : > { %v892_v8 = vld [vmem:[%s9875_s17 + $0xa60] sm:$0xff]  ;;  %4544 = vmatpush2.bf16.msra.mxu0 %v8509_v11  ;;  %v577_v11 = vld [vmem:[%s9875_s17 + $0x88] sm:$0xff] }
  0x94   : > { %v1016_v9 = vld [vmem:[%s9875_s17 + $0xe40] sm:$0xff]  ;;  %v8502_v13 = vcombine.high %v888_v7, %v892_v8  ;;  %4584 = vmatprep.subr.bf16.mxu1 %v8638_v6  ;;  %v8501_v22 = vcombine.low %v888_v7, %v892_v8  ;;  %v8207_v6 = vcombine.low %v593_v57, %v597_v58  ;;  %v8200_v8 = vcombine.high %v585_v3, %v589_v4 }
  0x95   : > { %v1020_v10 = vld [vmem:[%s9875_s17 + $0xe60] sm:$0xff]  ;;  %4585 = vmatpush2.bf16.msra.mxu1 %v8637_v12  ;;  %v581_v12 = vld [vmem:[%s9875_s17 + $0xa8] sm:$0xff] }
  0x96   : > { %v8630_v14 = vcombine.high %v1016_v9, %v1020_v10  ;;  %v880_v15 = vld [vmem:[%s9875_s17 + $0xa00] sm:$0xff]  ;;  %4545 = vmatprep.subr.bf16.mxu0 %v8502_v13  ;;  %v8629_v24 = vcombine.low %v1016_v9, %v1020_v10 }
  0x97   : > { %v884_v16 = vld [vmem:[%s9875_s17 + $0xa20] sm:$0xff]  ;;  %4546 = vmatpush2.bf16.msra.mxu0 %v8501_v22  ;;  %v569_v22 = vld [vmem:[%s9875_s17 + $0x48] sm:$0xff] }
  0x98   : > { %v1008_v18 = vld [vmem:[%s9875_s17 + $0xe00] sm:$0xff]  ;;  %v8494_v25 = vcombine.high %v880_v15, %v884_v16  ;;  %4586 = vmatprep.subr.bf16.mxu1 %v8630_v14  ;;  %v8493_v31 = vcombine.low %v880_v15, %v884_v16  ;;  %v8199_v14 = vcombine.low %v585_v3, %v589_v4  ;;  %v8192_v16 = vcombine.high %v577_v11, %v581_v12 }
  0x99   : > { %v1012_v19 = vld [vmem:[%s9875_s17 + $0xe20] sm:$0xff]  ;;  %4587 = vmatpush2.bf16.msra.mxu1 %v8629_v24  ;;  %v573_v24 = vld [vmem:[%s9875_s17 + $0x68] sm:$0xff] }
  0x9a   : > { %v8622_v54 = vcombine.high %v1008_v18, %v1012_v19  ;;  %v1128_v26 = vld [vmem:[%s9875_s17 + $0x11c0] sm:$0xff]  ;;  %4547 = vmatprep.subr.bf16.mxu0 %v8494_v25  ;;  %v8621_v32 = vcombine.low %v1008_v18, %v1012_v19 }
  0x9b   : > { %v1132_v27 = vld [vmem:[%s9875_s17 + $0x11e0] sm:$0xff]  ;;  %4548 = vmatpush2.bf16.msra.mxu0 %v8493_v31  ;;  %v561_v31 = vld [vmem:[%s9875_s17 + $0x8] sm:$0xff] }
  0x9c   : > { %v8742_v33 = vcombine.high %v1128_v26, %v1132_v27  ;;  %4588 = vmatprep.subr.bf16.mxu1 %v8622_v54  ;;  %v1120_v35 = vld [vmem:[%s9875_s17 + $0x1180] sm:$0xff]  ;;  %v8741_v42 = vcombine.low %v1128_v26, %v1132_v27  ;;  %v8191_v54 = vcombine.low %v577_v11, %v581_v12  ;;  %v8184_v27 = vcombine.high %v569_v22, %v573_v24 }
  0x9d   : > { %v1124_v36 = vld [vmem:[%s9875_s17 + $0x11a0] sm:$0xff]  ;;  %4589 = vmatpush2.bf16.msra.mxu1 %v8621_v32  ;;  %v565_v32 = vld [vmem:[%s9875_s17 + $0x28] sm:$0xff] }
  0x9e   : > { %v10061_v40 = vld [vmem:[%s9870_s28 + $0x20] sm:$0xff]  ;;  %4599 = vmatprep.subr.bf16.mxu0 %v8742_v33  ;;  %v8734_v44 = vcombine.high %v1120_v35, %v1124_v36  ;;  %4640 = vmatprep.subr.bf16.mxu1 %v8232_v34  ;;  %v8733_v49 = vcombine.low %v1120_v35, %v1124_v36  ;;  %v8183_v34 = vcombine.low %v569_v22, %v573_v24 }
  0x9f   : > { %v1112_v20 = vld [vmem:[%s9875_s17 + $0x1140] sm:$0xff]  ;;  %v10071_v47 = vcombine.high %v10061_v40, %v10061_v40  ;;  %4550 = vmatmul.mubr.bf16.vlgmr.msra.gmra.mxu0 %v10056_v37  ;;  %v8176_v36 = vcombine.high %v561_v31, %v565_v32 }
  0xa0   : > { %v1116_v46 = vld [vmem:[%s9875_s17 + $0x1160] sm:$0xff]  ;;  %4591 = vmatmul.mubr.bf16.vlgmr.msra.gmra.mxu1 %v10065_v41  ;;  %4600 = vmatpush1.bf16.msra.mxu0 %v8741_v42  ;;  %v681_v42 = vld [vmem:[%s9875_s17 + $0x3c8] sm:$0xff] }
  0xa1   : > { %4641 = vmatpush1.bf16.msra.mxu1 %v8231_v43  ;;  %4601 = vmatprep.subr.bf16.mxu0 %v8734_v44  ;;  %v8726_v51 = vcombine.high %v1112_v20, %v1116_v46  ;;  %v1104_v53 = vld [vmem:[%s9875_s17 + $0x1100] sm:$0xff]  ;;  %v8725_v61 = vcombine.low %v1112_v20, %v1116_v46  ;;  %v685_v43 = vld [vmem:[%s9875_s17 + $0x3e8] sm:$0xff] }
  0xa2   : > { %4642 = vmatprep.subr.bf16.mxu1 %v8224_v45  ;;  %v1108_v56 = vld [vmem:[%s9875_s17 + $0x1120] sm:$0xff]  ;;  %4631 = vmatprep.mubr.bf16.mxu0 %v10071_v47  ;;  %v8175_v45 = vcombine.low %v561_v31, %v565_v32  ;;  %v8296_v46 = vcombine.high %v681_v42, %v685_v43 }
  0xa3   : > { %4672 = vmatprep.mubr.bf16.mxu1 %v9916_v59  ;;  %v8718_v63 = vcombine.high %v1104_v53, %v1108_v56  ;;  %v1096_v1 = vld [vmem:[%s9875_s17 + $0x10c0] sm:$0xff]  ;;  %v8717_v5 = vcombine.low %v1104_v53, %v1108_v56 }
  0xa4   : > { %4602 = vmatpush1.bf16.msra.mxu0 %v8733_v49  ;;  %v1100_v2 = vld [vmem:[%s9875_s17 + $0x10e0] sm:$0xff]  ;;  %v673_v49 = vld [vmem:[%s9875_s17 + $0x388] sm:$0xff] }
  0xa5   : > { %4643 = vmatpush1.bf16.msra.mxu1 %v8223_v50  ;;  %4603 = vmatprep.subr.bf16.mxu0 %v8726_v51  ;;  %v8710_v7 = vcombine.high %v1096_v1, %v1100_v2  ;;  %v1088_v9 = vld [vmem:[%s9875_s17 + $0x1080] sm:$0xff]  ;;  %v8709_v13 = vcombine.low %v1096_v1, %v1100_v2  ;;  %v677_v50 = vld [vmem:[%s9875_s17 + $0x3a8] sm:$0xff] }
  0xa6   : > { %4644 = vmatprep.subr.bf16.mxu1 %v8216_v52  ;;  %v1092_v10 = vld [vmem:[%s9875_s17 + $0x10a0] sm:$0xff]  ;;  %v8295_v52 = vcombine.low %v681_v42, %v685_v43  ;;  %v8288_v56 = vcombine.high %v673_v49, %v677_v50 }
  0xa7   : > { %v8702_v15 = vcombine.high %v1088_v9, %v1092_v10  ;;  %v1080_v18 = vld [vmem:[%s9875_s17 + $0x1040] sm:$0xff]  ;;  %v8701_v25 = vcombine.low %v1088_v9, %v1092_v10 }
  0xa8   : > { %4604 = vmatpush1.bf16.msra.mxu0 %v8725_v61  ;;  %v1084_v19 = vld [vmem:[%s9875_s17 + $0x1060] sm:$0xff]  ;;  %v665_v61 = vld [vmem:[%s9875_s17 + $0x348] sm:$0xff] }
  0xa9   : > { %4645 = vmatpush1.bf16.msra.mxu1 %v8215_v62  ;;  %4605 = vmatprep.subr.bf16.mxu0 %v8718_v63  ;;  %v8694_v26 = vcombine.high %v1080_v18, %v1084_v19  ;;  %v1072_v55 = vld [vmem:[%s9875_s17 + $0x1000] sm:$0xff]  ;;  %v8693_v33 = vcombine.low %v1080_v18, %v1084_v19  ;;  %v669_v62 = vld [vmem:[%s9875_s17 + $0x368] sm:$0xff] }
  0xaa   : > { %4646 = vmatprep.subr.bf16.mxu1 %v8208_v0  ;;  %v1076_v29 = vld [vmem:[%s9875_s17 + $0x1020] sm:$0xff]  ;;  %v8287_v0 = vcombine.low %v673_v49, %v677_v50  ;;  %v8280_v2 = vcombine.high %v665_v61, %v669_v62  ;;  %v745_v49 = vld [vmem:[%s9875_s17 + $0x5c8] sm:$0xff] }
  0xab   : > { %v8686_v35 = vcombine.high %v1072_v55, %v1076_v29  ;;  %v1192_v38 = vld [vmem:[%s9875_s17 + $0x13c0] sm:$0xff]  ;;  %v8685_v44 = vcombine.low %v1072_v55, %v1076_v29  ;;  %v749_v50 = vld [vmem:[%s9875_s17 + $0x5e8] sm:$0xff] }
  0xac   : > { %4606 = vmatpush1.bf16.msra.mxu0 %v8717_v5  ;;  %v1196_v39 = vld [vmem:[%s9875_s17 + $0x13e0] sm:$0xff]  ;;  %v657_v5 = vld [vmem:[%s9875_s17 + $0x308] sm:$0xff] }
  0xad   : > { %4647 = vmatpush1.bf16.msra.mxu1 %v8207_v6  ;;  %4607 = vmatprep.subr.bf16.mxu0 %v8710_v7  ;;  %v8806_v20 = vcombine.high %v1192_v38, %v1196_v39  ;;  %v1184_v23 = vld [vmem:[%s9875_s17 + $0x1380] sm:$0xff]  ;;  %v8805_v51 = vcombine.low %v1192_v38, %v1196_v39  ;;  %v661_v6 = vld [vmem:[%s9875_s17 + $0x328] sm:$0xff] }
  0xae   : > { %4648 = vmatprep.subr.bf16.mxu1 %v8200_v8  ;;  %v1188_v48 = vld [vmem:[%s9875_s17 + $0x13a0] sm:$0xff]  ;;  %v8279_v8 = vcombine.low %v665_v61, %v669_v62  ;;  %v8272_v10 = vcombine.high %v657_v5, %v661_v6  ;;  %v737_v61 = vld [vmem:[%s9875_s17 + $0x588] sm:$0xff] }
  0xaf   : > { %v8798_v53 = vcombine.high %v1184_v23, %v1188_v48  ;;  %v1176_v57 = vld [vmem:[%s9875_s17 + $0x1340] sm:$0xff]  ;;  %v8797_v63 = vcombine.low %v1184_v23, %v1188_v48  ;;  %v741_v62 = vld [vmem:[%s9875_s17 + $0x5a8] sm:$0xff] }
  0xb0   : > { %4608 = vmatpush1.bf16.msra.mxu0 %v8709_v13  ;;  %v1180_v58 = vld [vmem:[%s9875_s17 + $0x1360] sm:$0xff]  ;;  %v649_v13 = vld [vmem:[%s9875_s17 + $0x2c8] sm:$0xff] }
  0xb1   : > { %4649 = vmatpush1.bf16.msra.mxu1 %v8199_v14  ;;  %4609 = vmatprep.subr.bf16.mxu0 %v8702_v15  ;;  %v8790_v1 = vcombine.high %v1176_v57, %v1180_v58  ;;  %v1168_v3 = vld [vmem:[%s9875_s17 + $0x1300] sm:$0xff]  ;;  %v8789_v7 = vcombine.low %v1176_v57, %v1180_v58  ;;  %v653_v14 = vld [vmem:[%s9875_s17 + $0x2e8] sm:$0xff]  ;;  %v8360_v57 = vcombine.high %v745_v49, %v749_v50 }
  0xb2   : > { %4650 = vmatprep.subr.bf16.mxu1 %v8192_v16  ;;  %v1172_v4 = vld [vmem:[%s9875_s17 + $0x1320] sm:$0xff]  ;;  %v8271_v16 = vcombine.low %v657_v5, %v661_v6  ;;  %v8264_v19 = vcombine.high %v649_v13, %v653_v14  ;;  %v729_v6 = vld [vmem:[%s9875_s17 + $0x548] sm:$0xff] }
  0xb3   : > { %v8782_v9 = vcombine.high %v1168_v3, %v1172_v4  ;;  %v1160_v11 = vld [vmem:[%s9875_s17 + $0x12c0] sm:$0xff]  ;;  %v8781_v15 = vcombine.low %v1168_v3, %v1172_v4  ;;  %v8352_v4 = vcombine.high %v737_v61, %v741_v62 }
  0xb4   : > { %4610 = vmatpush1.bf16.msra.mxu0 %v8701_v25  ;;  %v1164_v12 = vld [vmem:[%s9875_s17 + $0x12e0] sm:$0xff]  ;;  %v641_v25 = vld [vmem:[%s9875_s17 + $0x288] sm:$0xff] }
  0xb5   : > { %4651 = vmatpush1.bf16.msra.mxu1 %v8191_v54  ;;  %4611 = vmatprep.subr.bf16.mxu0 %v8694_v26  ;;  %v8774_v18 = vcombine.high %v1160_v11, %v1164_v12  ;;  %v1152_v22 = vld [vmem:[%s9875_s17 + $0x1280] sm:$0xff]  ;;  %v645_v54 = vld [vmem:[%s9875_s17 + $0x2a8] sm:$0xff]  ;;  %v8773_v26 = vcombine.low %v1160_v11, %v1164_v12 }
  0xb6   : > { %4652 = vmatprep.subr.bf16.mxu1 %v8184_v27  ;;  %v1156_v24 = vld [vmem:[%s9875_s17 + $0x12a0] sm:$0xff]  ;;  %v8263_v27 = vcombine.low %v649_v13, %v653_v14  ;;  %v8256_v29 = vcombine.high %v641_v25, %v645_v54  ;;  %v721_v13 = vld [vmem:[%s9875_s17 + $0x508] sm:$0xff] }
  0xb7   : > { %v8766_v55 = vcombine.high %v1152_v22, %v1156_v24  ;;  %v1144_v31 = vld [vmem:[%s9875_s17 + $0x1240] sm:$0xff]  ;;  %v725_v14 = vld [vmem:[%s9875_s17 + $0x528] sm:$0xff] }
  0xb8   : > { %4612 = vmatpush1.bf16.msra.mxu0 %v8693_v33  ;;  %v1148_v32 = vld [vmem:[%s9875_s17 + $0x1260] sm:$0xff]  ;;  %v633_v33 = vld [vmem:[%s9875_s17 + $0x248] sm:$0xff] }
  0xb9   : > { %4653 = vmatpush1.bf16.msra.mxu1 %v8183_v34  ;;  %4613 = vmatprep.subr.bf16.mxu0 %v8686_v35  ;;  %v637_v34 = vld [vmem:[%s9875_s17 + $0x268] sm:$0xff]  ;;  %v8765_v35 = vcombine.low %v1152_v22, %v1156_v24  ;;  %v8758_v38 = vcombine.high %v1144_v31, %v1148_v32  ;;  %v1136_v42 = vld [vmem:[%s9875_s17 + $0x1200] sm:$0xff]  ;;  %v8336_v22 = vcombine.high %v721_v13, %v725_v14 }
  0xba   : > { %4654 = vmatprep.subr.bf16.mxu1 %v8176_v36  ;;  %v8255_v36 = vcombine.low %v641_v25, %v645_v54  ;;  %v8248_v39 = vcombine.high %v633_v33, %v637_v34  ;;  %v1140_v43 = vld [vmem:[%s9875_s17 + $0x1220] sm:$0xff]  ;;  %v713_v25 = vld [vmem:[%s9875_s17 + $0x4c8] sm:$0xff] }
  0xbb   : > { %v8750_v23 = vcombine.high %v1136_v42, %v1140_v43  ;;  %v717_v54 = vld [vmem:[%s9875_s17 + $0x4e8] sm:$0xff] }
  0xbc   : > { %4614 = vmatpush1.bf16.msra.mxu0 %v8685_v44  ;;  %v625_v44 = vld [vmem:[%s9875_s17 + $0x208] sm:$0xff] }
  0xbd   : > { %4655 = vmatpush1.bf16.msra.mxu1 %v8175_v45  ;;  %4615 = vmatprep.subr.bf16.mxu0 %v8806_v20  ;;  %v629_v45 = vld [vmem:[%s9875_s17 + $0x228] sm:$0xff]  ;;  %v8757_v20 = vcombine.low %v1144_v31, %v1148_v32  ;;  %v8328_v31 = vcombine.high %v713_v25, %v717_v54 }
  0xbe   : > { %4656 = vmatprep.subr.bf16.mxu1 %v8296_v46  ;;  %v8247_v46 = vcombine.low %v633_v33, %v637_v34  ;;  %v8240_v48 = vcombine.high %v625_v44, %v629_v45  ;;  %v705_v33 = vld [vmem:[%s9875_s17 + $0x488] sm:$0xff] }
  0xbf   : > { %v709_v34 = vld [vmem:[%s9875_s17 + $0x4a8] sm:$0xff] }
  0xc0   : > { %4616 = vmatpush2.bf16.msra.mxu0 %v8805_v51  ;;  %v873_v51 = vld [vmem:[%s9875_s17 + $0x9c8] sm:$0xff] }
  0xc1   : > { %4657 = vmatpush2.bf16.msra.mxu1 %v8295_v52  ;;  %4617 = vmatprep.subr.bf16.mxu0 %v8798_v53  ;;  %v877_v52 = vld [vmem:[%s9875_s17 + $0x9e8] sm:$0xff]  ;;  %v8749_v53 = vcombine.low %v1136_v42, %v1140_v43  ;;  %v8320_v42 = vcombine.high %v705_v33, %v709_v34 }
  0xc2   : > { %4658 = vmatprep.subr.bf16.mxu1 %v8288_v56  ;;  %v8239_v56 = vcombine.low %v625_v44, %v629_v45  ;;  %v8488_v58 = vcombine.high %v873_v51, %v877_v52  ;;  %v8487_v3 = vcombine.low %v873_v51, %v877_v52  ;;  %v697_v44 = vld [vmem:[%s9875_s17 + $0x448] sm:$0xff] }
  0xc3   : > { %v701_v45 = vld [vmem:[%s9875_s17 + $0x468] sm:$0xff] }
  0xc4   : > { %4618 = vmatpush2.bf16.msra.mxu0 %v8797_v63  ;;  %v10139_v63 = vcombine.low %v10061_v40, %v10061_v40  ;;  %v857_v40 = vld [vmem:[%s9875_s17 + $0x948] sm:$0xff] }
  0xc5   : > { %4659 = vmatpush2.bf16.msra.mxu1 %v8287_v0  ;;  %4619 = vmatprep.subr.bf16.mxu0 %v8790_v1  ;;  %v865_v0 = vld [vmem:[%s9875_s17 + $0x988] sm:$0xff] }
  0xc6   : > { %4660 = vmatprep.subr.bf16.mxu1 %v8280_v2  ;;  %v869_v1 = vld [vmem:[%s9875_s17 + $0x9a8] sm:$0xff]  ;;  %v8359_v2 = vcombine.low %v745_v49, %v749_v50  ;;  %v8312_v49 = vcombine.high %v697_v44, %v701_v45 }
  0xc7   : > { %v8480_v5 = vcombine.high %v865_v0, %v869_v1  ;;  %v689_v51 = vld [vmem:[%s9875_s17 + $0x408] sm:$0xff] }
  0xc8   : > { %4620 = vmatpush2.bf16.msra.mxu0 %v8789_v7  ;;  %v733_v7 = vld [vmem:[%s9875_s17 + $0x568] sm:$0xff] }
  0xc9   : > { %4661 = vmatpush2.bf16.msra.mxu1 %v8279_v8  ;;  %4621 = vmatprep.subr.bf16.mxu0 %v8782_v9  ;;  %v861_v8 = vld [vmem:[%s9875_s17 + $0x968] sm:$0xff]  ;;  %v8351_v9 = vcombine.low %v737_v61, %v741_v62  ;;  %v8344_v11 = vcombine.high %v729_v6, %v733_v7 }
  0xca   : > { %4662 = vmatprep.subr.bf16.mxu1 %v8272_v10  ;;  %v8479_v10 = vcombine.low %v865_v0, %v869_v1  ;;  %v8472_v12 = vcombine.high %v857_v40, %v861_v8  ;;  %v693_v52 = vld [vmem:[%s9875_s17 + $0x428] sm:$0xff] }
  0xcb   : > { %v8304_v61 = vcombine.high %v689_v51, %v693_v52  ;;  %v809_v0 = vld [vmem:[%s9875_s17 + $0x7c8] sm:$0xff] }
  0xcc   : > { %4622 = vmatpush2.bf16.msra.mxu0 %v8781_v15  ;;  %v849_v15 = vld [vmem:[%s9875_s17 + $0x908] sm:$0xff] }
  0xcd   : > { %4663 = vmatpush2.bf16.msra.mxu1 %v8271_v16  ;;  %4623 = vmatprep.subr.bf16.mxu0 %v8774_v18  ;;  %v853_v16 = vld [vmem:[%s9875_s17 + $0x928] sm:$0xff]  ;;  %v8343_v18 = vcombine.low %v729_v6, %v733_v7 }
  0xce   : > { %4664 = vmatprep.subr.bf16.mxu1 %v8264_v19  ;;  %v8471_v19 = vcombine.low %v857_v40, %v861_v8  ;;  %v8464_v24 = vcombine.high %v849_v15, %v853_v16  ;;  %v813_v1 = vld [vmem:[%s9875_s17 + $0x7e8] sm:$0xff] }
  0xcf   : > { %v8424_v6 = vcombine.high %v809_v0, %v813_v1  ;;  %v801_v40 = vld [vmem:[%s9875_s17 + $0x788] sm:$0xff] }
  0xd0   : > { %4624 = vmatpush2.bf16.msra.mxu0 %v8773_v26  ;;  %v841_v26 = vld [vmem:[%s9875_s17 + $0x8c8] sm:$0xff] }
  0xd1   : > { %4665 = vmatpush2.bf16.msra.mxu1 %v8263_v27  ;;  %4625 = vmatprep.subr.bf16.mxu0 %v8766_v55  ;;  %v845_v27 = vld [vmem:[%s9875_s17 + $0x8e8] sm:$0xff]  ;;  %v8335_v55 = vcombine.low %v721_v13, %v725_v14 }
  0xd2   : > { %4666 = vmatprep.subr.bf16.mxu1 %v8256_v29  ;;  %v8463_v29 = vcombine.low %v849_v15, %v853_v16  ;;  %v8456_v32 = vcombine.high %v841_v26, %v845_v27  ;;  %v805_v8 = vld [vmem:[%s9875_s17 + $0x7a8] sm:$0xff] }
  0xd3   : > { %v8416_v13 = vcombine.high %v801_v40, %v805_v8  ;;  %v793_v15 = vld [vmem:[%s9875_s17 + $0x748] sm:$0xff] }
  0xd4   : > { %4626 = vmatpush2.bf16.msra.mxu0 %v8765_v35  ;;  %v833_v35 = vld [vmem:[%s9875_s17 + $0x888] sm:$0xff] }
  0xd5   : > { %4667 = vmatpush2.bf16.msra.mxu1 %v8255_v36  ;;  %4627 = vmatprep.subr.bf16.mxu0 %v8758_v38  ;;  %v837_v36 = vld [vmem:[%s9875_s17 + $0x8a8] sm:$0xff]  ;;  %v8327_v38 = vcombine.low %v713_v25, %v717_v54 }
  0xd6   : > { %4668 = vmatprep.subr.bf16.mxu1 %v8248_v39  ;;  %v8455_v39 = vcombine.low %v841_v26, %v845_v27  ;;  %v8448_v43 = vcombine.high %v833_v35, %v837_v36  ;;  %v797_v16 = vld [vmem:[%s9875_s17 + $0x768] sm:$0xff] }
  0xd7   : > { %v8408_v25 = vcombine.high %v793_v15, %v797_v16  ;;  %v785_v26 = vld [vmem:[%s9875_s17 + $0x708] sm:$0xff] }
  0xd8   : > { %4628 = vmatpush2.bf16.msra.mxu0 %v8757_v20  ;;  %v825_v20 = vld [vmem:[%s9875_s17 + $0x848] sm:$0xff] }
  0xd9   : > { %4669 = vmatpush2.bf16.msra.mxu1 %v8247_v46  ;;  %4629 = vmatprep.subr.bf16.mxu0 %v8750_v23  ;;  %v829_v46 = vld [vmem:[%s9875_s17 + $0x868] sm:$0xff]  ;;  %v8319_v23 = vcombine.low %v705_v33, %v709_v34 }
  0xda   : > { %4670 = vmatprep.subr.bf16.mxu1 %v8240_v48  ;;  %v8447_v48 = vcombine.low %v833_v35, %v837_v36  ;;  %v8440_v50 = vcombine.high %v825_v20, %v829_v46  ;;  %v789_v27 = vld [vmem:[%s9875_s17 + $0x728] sm:$0xff] }
  0xdb   : > { %v8400_v33 = vcombine.high %v785_v26, %v789_v27  ;;  %v777_v35 = vld [vmem:[%s9875_s17 + $0x6c8] sm:$0xff] }
  0xdc   : > { %4630 = vmatpush2.bf16.msra.mxu0 %v8749_v53  ;;  %v817_v53 = vld [vmem:[%s9875_s17 + $0x808] sm:$0xff] }
  0xdd   : > { %4671 = vmatpush2.bf16.msra.mxu1 %v8239_v56  ;;  %4681 = vmatprep.subr.bf16.mxu0 %v8360_v57  ;;  %v821_v56 = vld [vmem:[%s9875_s17 + $0x828] sm:$0xff]  ;;  %v8311_v57 = vcombine.low %v697_v44, %v701_v45 }
  0xde   : > { %4722 = vmatprep.subr.bf16.mxu1 %v8488_v58  ;;  %v8439_v58 = vcombine.low %v825_v20, %v829_v46  ;;  %v8432_v62 = vcombine.high %v817_v53, %v821_v56  ;;  %v781_v36 = vld [vmem:[%s9875_s17 + $0x6e8] sm:$0xff] }
  0xdf   : > { %4632 = vmatmul.mubr.bf16.vlgmr.msra.gmra.mxu0 %v10139_v63  ;;  %v8392_v44 = vcombine.high %v777_v35, %v781_v36  ;;  %v769_v20 = vld [vmem:[%s9875_s17 + $0x688] sm:$0xff] }
  0xe0   : > { %4673 = vmatmul.mubr.bf16.vlgmr.msra.gmra.mxu1 %v9966_v17  ;;  %4682 = vmatpush1.bf16.msra.mxu0 %v8359_v2  ;;  %v937_v2 = vld [vmem:[%s9875_s17 + $0xbc8] sm:$0xff] }
  0xe1   : > { %4723 = vmatpush1.bf16.msra.mxu1 %v8487_v3  ;;  %4683 = vmatprep.subr.bf16.mxu0 %v8352_v4  ;;  %v941_v3 = vld [vmem:[%s9875_s17 + $0xbe8] sm:$0xff]  ;;  %v8303_v4 = vcombine.low %v689_v51, %v693_v52 }
  0xe2   : > { %4724 = vmatprep.subr.bf16.mxu1 %v8480_v5  ;;  %4713 = vmatprep.mubr.bf16.mxu0 %v9920_v60  ;;  %v8431_v5 = vcombine.low %v817_v53, %v821_v56  ;;  %v8552_v7 = vcombine.high %v937_v2, %v941_v3  ;;  %v773_v46 = vld [vmem:[%s9875_s17 + $0x6a8] sm:$0xff] }
  0xe3   : > { %4754 = vmatprep.mubr.bf16.mxu1 %v9984_v28  ;;  %v8384_v51 = vcombine.high %v769_v20, %v773_v46  ;;  %v761_v53 = vld [vmem:[%s9875_s17 + $0x648] sm:$0xff] }
  0xe4   : > { %4684 = vmatpush1.bf16.msra.mxu0 %v8351_v9  ;;  %v929_v9 = vld [vmem:[%s9875_s17 + $0xb88] sm:$0xff] }
  0xe5   : > { %4725 = vmatpush1.bf16.msra.mxu1 %v8479_v10  ;;  %4685 = vmatprep.subr.bf16.mxu0 %v8344_v11  ;;  %v933_v10 = vld [vmem:[%s9875_s17 + $0xba8] sm:$0xff]  ;;  %v8423_v11 = vcombine.low %v809_v0, %v813_v1 }
  0xe6   : > { %4726 = vmatprep.subr.bf16.mxu1 %v8472_v12  ;;  %v8551_v12 = vcombine.low %v937_v2, %v941_v3  ;;  %v8544_v14 = vcombine.high %v929_v9, %v933_v10  ;;  %v765_v56 = vld [vmem:[%s9875_s17 + $0x668] sm:$0xff] }
  0xe7   : > { %v8376_v0 = vcombine.high %v761_v53, %v765_v56  ;;  %v753_v2 = vld [vmem:[%s9875_s17 + $0x608] sm:$0xff] }
  0xe8   : > { %4686 = vmatpush1.bf16.msra.mxu0 %v8343_v18  ;;  %v921_v18 = vld [vmem:[%s9875_s17 + $0xb48] sm:$0xff] }
  0xe9   : > { %4727 = vmatpush1.bf16.msra.mxu1 %v8471_v19  ;;  %4687 = vmatprep.subr.bf16.mxu0 %v8336_v22  ;;  %v925_v19 = vld [vmem:[%s9875_s17 + $0xb68] sm:$0xff]  ;;  %v8415_v22 = vcombine.low %v801_v40, %v805_v8 }
  0xea   : > { %4728 = vmatprep.subr.bf16.mxu1 %v8464_v24  ;;  %v8543_v24 = vcombine.low %v929_v9, %v933_v10  ;;  %v8536_v54 = vcombine.high %v921_v18, %v925_v19  ;;  %v757_v3 = vld [vmem:[%s9875_s17 + $0x628] sm:$0xff] }
  0xeb   : > { %v8368_v40 = vcombine.high %v753_v2, %v757_v3  ;;  %v1001_v9 = vld [vmem:[%s9875_s17 + $0xdc8] sm:$0xff] }
  0xec   : > { %4688 = vmatpush1.bf16.msra.mxu0 %v8335_v55  ;;  %v913_v55 = vld [vmem:[%s9875_s17 + $0xb08] sm:$0xff] }
  0xed   : > { %4729 = vmatpush1.bf16.msra.mxu1 %v8463_v29  ;;  %4689 = vmatprep.subr.bf16.mxu0 %v8328_v31  ;;  %v917_v29 = vld [vmem:[%s9875_s17 + $0xb28] sm:$0xff]  ;;  %v8407_v31 = vcombine.low %v793_v15, %v797_v16 }
  0xee   : > { %4730 = vmatprep.subr.bf16.mxu1 %v8456_v32  ;;  %v8535_v32 = vcombine.low %v921_v18, %v925_v19  ;;  %v8528_v34 = vcombine.high %v913_v55, %v917_v29  ;;  %v1005_v10 = vld [vmem:[%s9875_s17 + $0xde8] sm:$0xff] }
  0xef   : > { %v8616_v15 = vcombine.high %v1001_v9, %v1005_v10  ;;  %v993_v18 = vld [vmem:[%s9875_s17 + $0xd88] sm:$0xff] }
  0xf0   : > { %4690 = vmatpush1.bf16.msra.mxu0 %v8327_v38  ;;  %v905_v38 = vld [vmem:[%s9875_s17 + $0xac8] sm:$0xff] }
  0xf1   : > { %4731 = vmatpush1.bf16.msra.mxu1 %v8455_v39  ;;  %4691 = vmatprep.subr.bf16.mxu0 %v8320_v42  ;;  %v909_v39 = vld [vmem:[%s9875_s17 + $0xae8] sm:$0xff]  ;;  %v8399_v42 = vcombine.low %v785_v26, %v789_v27 }
  0xf2   : > { %4732 = vmatprep.subr.bf16.mxu1 %v8448_v43  ;;  %v8527_v43 = vcombine.low %v913_v55, %v917_v29  ;;  %v8520_v45 = vcombine.high %v905_v38, %v909_v39  ;;  %v997_v19 = vld [vmem:[%s9875_s17 + $0xda8] sm:$0xff] }
  0xf3   : > { %v8608_v26 = vcombine.high %v993_v18, %v997_v19  ;;  %v985_v55 = vld [vmem:[%s9875_s17 + $0xd48] sm:$0xff] }
  0xf4   : > { %4692 = vmatpush1.bf16.msra.mxu0 %v8319_v23  ;;  %v897_v23 = vld [vmem:[%s9875_s17 + $0xa88] sm:$0xff] }
  0xf5   : > { %4733 = vmatpush1.bf16.msra.mxu1 %v8447_v48  ;;  %4693 = vmatprep.subr.bf16.mxu0 %v8312_v49  ;;  %v901_v48 = vld [vmem:[%s9875_s17 + $0xaa8] sm:$0xff]  ;;  %v8391_v49 = vcombine.low %v777_v35, %v781_v36  ;;  %v8607_v35 = vcombine.low %v993_v18, %v997_v19 }
  0xf6   : > { %4734 = vmatprep.subr.bf16.mxu1 %v8440_v50  ;;  %v8519_v50 = vcombine.low %v905_v38, %v909_v39  ;;  %v8512_v52 = vcombine.high %v897_v23, %v901_v48  ;;  %v989_v29 = vld [vmem:[%s9875_s17 + $0xd68] sm:$0xff] }
  0xf8   : > { %4694 = vmatpush1.bf16.msra.mxu0 %v8311_v57  ;;  %v889_v57 = vld [vmem:[%s9875_s17 + $0xa48] sm:$0xff] }
  0xf9   : > { %4735 = vmatpush1.bf16.msra.mxu1 %v8439_v58  ;;  %4695 = vmatprep.subr.bf16.mxu0 %v8304_v61  ;;  %v893_v58 = vld [vmem:[%s9875_s17 + $0xa68] sm:$0xff]  ;;  %v8383_v61 = vcombine.low %v769_v20, %v773_v46 }
  0xfa   : > { %4736 = vmatprep.subr.bf16.mxu1 %v8432_v62  ;;  %v8511_v62 = vcombine.low %v897_v23, %v901_v48  ;;  %v8504_v1 = vcombine.high %v889_v57, %v893_v58  ;;  %v981_v20 = vld [vmem:[%s9875_s17 + $0xd28] sm:$0xff] }
  0xfb   : > { %v1105_v48 = vld [vmem:[%s9875_s17 + $0x1108] sm:$0xff] }
  0xfc   : > { %4696 = vmatpush1.bf16.msra.mxu0 %v8303_v4  ;;  %v881_v4 = vld [vmem:[%s9875_s17 + $0xa08] sm:$0xff] }
  0xfd   : > { %4737 = vmatpush1.bf16.msra.mxu1 %v8431_v5  ;;  %4697 = vmatprep.subr.bf16.mxu0 %v8424_v6  ;;  %v885_v5 = vld [vmem:[%s9875_s17 + $0xa28] sm:$0xff]  ;;  %v8375_v6 = vcombine.low %v761_v53, %v765_v56 }
  0xfe   : > { %4738 = vmatprep.subr.bf16.mxu1 %v8552_v7  ;;  %v8503_v7 = vcombine.low %v889_v57, %v893_v58  ;;  %v8496_v8 = vcombine.high %v881_v4, %v885_v5 }
 0x100   : > { %4698 = vmatpush2.bf16.msra.mxu0 %v8423_v11  ;;  %v1129_v11 = vld [vmem:[%s9875_s17 + $0x11c8] sm:$0xff] }
 0x101   : > { %4739 = vmatpush2.bf16.msra.mxu1 %v8551_v12  ;;  %4699 = vmatprep.subr.bf16.mxu0 %v8416_v13  ;;  %v1133_v12 = vld [vmem:[%s9875_s17 + $0x11e8] sm:$0xff]  ;;  %v8367_v13 = vcombine.low %v753_v2, %v757_v3 }
 0x102   : > { %4740 = vmatprep.subr.bf16.mxu1 %v8544_v14  ;;  %v8495_v14 = vcombine.low %v881_v4, %v885_v5  ;;  %v8744_v16 = vcombine.high %v1129_v11, %v1133_v12 }
 0x104   : > { %4700 = vmatpush2.bf16.msra.mxu0 %v8415_v22  ;;  %v1121_v22 = vld [vmem:[%s9875_s17 + $0x1188] sm:$0xff] }
 0x105   : > { %4741 = vmatpush2.bf16.msra.mxu1 %v8543_v24  ;;  %4701 = vmatprep.subr.bf16.mxu0 %v8408_v25  ;;  %v1125_v24 = vld [vmem:[%s9875_s17 + $0x11a8] sm:$0xff]  ;;  %v8615_v25 = vcombine.low %v1001_v9, %v1005_v10 }
 0x106   : > { %4742 = vmatprep.subr.bf16.mxu1 %v8536_v54  ;;  %v8743_v54 = vcombine.low %v1129_v11, %v1133_v12  ;;  %v8736_v27 = vcombine.high %v1121_v22, %v1125_v24  ;;  %v8735_v39 = vcombine.low %v1121_v22, %v1125_v24 }
 0x108   : > { %4702 = vmatpush2.bf16.msra.mxu0 %v8407_v31 }
 0x109   : > { %4743 = vmatpush2.bf16.msra.mxu1 %v8535_v32  ;;  %4703 = vmatprep.subr.bf16.mxu0 %v8400_v33  ;;  %v1113_v32 = vld [vmem:[%s9875_s17 + $0x1148] sm:$0xff] }
 0x10a   : > { %4744 = vmatprep.subr.bf16.mxu1 %v8528_v34  ;;  %v1117_v33 = vld [vmem:[%s9875_s17 + $0x1168] sm:$0xff] }
 0x10b   : > { %v8727_v53 = vcombine.low %v1113_v32, %v1117_v33 }
 0x10c   : > { %4704 = vmatpush2.bf16.msra.mxu0 %v8399_v42  ;;  %v8600_v42 = vcombine.high %v985_v55, %v989_v29 }
 0x10d   : > { %4745 = vmatpush2.bf16.msra.mxu1 %v8527_v43  ;;  %4705 = vmatprep.subr.bf16.mxu0 %v8392_v44  ;;  %v8728_v44 = vcombine.high %v1113_v32, %v1117_v33  ;;  %v1065_v33 = vld [vmem:[%s9875_s17 + $0xfc8] sm:$0xff] }
 0x10e   : > { %4746 = vmatprep.subr.bf16.mxu1 %v8520_v45  ;;  %v977_v45 = vld [vmem:[%s9875_s17 + $0xd08] sm:$0xff] }
 0x10f   : > { %v8592_v56 = vcombine.high %v977_v45, %v981_v20  ;;  %v8591_v2 = vcombine.low %v977_v45, %v981_v20  ;;  %v1057_v45 = vld [vmem:[%s9875_s17 + $0xf88] sm:$0xff] }
 0x110   : > { %4706 = vmatpush2.bf16.msra.mxu0 %v8391_v49  ;;  %v1109_v49 = vld [vmem:[%s9875_s17 + $0x1128] sm:$0xff] }
 0x111   : > { %4747 = vmatpush2.bf16.msra.mxu1 %v8519_v50  ;;  %4707 = vmatprep.subr.bf16.mxu0 %v8384_v51  ;;  %v8599_v51 = vcombine.low %v985_v55, %v989_v29  ;;  %v8720_v58 = vcombine.high %v1105_v48, %v1109_v49  ;;  %v8719_v3 = vcombine.low %v1105_v48, %v1109_v49  ;;  %v1061_v20 = vld [vmem:[%s9875_s17 + $0xfa8] sm:$0xff] }
 0x112   : > { %4748 = vmatprep.subr.bf16.mxu1 %v8512_v52  ;;  %v1189_v48 = vld [vmem:[%s9875_s17 + $0x13a8] sm:$0xff] }
 0x114   : > { %4708 = vmatpush2.bf16.msra.mxu0 %v8383_v61  ;;  %v969_v61 = vld [vmem:[%s9875_s17 + $0xcc8] sm:$0xff] }
 0x115   : > { %4749 = vmatpush2.bf16.msra.mxu1 %v8511_v62  ;;  %4709 = vmatprep.subr.bf16.mxu0 %v8376_v0  ;;  %v973_v62 = vld [vmem:[%s9875_s17 + $0xce8] sm:$0xff] }
 0x116   : > { %4750 = vmatprep.subr.bf16.mxu1 %v8504_v1  ;;  %v1097_v0 = vld [vmem:[%s9875_s17 + $0x10c8] sm:$0xff]  ;;  %v8584_v4 = vcombine.high %v969_v61, %v973_v62  ;;  %v8583_v9 = vcombine.low %v969_v61, %v973_v62  ;;  %v8671_v61 = vcombine.low %v1057_v45, %v1061_v20 }
 0x117   : > { %v1101_v1 = vld [vmem:[%s9875_s17 + $0x10e8] sm:$0xff] }
 0x118   : > { %4710 = vmatpush2.bf16.msra.mxu0 %v8375_v6  ;;  %v8712_v5 = vcombine.high %v1097_v0, %v1101_v1  ;;  %v961_v6 = vld [vmem:[%s9875_s17 + $0xc88] sm:$0xff]  ;;  %v8711_v10 = vcombine.low %v1097_v0, %v1101_v1 }
 0x119   : > { %4751 = vmatpush2.bf16.msra.mxu1 %v8503_v7  ;;  %4711 = vmatprep.subr.bf16.mxu0 %v8368_v40  ;;  %v965_v7 = vld [vmem:[%s9875_s17 + $0xca8] sm:$0xff] }
 0x11a   : > { %4752 = vmatprep.subr.bf16.mxu1 %v8496_v8  ;;  %v1089_v40 = vld [vmem:[%s9875_s17 + $0x1088] sm:$0xff]  ;;  %v8576_v11 = vcombine.high %v961_v6, %v965_v7  ;;  %v8575_v18 = vcombine.low %v961_v6, %v965_v7 }
 0x11b   : > { %v1093_v8 = vld [vmem:[%s9875_s17 + $0x10a8] sm:$0xff] }
 0x11c   : > { %4712 = vmatpush2.bf16.msra.mxu0 %v8367_v13  ;;  %v8704_v12 = vcombine.high %v1089_v40, %v1093_v8  ;;  %v953_v13 = vld [vmem:[%s9875_s17 + $0xc48] sm:$0xff]  ;;  %v8703_v19 = vcombine.low %v1089_v40, %v1093_v8 }
 0x11d   : > { %4753 = vmatpush2.bf16.msra.mxu1 %v8495_v14  ;;  %4763 = vmatprep.subr.bf16.mxu0 %v8616_v15  ;;  %v957_v14 = vld [vmem:[%s9875_s17 + $0xc68] sm:$0xff] }
 0x11e   : > { %4804 = vmatprep.subr.bf16.mxu1 %v8744_v16  ;;  %v4469_v31 = vpop.f32.mrf.mxu0  ;;  %v1081_v15 = vld [vmem:[%s9875_s17 + $0x1048] sm:$0xff]  ;;  %v8568_v22 = vcombine.high %v953_v13, %v957_v14  ;;  %v8567_v55 = vcombine.low %v953_v13, %v957_v14 }
 0x11f   : > { %4714 = vmatmul.mubr.bf16.vlgmr.msra.gmra.mxu0 %v9975_v21  ;;  %v1085_v16 = vld [vmem:[%s9875_s17 + $0x1068] sm:$0xff] }
 0x120   : > { %v4510_v34 = vpop.f32.mrf.mxu1  ;;  %4755 = vmatmul.mubr.bf16.vlgmr.msra.gmra.mxu1 %v10056_v37  ;;  %4764 = vmatpush1.bf16.msra.mxu0 %v8615_v25  ;;  %v4471_v38 = vpop.f32.mrf.mxu0  ;;  %v8696_v24 = vcombine.high %v1081_v15, %v1085_v16  ;;  %v945_v25 = vld [vmem:[%s9875_s17 + $0xc08] sm:$0xff]  ;;  %v8695_v29 = vcombine.low %v1081_v15, %v1085_v16 }
 0x121   : > { %v10217_v36 = vadd.f32 %v4510_v34, %v4469_v31  ;;  %4805 = vmatpush1.bf16.msra.mxu1 %v8743_v54  ;;  %4765 = vmatprep.subr.bf16.mxu0 %v8608_v26  ;;  %v949_v54 = vld [vmem:[%s9875_s17 + $0xc28] sm:$0xff] }
 0x122   : > { %v4512_v43 = vpop.f32.mrf.mxu1  ;;  %4806 = vmatprep.subr.bf16.mxu1 %v8736_v27  ;;  %4795 = vmatprep.mubr.bf16.mxu0 %v9991_v30  ;;  %v4473_v23 = vpop.f32.mrf.mxu0  ;;  %v1073_v26 = vld [vmem:[%s9875_s17 + $0x1008] sm:$0xff]  ;;  %v8560_v31 = vcombine.high %v945_v25, %v949_v54 }
 0x123   : > { %v10222_v46 = vadd.f32 %v4512_v43, %v4471_v38  ;;  %4836 = vmatprep.mubr.bf16.mxu1 %v10071_v47  ;;  %v1077_v27 = vld [vmem:[%s9875_s17 + $0x1028] sm:$0xff] }
 0x124   : > { %v4514_v50 = vpop.f32.mrf.mxu1  ;;  %4766 = vmatpush1.bf16.msra.mxu0 %v8607_v35  ;;  %v4474_v52 = vpop.f32.mrf.mxu0  ;;  %v8688_v32 = vcombine.high %v1073_v26, %v1077_v27  ;;  %v1069_v34 = vld [vmem:[%s9875_s17 + $0xfe8] sm:$0xff] }
 0x125   : > { %4807 = vmatpush1.bf16.msra.mxu1 %v8735_v39  ;;  %4767 = vmatprep.subr.bf16.mxu0 %v8600_v42  ;;  %v1193_v35 = vld [vmem:[%s9875_s17 + $0x13c8] sm:$0xff]  ;;  %v8559_v39 = vcombine.low %v945_v25, %v949_v54  ;;  %v8687_v42 = vcombine.low %v1073_v26, %v1077_v27  ;;  %v8680_v43 = vcombine.high %v1065_v33, %v1069_v34 }
 0x126   : > { %v4515_v57 = vpop.f32.mrf.mxu1  ;;  %4808 = vmatprep.subr.bf16.mxu1 %v8728_v44  ;;  %v1197_v38 = vld [vmem:[%s9875_s17 + $0x13e8] sm:$0xff]  ;;  %v8679_v49 = vcombine.low %v1065_v33, %v1069_v34 }
 0x127   : > { %v8808_v44 = vcombine.high %v1193_v35, %v1197_v38  ;;  %v1185_v23 = vld [vmem:[%s9875_s17 + $0x1388] sm:$0xff]  ;;  %v8807_v50 = vcombine.low %v1193_v35, %v1197_v38 }
 0x128   : > { %4768 = vmatpush1.bf16.msra.mxu0 %v8599_v51  ;;  %v8672_v51 = vcombine.high %v1057_v45, %v1061_v20  ;;  %v8800_v52 = vcombine.high %v1185_v23, %v1189_v48  ;;  %v1177_v57 = vld [vmem:[%s9875_s17 + $0x1348] sm:$0xff]  ;;  %v8799_v62 = vcombine.low %v1185_v23, %v1189_v48 }
 0x129   : > { %4809 = vmatpush1.bf16.msra.mxu1 %v8727_v53  ;;  %4769 = vmatprep.subr.bf16.mxu0 %v8592_v56  ;;  %v1049_v53 = vld [vmem:[%s9875_s17 + $0xf48] sm:$0xff] }
 0x12a   : > { %4810 = vmatprep.subr.bf16.mxu1 %v8720_v58  ;;  %v1053_v56 = vld [vmem:[%s9875_s17 + $0xf68] sm:$0xff] }
 0x12b   : > { %v1181_v58 = vld [vmem:[%s9875_s17 + $0x1368] sm:$0xff]  ;;  %v8664_v0 = vcombine.high %v1049_v53, %v1053_v56  ;;  %v8663_v6 = vcombine.low %v1049_v53, %v1053_v56 }
 0x12c   : > { %4770 = vmatpush1.bf16.msra.mxu0 %v8591_v2  ;;  %v8792_v1 = vcombine.high %v1177_v57, %v1181_v58  ;;  %v1041_v2 = vld [vmem:[%s9875_s17 + $0xf08] sm:$0xff]  ;;  %v8791_v7 = vcombine.low %v1177_v57, %v1181_v58 }
 0x12d   : > { %4811 = vmatpush1.bf16.msra.mxu1 %v8719_v3  ;;  %4771 = vmatprep.subr.bf16.mxu0 %v8584_v4  ;;  %v1045_v3 = vld [vmem:[%s9875_s17 + $0xf28] sm:$0xff] }
 0x12e   : > { %4812 = vmatprep.subr.bf16.mxu1 %v8712_v5  ;;  %v1169_v4 = vld [vmem:[%s9875_s17 + $0x1308] sm:$0xff]  ;;  %v8656_v40 = vcombine.high %v1041_v2, %v1045_v3  ;;  %v8655_v13 = vcombine.low %v1041_v2, %v1045_v3 }
 0x12f   : > { %v1173_v5 = vld [vmem:[%s9875_s17 + $0x1328] sm:$0xff] }
 0x130   : > { %4772 = vmatpush1.bf16.msra.mxu0 %v8583_v9  ;;  %v8784_v8 = vcombine.high %v1169_v4, %v1173_v5  ;;  %v1033_v9 = vld [vmem:[%s9875_s17 + $0xec8] sm:$0xff]  ;;  %v8783_v14 = vcombine.low %v1169_v4, %v1173_v5 }
 0x131   : > { %4813 = vmatpush1.bf16.msra.mxu1 %v8711_v10  ;;  %4773 = vmatprep.subr.bf16.mxu0 %v8576_v11  ;;  %v1037_v10 = vld [vmem:[%s9875_s17 + $0xee8] sm:$0xff] }
 0x132   : > { %4814 = vmatprep.subr.bf16.mxu1 %v8704_v12  ;;  %v1161_v11 = vld [vmem:[%s9875_s17 + $0x12c8] sm:$0xff]  ;;  %v8648_v15 = vcombine.high %v1033_v9, %v1037_v10  ;;  %v8647_v25 = vcombine.low %v1033_v9, %v1037_v10  ;;  %v734_v9 = vld [vmem:[%s9875_s17 + $0x570] sm:$0xff] }
 0x133   : > { %v1165_v12 = vld [vmem:[%s9875_s17 + $0x12e8] sm:$0xff] }
 0x134   : > { %4774 = vmatpush1.bf16.msra.mxu0 %v8575_v18  ;;  %v8776_v16 = vcombine.high %v1161_v11, %v1165_v12  ;;  %v1025_v18 = vld [vmem:[%s9875_s17 + $0xe88] sm:$0xff]  ;;  %v8775_v54 = vcombine.low %v1161_v11, %v1165_v12 }
 0x135   : > { %4815 = vmatpush1.bf16.msra.mxu1 %v8703_v19  ;;  %4775 = vmatprep.subr.bf16.mxu0 %v8568_v22  ;;  %v1029_v19 = vld [vmem:[%s9875_s17 + $0xea8] sm:$0xff] }
 0x136   : > { %4816 = vmatprep.subr.bf16.mxu1 %v8696_v24  ;;  %v1153_v22 = vld [vmem:[%s9875_s17 + $0x1288] sm:$0xff]  ;;  %v8640_v26 = vcombine.high %v1025_v18, %v1029_v19  ;;  %v8639_v33 = vcombine.low %v1025_v18, %v1029_v19  ;;  %v594_v18 = vld [vmem:[%s9875_s17 + $0x110] sm:$0xff] }
 0x137   : > { %v1157_v24 = vld [vmem:[%s9875_s17 + $0x12a8] sm:$0xff]  ;;  %v598_v19 = vld [vmem:[%s9875_s17 + $0x130] sm:$0xff] }
 0x138   : > { %4776 = vmatpush1.bf16.msra.mxu0 %v8567_v55  ;;  %v8768_v27 = vcombine.high %v1153_v22, %v1157_v24  ;;  %v1017_v55 = vld [vmem:[%s9875_s17 + $0xe48] sm:$0xff]  ;;  %v8767_v34 = vcombine.low %v1153_v22, %v1157_v24  ;;  %v722_v24 = vld [vmem:[%s9875_s17 + $0x510] sm:$0xff] }
 0x139   : > { %4817 = vmatpush1.bf16.msra.mxu1 %v8695_v29  ;;  %4777 = vmatprep.subr.bf16.mxu0 %v8560_v31  ;;  %v1021_v29 = vld [vmem:[%s9875_s17 + $0xe68] sm:$0xff] }
 0x13a   : > { %4818 = vmatprep.subr.bf16.mxu1 %v8688_v32  ;;  %v1145_v31 = vld [vmem:[%s9875_s17 + $0x1248] sm:$0xff]  ;;  %v8632_v35 = vcombine.high %v1017_v55, %v1021_v29  ;;  %v8631_v45 = vcombine.low %v1017_v55, %v1021_v29  ;;  %v8210_v29 = vcombine.high %v594_v18, %v598_v19 }
 0x13b   : > { %v1149_v32 = vld [vmem:[%s9875_s17 + $0x1268] sm:$0xff] }
 0x13c   : > { %4778 = vmatpush1.bf16.msra.mxu0 %v8559_v39  ;;  %v8760_v38 = vcombine.high %v1145_v31, %v1149_v32  ;;  %v1009_v39 = vld [vmem:[%s9875_s17 + $0xe08] sm:$0xff]  ;;  %v8759_v20 = vcombine.low %v1145_v31, %v1149_v32 }
 0x13d   : > { %4819 = vmatpush1.bf16.msra.mxu1 %v8687_v42  ;;  %4779 = vmatprep.subr.bf16.mxu0 %v8680_v43  ;;  %v1013_v42 = vld [vmem:[%s9875_s17 + $0xe28] sm:$0xff] }
 0x13e   : > { %4820 = vmatprep.subr.bf16.mxu1 %v8808_v44  ;;  %v1137_v43 = vld [vmem:[%s9875_s17 + $0x1208] sm:$0xff]  ;;  %v8624_v23 = vcombine.high %v1009_v39, %v1013_v42  ;;  %v8623_v53 = vcombine.low %v1009_v39, %v1013_v42  ;;  %v8209_v39 = vcombine.low %v594_v18, %v598_v19 }
 0x13f   : > { %v1141_v44 = vld [vmem:[%s9875_s17 + $0x1228] sm:$0xff] }
 0x140   : > { %4780 = vmatpush2.bf16.msra.mxu0 %v8679_v49  ;;  %v8752_v48 = vcombine.high %v1137_v43, %v1141_v44  ;;  %v618_v49 = vld [vmem:[%s9875_s17 + $0x1d0] sm:$0xff]  ;;  %v8751_v56 = vcombine.low %v1137_v43, %v1141_v44 }
 0x141   : > { %4821 = vmatpush2.bf16.msra.mxu1 %v8807_v50  ;;  %4781 = vmatprep.subr.bf16.mxu0 %v8672_v51  ;;  %v622_v50 = vld [vmem:[%s9875_s17 + $0x1f0] sm:$0xff] }
 0x142   : > { %4822 = vmatprep.subr.bf16.mxu1 %v8800_v52  ;;  %v746_v51 = vld [vmem:[%s9875_s17 + $0x5d0] sm:$0xff]  ;;  %v8234_v57 = vcombine.high %v618_v49, %v622_v50  ;;  %v8233_v2 = vcombine.low %v618_v49, %v622_v50 }
 0x143   : > { %v750_v52 = vld [vmem:[%s9875_s17 + $0x5f0] sm:$0xff] }
 0x144   : > { %4782 = vmatpush2.bf16.msra.mxu0 %v8671_v61  ;;  %v8362_v58 = vcombine.high %v746_v51, %v750_v52  ;;  %v610_v61 = vld [vmem:[%s9875_s17 + $0x190] sm:$0xff]  ;;  %v8361_v3 = vcombine.low %v746_v51, %v750_v52 }
 0x145   : > { %4823 = vmatpush2.bf16.msra.mxu1 %v8799_v62  ;;  %4783 = vmatprep.subr.bf16.mxu0 %v8664_v0  ;;  %v614_v62 = vld [vmem:[%s9875_s17 + $0x1b0] sm:$0xff] }
 0x146   : > { %4824 = vmatprep.subr.bf16.mxu1 %v8792_v1  ;;  %v738_v0 = vld [vmem:[%s9875_s17 + $0x590] sm:$0xff]  ;;  %v8226_v4 = vcombine.high %v610_v61, %v614_v62  ;;  %v8225_v11 = vcombine.low %v610_v61, %v614_v62 }
 0x147   : > { %v742_v1 = vld [vmem:[%s9875_s17 + $0x5b0] sm:$0xff] }
 0x148   : > { %4784 = vmatpush2.bf16.msra.mxu0 %v8663_v6  ;;  %v8354_v5 = vcombine.high %v738_v0, %v742_v1  ;;  %v602_v6 = vld [vmem:[%s9875_s17 + $0x150] sm:$0xff] }
 0x149   : > { %4825 = vmatpush2.bf16.msra.mxu1 %v8791_v7  ;;  %4785 = vmatprep.subr.bf16.mxu0 %v8656_v40  ;;  %v606_v7 = vld [vmem:[%s9875_s17 + $0x170] sm:$0xff] }
 0x14a   : > { %4826 = vmatprep.subr.bf16.mxu1 %v8784_v8  ;;  %v730_v8 = vld [vmem:[%s9875_s17 + $0x550] sm:$0xff] }
 0x14b   : > { %v8345_v55 = vcombine.low %v730_v8, %v734_v9 }
 0x14c   : > { %4786 = vmatpush2.bf16.msra.mxu0 %v8655_v13  ;;  %v8353_v13 = vcombine.low %v738_v0, %v742_v1 }
 0x14d   : > { %4827 = vmatpush2.bf16.msra.mxu1 %v8783_v14  ;;  %4787 = vmatprep.subr.bf16.mxu0 %v8648_v15  ;;  %v8218_v14 = vcombine.high %v602_v6, %v606_v7 }
 0x14e   : > { %4828 = vmatprep.subr.bf16.mxu1 %v8776_v16  ;;  %v8346_v16 = vcombine.high %v730_v8, %v734_v9 }
 0x150   : > { %4788 = vmatpush2.bf16.msra.mxu0 %v8647_v25  ;;  %v726_v25 = vld [vmem:[%s9875_s17 + $0x530] sm:$0xff] }
 0x151   : > { %4829 = vmatpush2.bf16.msra.mxu1 %v8775_v54  ;;  %4789 = vmatprep.subr.bf16.mxu0 %v8640_v26  ;;  %v8217_v26 = vcombine.low %v602_v6, %v606_v7  ;;  %v8338_v32 = vcombine.high %v722_v24, %v726_v25  ;;  %v8337_v42 = vcombine.low %v722_v24, %v726_v25  ;;  %v674_v25 = vld [vmem:[%s9875_s17 + $0x390] sm:$0xff] }
 0x152   : > { %4830 = vmatprep.subr.bf16.mxu1 %v8768_v27 }
 0x154   : > { %4790 = vmatpush2.bf16.msra.mxu0 %v8639_v33  ;;  %v586_v33 = vld [vmem:[%s9875_s17 + $0xd0] sm:$0xff] }
 0x155   : > { %4831 = vmatpush2.bf16.msra.mxu1 %v8767_v34  ;;  %4791 = vmatprep.subr.bf16.mxu0 %v8632_v35  ;;  %v590_v34 = vld [vmem:[%s9875_s17 + $0xf0] sm:$0xff] }
 0x156   : > { %4832 = vmatprep.subr.bf16.mxu1 %v8760_v38  ;;  %v714_v35 = vld [vmem:[%s9875_s17 + $0x4d0] sm:$0xff]  ;;  %v8202_v43 = vcombine.high %v586_v33, %v590_v34  ;;  %v8201_v49 = vcombine.low %v586_v33, %v590_v34 }
 0x157   : > { %v718_v38 = vld [vmem:[%s9875_s17 + $0x4f0] sm:$0xff] }
 0x158   : > { %4792 = vmatpush2.bf16.msra.mxu0 %v8631_v45  ;;  %v8330_v44 = vcombine.high %v714_v35, %v718_v38  ;;  %v578_v45 = vld [vmem:[%s9875_s17 + $0x90] sm:$0xff]  ;;  %v8329_v50 = vcombine.low %v714_v35, %v718_v38 }
 0x159   : > { %4833 = vmatpush2.bf16.msra.mxu1 %v8759_v20  ;;  %4793 = vmatprep.subr.bf16.mxu0 %v8624_v23  ;;  %v582_v20 = vld [vmem:[%s9875_s17 + $0xb0] sm:$0xff] }
 0x15a   : > { %4834 = vmatprep.subr.bf16.mxu1 %v8752_v48  ;;  %v706_v23 = vld [vmem:[%s9875_s17 + $0x490] sm:$0xff]  ;;  %v8194_v51 = vcombine.high %v578_v45, %v582_v20  ;;  %v8193_v61 = vcombine.low %v578_v45, %v582_v20 }
 0x15b   : > { %v710_v48 = vld [vmem:[%s9875_s17 + $0x4b0] sm:$0xff] }
 0x15c   : > { %4794 = vmatpush2.bf16.msra.mxu0 %v8623_v53  ;;  %v8322_v52 = vcombine.high %v706_v23, %v710_v48  ;;  %v570_v53 = vld [vmem:[%s9875_s17 + $0x50] sm:$0xff]  ;;  %v8321_v62 = vcombine.low %v706_v23, %v710_v48 }
 0x15d   : > { %4835 = vmatpush2.bf16.msra.mxu1 %v8751_v56  ;;  %4845 = vmatprep.subr.bf16.mxu0 %v8234_v57  ;;  %v574_v56 = vld [vmem:[%s9875_s17 + $0x70] sm:$0xff] }
 0x15e   : > { %4886 = vmatprep.subr.bf16.mxu1 %v8362_v58  ;;  %v698_v57 = vld [vmem:[%s9875_s17 + $0x450] sm:$0xff]  ;;  %v8186_v0 = vcombine.high %v570_v53, %v574_v56  ;;  %v8185_v6 = vcombine.low %v570_v53, %v574_v56 }
 0x15f   : > { %v10285_v40 = vpop.f32.mrf.mxu0  ;;  %4796 = vmatmul.mubr.bf16.vlgmr.msra.gmra.mxu0 %v10065_v41  ;;  %v702_v58 = vld [vmem:[%s9875_s17 + $0x470] sm:$0xff] }
 0x160   : > { %v10290_v10 = vpop.f32.mrf.mxu1  ;;  %4837 = vmatmul.mubr.bf16.vlgmr.msra.gmra.mxu1 %v10139_v63  ;;  %4846 = vmatpush1.bf16.msra.mxu0 %v8233_v2  ;;  %v8314_v1 = vcombine.high %v698_v57, %v702_v58  ;;  %v562_v2 = vld [vmem:[%s9875_s17 + $0x10] sm:$0xff]  ;;  %v8313_v7 = vcombine.low %v698_v57, %v702_v58 }
 0x161   : > { %4887 = vmatpush1.bf16.msra.mxu1 %v8361_v3  ;;  %v10293_v12 = vpop.f32.mrf.mxu0  ;;  %4847 = vmatprep.subr.bf16.mxu0 %v8226_v4  ;;  %v566_v3 = vld [vmem:[%s9875_s17 + $0x30] sm:$0xff] }
 0x162   : > { %v10295_v15 = vpop.f32.mrf.mxu1  ;;  %4888 = vmatprep.subr.bf16.mxu1 %v8354_v5  ;;  %4877 = vmatprep.mubr.bf16.mxu0 %v9916_v59  ;;  %v690_v4 = vld [vmem:[%s9875_s17 + $0x410] sm:$0xff]  ;;  %v8178_v8 = vcombine.high %v562_v2, %v566_v3  ;;  %v8177_v18 = vcombine.low %v562_v2, %v566_v3 }
 0x163   : > { %v4555_v22 = vpop.f32.mrf.mxu0  ;;  %4918 = vmatprep.mubr.bf16.mxu1 %v9920_v60  ;;  %v694_v5 = vld [vmem:[%s9875_s17 + $0x430] sm:$0xff] }
 0x164   : > { %v4596_v54 = vpop.f32.mrf.mxu1  ;;  %4848 = vmatpush1.bf16.msra.mxu0 %v8225_v11  ;;  %v8306_v9 = vcombine.high %v690_v4, %v694_v5  ;;  %v682_v11 = vld [vmem:[%s9875_s17 + $0x3d0] sm:$0xff]  ;;  %v8305_v19 = vcombine.low %v690_v4, %v694_v5 }
 0x165   : > { %4889 = vmatpush1.bf16.msra.mxu1 %v8353_v13  ;;  %v4556_v27 = vpop.f32.mrf.mxu0  ;;  %4849 = vmatprep.subr.bf16.mxu0 %v8218_v14  ;;  %v686_v13 = vld [vmem:[%s9875_s17 + $0x3f0] sm:$0xff] }
 0x166   : > { %v4597_v31 = vpop.f32.mrf.mxu1  ;;  %4890 = vmatprep.subr.bf16.mxu1 %v8346_v16  ;;  %v810_v14 = vld [vmem:[%s9875_s17 + $0x7d0] sm:$0xff]  ;;  %v8298_v22 = vcombine.high %v682_v11, %v686_v13 }
 0x167   : > { %v814_v16 = vld [vmem:[%s9875_s17 + $0x7f0] sm:$0xff] }
 0x168   : > { %4850 = vmatpush1.bf16.msra.mxu0 %v8217_v26  ;;  %v8426_v24 = vcombine.high %v810_v14, %v814_v16  ;;  %v678_v54 = vld [vmem:[%s9875_s17 + $0x3b0] sm:$0xff] }
 0x169   : > { %4891 = vmatpush1.bf16.msra.mxu1 %v8345_v55  ;;  %4851 = vmatprep.subr.bf16.mxu0 %v8210_v29  ;;  %v802_v26 = vld [vmem:[%s9875_s17 + $0x790] sm:$0xff]  ;;  %v8297_v55 = vcombine.low %v682_v11, %v686_v13  ;;  %v8425_v29 = vcombine.low %v810_v14, %v814_v16  ;;  %v8290_v31 = vcombine.high %v674_v25, %v678_v54 }
 0x16a   : > { %4892 = vmatprep.subr.bf16.mxu1 %v8338_v32  ;;  %v806_v27 = vld [vmem:[%s9875_s17 + $0x7b0] sm:$0xff] }
 0x16b   : > { %v8418_v32 = vcombine.high %v802_v26, %v806_v27  ;;  %v666_v33 = vld [vmem:[%s9875_s17 + $0x350] sm:$0xff] }
 0x16c   : > { %4852 = vmatpush1.bf16.msra.mxu0 %v8209_v39  ;;  %v670_v34 = vld [vmem:[%s9875_s17 + $0x370] sm:$0xff]  ;;  %v8289_v39 = vcombine.low %v674_v25, %v678_v54 }
 0x16d   : > { %4893 = vmatpush1.bf16.msra.mxu1 %v8337_v42  ;;  %4853 = vmatprep.subr.bf16.mxu0 %v8202_v43  ;;  %v794_v35 = vld [vmem:[%s9875_s17 + $0x750] sm:$0xff]  ;;  %v8417_v42 = vcombine.low %v802_v26, %v806_v27  ;;  %v8282_v43 = vcombine.high %v666_v33, %v670_v34 }
 0x16e   : > { %4894 = vmatprep.subr.bf16.mxu1 %v8330_v44  ;;  %v798_v38 = vld [vmem:[%s9875_s17 + $0x770] sm:$0xff] }
 0x16f   : > { %v8410_v44 = vcombine.high %v794_v35, %v798_v38  ;;  %v658_v45 = vld [vmem:[%s9875_s17 + $0x310] sm:$0xff] }
 0x170   : > { %4854 = vmatpush1.bf16.msra.mxu0 %v8201_v49  ;;  %v662_v20 = vld [vmem:[%s9875_s17 + $0x330] sm:$0xff]  ;;  %v8281_v49 = vcombine.low %v666_v33, %v670_v34 }
 0x171   : > { %4895 = vmatpush1.bf16.msra.mxu1 %v8329_v50  ;;  %4855 = vmatprep.subr.bf16.mxu0 %v8194_v51  ;;  %v786_v23 = vld [vmem:[%s9875_s17 + $0x710] sm:$0xff]  ;;  %v8409_v50 = vcombine.low %v794_v35, %v798_v38  ;;  %v8274_v51 = vcombine.high %v658_v45, %v662_v20 }
 0x172   : > { %4896 = vmatprep.subr.bf16.mxu1 %v8322_v52  ;;  %v790_v48 = vld [vmem:[%s9875_s17 + $0x730] sm:$0xff] }
 0x173   : > { %v8402_v52 = vcombine.high %v786_v23, %v790_v48  ;;  %v650_v53 = vld [vmem:[%s9875_s17 + $0x2d0] sm:$0xff] }
 0x174   : > { %4856 = vmatpush1.bf16.msra.mxu0 %v8193_v61  ;;  %v654_v56 = vld [vmem:[%s9875_s17 + $0x2f0] sm:$0xff]  ;;  %v8273_v61 = vcombine.low %v658_v45, %v662_v20 }
 0x175   : > { %4897 = vmatpush1.bf16.msra.mxu1 %v8321_v62  ;;  %4857 = vmatprep.subr.bf16.mxu0 %v8186_v0  ;;  %v778_v57 = vld [vmem:[%s9875_s17 + $0x6d0] sm:$0xff]  ;;  %v8401_v62 = vcombine.low %v786_v23, %v790_v48  ;;  %v8266_v0 = vcombine.high %v650_v53, %v654_v56 }
 0x176   : > { %4898 = vmatprep.subr.bf16.mxu1 %v8314_v1  ;;  %v782_v58 = vld [vmem:[%s9875_s17 + $0x6f0] sm:$0xff] }
 0x177   : > { %v8394_v1 = vcombine.high %v778_v57, %v782_v58  ;;  %v642_v2 = vld [vmem:[%s9875_s17 + $0x290] sm:$0xff] }
 0x178   : > { %4858 = vmatpush1.bf16.msra.mxu0 %v8185_v6  ;;  %v646_v3 = vld [vmem:[%s9875_s17 + $0x2b0] sm:$0xff]  ;;  %v8265_v6 = vcombine.low %v650_v53, %v654_v56 }
 0x179   : > { %4899 = vmatpush1.bf16.msra.mxu1 %v8313_v7  ;;  %4859 = vmatprep.subr.bf16.mxu0 %v8178_v8  ;;  %v770_v4 = vld [vmem:[%s9875_s17 + $0x690] sm:$0xff]  ;;  %v8393_v7 = vcombine.low %v778_v57, %v782_v58  ;;  %v8258_v8 = vcombine.high %v642_v2, %v646_v3 }
 0x17a   : > { %4900 = vmatprep.subr.bf16.mxu1 %v8306_v9  ;;  %v774_v5 = vld [vmem:[%s9875_s17 + $0x6b0] sm:$0xff] }
 0x17b   : > { %v8386_v9 = vcombine.high %v770_v4, %v774_v5  ;;  %v634_v11 = vld [vmem:[%s9875_s17 + $0x250] sm:$0xff] }
 0x17c   : > { %4860 = vmatpush1.bf16.msra.mxu0 %v8177_v18  ;;  %v638_v13 = vld [vmem:[%s9875_s17 + $0x270] sm:$0xff]  ;;  %v8257_v18 = vcombine.low %v642_v2, %v646_v3  ;;  %v548_v2 = vld [vmem:[#allocation2] sm:$0xff] }
 0x17d   : > { %4901 = vmatpush1.bf16.msra.mxu1 %v8305_v19  ;;  %4861 = vmatprep.subr.bf16.mxu0 %v8298_v22  ;;  %v762_v14 = vld [vmem:[%s9875_s17 + $0x650] sm:$0xff]  ;;  %v8385_v19 = vcombine.low %v770_v4, %v774_v5  ;;  %v8250_v22 = vcombine.high %v634_v11, %v638_v13 }
 0x17e   : > { %4902 = vmatprep.subr.bf16.mxu1 %v8426_v24  ;;  %v766_v16 = vld [vmem:[%s9875_s17 + $0x670] sm:$0xff] }
 0x17f   : > { %v8378_v24 = vcombine.high %v762_v14, %v766_v16  ;;  %v626_v25 = vld [vmem:[%s9875_s17 + $0x210] sm:$0xff] }
 0x180   : > { %4862 = vmatpush2.bf16.msra.mxu0 %v8297_v55  ;;  %v630_v54 = vld [vmem:[%s9875_s17 + $0x230] sm:$0xff]  ;;  %v8249_v55 = vcombine.low %v634_v11, %v638_v13 }
 0x181   : > { %4903 = vmatpush2.bf16.msra.mxu1 %v8425_v29  ;;  %4863 = vmatprep.subr.bf16.mxu0 %v8290_v31  ;;  %v754_v26 = vld [vmem:[%s9875_s17 + $0x610] sm:$0xff]  ;;  %v8377_v29 = vcombine.low %v762_v14, %v766_v16  ;;  %v8242_v31 = vcombine.high %v626_v25, %v630_v54 }
 0x182   : > { %4904 = vmatprep.subr.bf16.mxu1 %v8418_v32  ;;  %v758_v27 = vld [vmem:[%s9875_s17 + $0x630] sm:$0xff] }
 0x183   : > { %v8370_v32 = vcombine.high %v754_v26, %v758_v27  ;;  %v874_v33 = vld [vmem:[%s9875_s17 + $0x9d0] sm:$0xff] }
 0x184   : > { %4864 = vmatpush2.bf16.msra.mxu0 %v8289_v39  ;;  %v878_v34 = vld [vmem:[%s9875_s17 + $0x9f0] sm:$0xff]  ;;  %v8241_v39 = vcombine.low %v626_v25, %v630_v54 }
 0x185   : > { %4905 = vmatpush2.bf16.msra.mxu1 %v8417_v42  ;;  %4865 = vmatprep.subr.bf16.mxu0 %v8282_v43  ;;  %v1002_v35 = vld [vmem:[%s9875_s17 + $0xdd0] sm:$0xff]  ;;  %v8369_v42 = vcombine.low %v754_v26, %v758_v27  ;;  %v8490_v43 = vcombine.high %v874_v33, %v878_v34 }
 0x186   : > { %4906 = vmatprep.subr.bf16.mxu1 %v8410_v44  ;;  %v1006_v38 = vld [vmem:[%s9875_s17 + $0xdf0] sm:$0xff]  ;;  %v4552_v44 = vadd.f32 %v10285_v40, %v10217_v36 }
 0x187   : > { %v8618_v45 = vcombine.high %v1002_v35, %v1006_v38  ;;  %v866_v20 = vld [vmem:[%s9875_s17 + $0x990] sm:$0xff] }
 0x188   : > { %4866 = vmatpush2.bf16.msra.mxu0 %v8281_v49  ;;  %v870_v23 = vld [vmem:[%s9875_s17 + $0x9b0] sm:$0xff]  ;;  %v4593_v36 = vadd.f32 %v10290_v10, %v4552_v44 }
 0x189   : > { %4907 = vmatpush2.bf16.msra.mxu1 %v8409_v50  ;;  %4867 = vmatprep.subr.bf16.mxu0 %v8274_v51  ;;  %v994_v48 = vld [vmem:[%s9875_s17 + $0xd90] sm:$0xff]  ;;  %v4554_v50 = vadd.f32 %v10293_v12, %v10222_v46  ;;  %v8489_v51 = vcombine.low %v874_v33, %v878_v34  ;;  %v8482_v53 = vcombine.high %v866_v20, %v870_v23 }
 0x18a   : > { %4908 = vmatprep.subr.bf16.mxu1 %v8402_v52  ;;  %v998_v49 = vld [vmem:[%s9875_s17 + $0xdb0] sm:$0xff]  ;;  %v8617_v52 = vcombine.low %v1002_v35, %v1006_v38  ;;  %v8481_v10 = vcombine.low %v866_v20, %v870_v23 }
 0x18b   : > { %v8610_v40 = vcombine.high %v994_v48, %v998_v49  ;;  %v858_v56 = vld [vmem:[%s9875_s17 + $0x950] sm:$0xff]  ;;  %v4595_v46 = vadd.f32 %v10295_v15, %v4554_v50  ;;  %v8609_v4 = vcombine.low %v994_v48, %v998_v49 }
 0x18c   : > { %4868 = vmatpush2.bf16.msra.mxu0 %v8273_v61  ;;  %v862_v57 = vld [vmem:[%s9875_s17 + $0x970] sm:$0xff] }
 0x18d   : > { %4909 = vmatpush2.bf16.msra.mxu1 %v8401_v62  ;;  %4869 = vmatprep.subr.bf16.mxu0 %v8266_v0  ;;  %v547_v58 = vld [vmem:[#allocation2 + $0x30] sm:$0xff]  ;;  %v8474_v5 = vcombine.high %v858_v56, %v862_v57 }
 0x18e   : > { %4910 = vmatprep.subr.bf16.mxu1 %v8394_v1  ;;  %v986_v62 = vld [vmem:[%s9875_s17 + $0xd50] sm:$0xff] }
 0x18f   : > { %v990_v0 = vld [vmem:[%s9875_s17 + $0xd70] sm:$0xff] }
 0x190   : > { %4870 = vmatpush2.bf16.msra.mxu0 %v8265_v6  ;;  %v854_v11 = vld [vmem:[%s9875_s17 + $0x930] sm:$0xff]  ;;  %v8601_v25 = vcombine.low %v986_v62, %v990_v0 }
 0x191   : > { %4911 = vmatpush2.bf16.msra.mxu1 %v8393_v7  ;;  %4871 = vmatprep.subr.bf16.mxu0 %v8258_v8  ;;  %v8602_v8 = vcombine.high %v986_v62, %v990_v0  ;;  %v978_v14 = vld [vmem:[%s9875_s17 + $0xd10] sm:$0xff] }
 0x192   : > { %4912 = vmatprep.subr.bf16.mxu1 %v8386_v9  ;;  %v850_v9 = vld [vmem:[%s9875_s17 + $0x910] sm:$0xff] }
 0x193   : > { %v982_v16 = vld [vmem:[%s9875_s17 + $0xd30] sm:$0xff]  ;;  %v8466_v54 = vcombine.high %v850_v9, %v854_v11  ;;  %v8465_v33 = vcombine.low %v850_v9, %v854_v11 }
 0x194   : > { %4872 = vmatpush2.bf16.msra.mxu0 %v8257_v18  ;;  %v8594_v27 = vcombine.high %v978_v14, %v982_v16  ;;  %v8593_v34 = vcombine.low %v978_v14, %v982_v16  ;;  %v966_v44 = vld [vmem:[%s9875_s17 + $0xcb0] sm:$0xff] }
 0x195   : > { %4913 = vmatpush2.bf16.msra.mxu1 %v8385_v19  ;;  %4873 = vmatprep.subr.bf16.mxu0 %v8250_v22  ;;  %v8473_v22 = vcombine.low %v858_v56, %v862_v57  ;;  %v826_v49 = vld [vmem:[%s9875_s17 + $0x850] sm:$0xff] }
 0x196   : > { %4914 = vmatprep.subr.bf16.mxu1 %v8378_v24  ;;  %v830_v50 = vld [vmem:[%s9875_s17 + $0x870] sm:$0xff] }
 0x197   : > { %v818_v57 = vld [vmem:[%s9875_s17 + $0x810] sm:$0xff]  ;;  %v8441_v0 = vcombine.low %v826_v49, %v830_v50 }
 0x198   : > { %4874 = vmatpush2.bf16.msra.mxu0 %v8249_v55  ;;  %v842_v55 = vld [vmem:[%s9875_s17 + $0x8d0] sm:$0xff] }
 0x199   : > { %4915 = vmatpush2.bf16.msra.mxu1 %v8377_v29  ;;  %4875 = vmatprep.subr.bf16.mxu0 %v8242_v31  ;;  %v846_v29 = vld [vmem:[%s9875_s17 + $0x8f0] sm:$0xff] }
 0x19a   : > { %4916 = vmatprep.subr.bf16.mxu1 %v8370_v32  ;;  %v970_v31 = vld [vmem:[%s9875_s17 + $0xcd0] sm:$0xff]  ;;  %v8458_v35 = vcombine.high %v842_v55, %v846_v29 }
 0x19b   : > { %v974_v32 = vld [vmem:[%s9875_s17 + $0xcf0] sm:$0xff] }
 0x19c   : > { %4876 = vmatpush2.bf16.msra.mxu0 %v8241_v39  ;;  %v8586_v38 = vcombine.high %v970_v31, %v974_v32  ;;  %v834_v39 = vld [vmem:[%s9875_s17 + $0x890] sm:$0xff]  ;;  %v8585_v20 = vcombine.low %v970_v31, %v974_v32 }
 0x19d   : > { %4917 = vmatpush2.bf16.msra.mxu1 %v8369_v42  ;;  %4927 = vmatprep.subr.bf16.mxu0 %v8490_v43  ;;  %v838_v42 = vld [vmem:[%s9875_s17 + $0x8b0] sm:$0xff] }
 0x19e   : > { %4968 = vmatprep.subr.bf16.mxu1 %v8618_v45  ;;  %v962_v43 = vld [vmem:[%s9875_s17 + $0xc90] sm:$0xff]  ;;  %v8457_v45 = vcombine.low %v842_v55, %v846_v29  ;;  %v8450_v23 = vcombine.high %v834_v39, %v838_v42 }
 0x19f   : > { %v4633_v61 = vpop.f32.mrf.mxu0  ;;  %4878 = vmatmul.mubr.bf16.vlgmr.msra.gmra.mxu0 %v9966_v17  ;;  %v8578_v48 = vcombine.high %v962_v43, %v966_v44  ;;  %v950_v62 = vld [vmem:[%s9875_s17 + $0xc30] sm:$0xff] }
 0x1a0   : > { %v4634_v12 = vadd.f32 %v4633_v61, %v4593_v36  ;;  %v10370_v1 = vpop.f32.mrf.mxu1  ;;  %4919 = vmatmul.mubr.bf16.vlgmr.msra.gmra.mxu1 %v9975_v21  ;;  %4928 = vmatpush1.bf16.msra.mxu0 %v8489_v51  ;;  %v954_v51 = vld [vmem:[%s9875_s17 + $0xc50] sm:$0xff]  ;;  %v8577_v36 = vcombine.low %v962_v43, %v966_v44 }
 0x1a1   : > { %4969 = vmatpush1.bf16.msra.mxu1 %v8617_v52  ;;  %v4635_v3 = vpop.f32.mrf.mxu0  ;;  %4929 = vmatprep.subr.bf16.mxu0 %v8482_v53  ;;  %v958_v52 = vld [vmem:[%s9875_s17 + $0xc70] sm:$0xff]  ;;  %v8449_v53 = vcombine.low %v834_v39, %v838_v42 }
 0x1a2   : > { %v5255_v6 = vadd.f32 %v4634_v12, %v547_v58  ;;  %v4636_v7 = vadd.f32 %v4635_v3, %v4595_v46  ;;  %v10373_v15 = vpop.f32.mrf.mxu1  ;;  %4970 = vmatprep.subr.bf16.mxu1 %v8610_v40  ;;  %4959 = vmatprep.mubr.bf16.mxu0 %v9984_v28  ;;  %v8442_v40 = vcombine.high %v826_v49, %v830_v50  ;;  %v822_v58 = vld [vmem:[%s9875_s17 + $0x830] sm:$0xff] }
 0x1a3   : > { %v4637_v13 = vpop.f32.mrf.mxu0  ;;  %5000 = vmatprep.mubr.bf16.mxu1 %v9991_v30  ;;  %v8570_v56 = vcombine.high %v954_v51, %v958_v52  ;;  %v946_v61 = vld [vmem:[%s9875_s17 + $0xc10] sm:$0xff]  ;;  %v8569_v46 = vcombine.low %v954_v51, %v958_v52  ;;  %v8434_v12 = vcombine.high %v818_v57, %v822_v58 }
 0x1a4   : > { %5263 = vst [vmem:[#allocation2 + $0x30] sm:$0xff] %v5255_v6  ;;  %v5256_v18 = vadd.f32 %v4636_v7, %v548_v2  ;;  %v4678_v19 = vpop.f32.mrf.mxu1  ;;  %4930 = vmatpush1.bf16.msra.mxu0 %v8481_v10  ;;  %v8562_v10 = vcombine.high %v946_v61, %v950_v62  ;;  %v938_v2 = vld [vmem:[%s9875_s17 + $0xbd0] sm:$0xff]  ;;  %v8433_v6 = vcombine.low %v818_v57, %v822_v58 }
 0x1a5   : > { %4971 = vmatpush1.bf16.msra.mxu1 %v8609_v4  ;;  %v4638_v24 = vpop.f32.mrf.mxu0  ;;  %4931 = vmatprep.subr.bf16.mxu0 %v8474_v5  ;;  %v942_v3 = vld [vmem:[%s9875_s17 + $0xbf0] sm:$0xff]  ;;  %v8561_v7 = vcombine.low %v946_v61, %v950_v62 }
 0x1a6   : > { %5264 = vst [vmem:[#allocation2] sm:$0xff] %v5256_v18  ;;  %v4679_v26 = vpop.f32.mrf.mxu1  ;;  %4972 = vmatprep.subr.bf16.mxu1 %v8602_v8  ;;  %v1066_v4 = vld [vmem:[%s9875_s17 + $0xfd0] sm:$0xff]  ;;  %v8554_v8 = vcombine.high %v938_v2, %v942_v3  ;;  %v8553_v18 = vcombine.low %v938_v2, %v942_v3 }
 0x1a7   : > { %v1070_v5 = vld [vmem:[%s9875_s17 + $0xff0] sm:$0xff] }
 0x1a8   : > { %4932 = vmatpush1.bf16.msra.mxu0 %v8473_v22  ;;  %v8682_v9 = vcombine.high %v1066_v4, %v1070_v5  ;;  %v930_v11 = vld [vmem:[%s9875_s17 + $0xb90] sm:$0xff]  ;;  %v8681_v19 = vcombine.low %v1066_v4, %v1070_v5 }
 0x1a9   : > { %4973 = vmatpush1.bf16.msra.mxu1 %v8601_v25  ;;  %4933 = vmatprep.subr.bf16.mxu0 %v8466_v54  ;;  %v934_v13 = vld [vmem:[%s9875_s17 + $0xbb0] sm:$0xff] }
 0x1aa   : > { %4974 = vmatprep.subr.bf16.mxu1 %v8594_v27  ;;  %v1058_v14 = vld [vmem:[%s9875_s17 + $0xf90] sm:$0xff]  ;;  %v8546_v22 = vcombine.high %v930_v11, %v934_v13  ;;  %v8545_v55 = vcombine.low %v930_v11, %v934_v13 }
 0x1ab   : > { %v1062_v16 = vld [vmem:[%s9875_s17 + $0xfb0] sm:$0xff] }
 0x1ac   : > { %4934 = vmatpush1.bf16.msra.mxu0 %v8465_v33  ;;  %v8674_v24 = vcombine.high %v1058_v14, %v1062_v16  ;;  %v922_v25 = vld [vmem:[%s9875_s17 + $0xb50] sm:$0xff]  ;;  %v8673_v29 = vcombine.low %v1058_v14, %v1062_v16 }
 0x1ad   : > { %4975 = vmatpush1.bf16.msra.mxu1 %v8593_v34  ;;  %4935 = vmatprep.subr.bf16.mxu0 %v8458_v35  ;;  %v926_v54 = vld [vmem:[%s9875_s17 + $0xb70] sm:$0xff] }
 0x1ae   : > { %4976 = vmatprep.subr.bf16.mxu1 %v8586_v38  ;;  %v1050_v26 = vld [vmem:[%s9875_s17 + $0xf50] sm:$0xff]  ;;  %v8538_v31 = vcombine.high %v922_v25, %v926_v54  ;;  %v8537_v39 = vcombine.low %v922_v25, %v926_v54 }
 0x1af   : > { %v1054_v27 = vld [vmem:[%s9875_s17 + $0xf70] sm:$0xff] }
 0x1b0   : > { %4936 = vmatpush1.bf16.msra.mxu0 %v8457_v45  ;;  %v8666_v32 = vcombine.high %v1050_v26, %v1054_v27  ;;  %v914_v33 = vld [vmem:[%s9875_s17 + $0xb10] sm:$0xff]  ;;  %v8665_v42 = vcombine.low %v1050_v26, %v1054_v27 }
 0x1b1   : > { %4977 = vmatpush1.bf16.msra.mxu1 %v8585_v20  ;;  %4937 = vmatprep.subr.bf16.mxu0 %v8450_v23  ;;  %v918_v34 = vld [vmem:[%s9875_s17 + $0xb30] sm:$0xff] }
 0x1b2   : > { %4978 = vmatprep.subr.bf16.mxu1 %v8578_v48  ;;  %v1042_v35 = vld [vmem:[%s9875_s17 + $0xf10] sm:$0xff]  ;;  %v8530_v43 = vcombine.high %v914_v33, %v918_v34  ;;  %v8529_v49 = vcombine.low %v914_v33, %v918_v34 }
 0x1b3   : > { %v1046_v38 = vld [vmem:[%s9875_s17 + $0xf30] sm:$0xff] }
 0x1b4   : > { %4938 = vmatpush1.bf16.msra.mxu0 %v8449_v53  ;;  %v8658_v44 = vcombine.high %v1042_v35, %v1046_v38  ;;  %v906_v45 = vld [vmem:[%s9875_s17 + $0xad0] sm:$0xff]  ;;  %v8657_v50 = vcombine.low %v1042_v35, %v1046_v38 }
 0x1b5   : > { %4979 = vmatpush1.bf16.msra.mxu1 %v8577_v36  ;;  %4939 = vmatprep.subr.bf16.mxu0 %v8442_v40  ;;  %v910_v20 = vld [vmem:[%s9875_s17 + $0xaf0] sm:$0xff] }
 0x1b6   : > { %4980 = vmatprep.subr.bf16.mxu1 %v8570_v56  ;;  %v1034_v23 = vld [vmem:[%s9875_s17 + $0xed0] sm:$0xff]  ;;  %v8522_v51 = vcombine.high %v906_v45, %v910_v20  ;;  %v8521_v57 = vcombine.low %v906_v45, %v910_v20  ;;  %v607_v45 = vld [vmem:[%s9875_s17 + $0x178] sm:$0xff] }
 0x1b7   : > { %v1038_v48 = vld [vmem:[%s9875_s17 + $0xef0] sm:$0xff] }
 0x1b8   : > { %4940 = vmatpush1.bf16.msra.mxu0 %v8441_v0  ;;  %v8650_v52 = vcombine.high %v1034_v23, %v1038_v48  ;;  %v898_v53 = vld [vmem:[%s9875_s17 + $0xa90] sm:$0xff]  ;;  %v8649_v58 = vcombine.low %v1034_v23, %v1038_v48 }
 0x1b9   : > { %4981 = vmatpush1.bf16.msra.mxu1 %v8569_v46  ;;  %4941 = vmatprep.subr.bf16.mxu0 %v8434_v12  ;;  %v902_v36 = vld [vmem:[%s9875_s17 + $0xab0] sm:$0xff] }
 0x1ba   : > { %4982 = vmatprep.subr.bf16.mxu1 %v8562_v10  ;;  %v1026_v40 = vld [vmem:[%s9875_s17 + $0xe90] sm:$0xff]  ;;  %v8514_v61 = vcombine.high %v898_v53, %v902_v36  ;;  %v8513_v2 = vcombine.low %v898_v53, %v902_v36 }
 0x1bb   : > { %v1030_v56 = vld [vmem:[%s9875_s17 + $0xeb0] sm:$0xff] }
 0x1bc   : > { %4942 = vmatpush1.bf16.msra.mxu0 %v8433_v6  ;;  %v8642_v62 = vcombine.high %v1026_v40, %v1030_v56  ;;  %v890_v0 = vld [vmem:[%s9875_s17 + $0xa50] sm:$0xff]  ;;  %v8641_v3 = vcombine.low %v1026_v40, %v1030_v56  ;;  %v595_v56 = vld [vmem:[%s9875_s17 + $0x118] sm:$0xff] }
 0x1bd   : > { %4983 = vmatpush1.bf16.msra.mxu1 %v8561_v7  ;;  %4943 = vmatprep.subr.bf16.mxu0 %v8554_v8  ;;  %v894_v46 = vld [vmem:[%s9875_s17 + $0xa70] sm:$0xff] }
 0x1be   : > { %4984 = vmatprep.subr.bf16.mxu1 %v8682_v9  ;;  %v1018_v12 = vld [vmem:[%s9875_s17 + $0xe50] sm:$0xff]  ;;  %v8506_v4 = vcombine.high %v890_v0, %v894_v46  ;;  %v8505_v11 = vcombine.low %v890_v0, %v894_v46 }
 0x1bf   : > { %v1022_v10 = vld [vmem:[%s9875_s17 + $0xe70] sm:$0xff] }
 0x1c0   : > { %4944 = vmatpush2.bf16.msra.mxu0 %v8553_v18  ;;  %v8634_v5 = vcombine.high %v1018_v12, %v1022_v10  ;;  %v882_v6 = vld [vmem:[%s9875_s17 + $0xa10] sm:$0xff]  ;;  %v8633_v13 = vcombine.low %v1018_v12, %v1022_v10 }
 0x1c1   : > { %4985 = vmatpush2.bf16.msra.mxu1 %v8681_v19  ;;  %4945 = vmatprep.subr.bf16.mxu0 %v8546_v22  ;;  %v886_v7 = vld [vmem:[%s9875_s17 + $0xa30] sm:$0xff]  ;;  %v619_v22 = vld [vmem:[%s9875_s17 + $0x1d8] sm:$0xff] }
 0x1c2   : > { %4986 = vmatprep.subr.bf16.mxu1 %v8674_v24  ;;  %v1010_v8 = vld [vmem:[%s9875_s17 + $0xe10] sm:$0xff]  ;;  %v8498_v14 = vcombine.high %v882_v6, %v886_v7  ;;  %v623_v24 = vld [vmem:[%s9875_s17 + $0x1f8] sm:$0xff]  ;;  %v8497_v25 = vcombine.low %v882_v6, %v886_v7 }
 0x1c3   : > { %v1014_v9 = vld [vmem:[%s9875_s17 + $0xe30] sm:$0xff]  ;;  %v8236_v27 = vcombine.high %v619_v22, %v623_v24  ;;  %v8235_v34 = vcombine.low %v619_v22, %v623_v24 }
 0x1c4   : > { %4946 = vmatpush2.bf16.msra.mxu0 %v8545_v55  ;;  %v8626_v16 = vcombine.high %v1010_v8, %v1014_v9  ;;  %v1130_v18 = vld [vmem:[%s9875_s17 + $0x11d0] sm:$0xff]  ;;  %v8625_v54 = vcombine.low %v1010_v8, %v1014_v9 }
 0x1c5   : > { %4987 = vmatpush2.bf16.msra.mxu1 %v8673_v29  ;;  %4947 = vmatprep.subr.bf16.mxu0 %v8538_v31  ;;  %v1134_v19 = vld [vmem:[%s9875_s17 + $0x11f0] sm:$0xff]  ;;  %v611_v31 = vld [vmem:[%s9875_s17 + $0x198] sm:$0xff] }
 0x1c6   : > { %4988 = vmatprep.subr.bf16.mxu1 %v8666_v32  ;;  %v8746_v26 = vcombine.high %v1130_v18, %v1134_v19  ;;  %v1122_v55 = vld [vmem:[%s9875_s17 + $0x1190] sm:$0xff]  ;;  %v615_v32 = vld [vmem:[%s9875_s17 + $0x1b8] sm:$0xff]  ;;  %v8745_v33 = vcombine.low %v1130_v18, %v1134_v19 }
 0x1c7   : > { %v1126_v29 = vld [vmem:[%s9875_s17 + $0x11b0] sm:$0xff]  ;;  %v8228_v38 = vcombine.high %v611_v31, %v615_v32 }
 0x1c8   : > { %4948 = vmatpush2.bf16.msra.mxu0 %v8537_v39  ;;  %v8738_v35 = vcombine.high %v1122_v55, %v1126_v29  ;;  %v1114_v39 = vld [vmem:[%s9875_s17 + $0x1150] sm:$0xff]  ;;  %v8737_v23 = vcombine.low %v1122_v55, %v1126_v29 }
 0x1c9   : > { %4989 = vmatpush2.bf16.msra.mxu1 %v8665_v42  ;;  %4949 = vmatprep.subr.bf16.mxu0 %v8530_v43  ;;  %v1118_v42 = vld [vmem:[%s9875_s17 + $0x1170] sm:$0xff] }
 0x1ca   : > { %4990 = vmatprep.subr.bf16.mxu1 %v8658_v44  ;;  %v603_v44 = vld [vmem:[%s9875_s17 + $0x158] sm:$0xff]  ;;  %v1106_v53 = vld [vmem:[%s9875_s17 + $0x1110] sm:$0xff] }
 0x1cb   : > { %v1110_v36 = vld [vmem:[%s9875_s17 + $0x1130] sm:$0xff]  ;;  %v8219_v0 = vcombine.low %v603_v44, %v607_v45 }
 0x1cc   : > { %4950 = vmatpush2.bf16.msra.mxu0 %v8529_v49  ;;  %v8227_v49 = vcombine.low %v611_v31, %v615_v32  ;;  %v8722_v46 = vcombine.high %v1106_v53, %v1110_v36  ;;  %v1090_v9 = vld [vmem:[%s9875_s17 + $0x1090] sm:$0xff] }
 0x1cd   : > { %4991 = vmatpush2.bf16.msra.mxu1 %v8657_v50  ;;  %4951 = vmatprep.subr.bf16.mxu0 %v8522_v51  ;;  %v8730_v50 = vcombine.high %v1114_v39, %v1118_v42  ;;  %v1082_v24 = vld [vmem:[%s9875_s17 + $0x1050] sm:$0xff] }
 0x1ce   : > { %4992 = vmatprep.subr.bf16.mxu1 %v8650_v52  ;;  %v8220_v52 = vcombine.high %v603_v44, %v607_v45  ;;  %v1074_v32 = vld [vmem:[%s9875_s17 + $0x1010] sm:$0xff] }
 0x1cf   : > { %v1194_v45 = vld [vmem:[%s9875_s17 + $0x13d0] sm:$0xff] }
 0x1d0   : > { %4952 = vmatpush2.bf16.msra.mxu0 %v8521_v57  ;;  %v599_v57 = vld [vmem:[%s9875_s17 + $0x138] sm:$0xff] }
 0x1d1   : > { %4993 = vmatpush2.bf16.msra.mxu1 %v8649_v58  ;;  %4953 = vmatprep.subr.bf16.mxu0 %v8514_v61  ;;  %v8729_v61 = vcombine.low %v1114_v39, %v1118_v42  ;;  %v8212_v10 = vcombine.high %v595_v56, %v599_v57  ;;  %v8211_v6 = vcombine.low %v595_v56, %v599_v57  ;;  %v1186_v56 = vld [vmem:[%s9875_s17 + $0x1390] sm:$0xff] }
 0x1d2   : > { %4994 = vmatprep.subr.bf16.mxu1 %v8642_v62  ;;  %v1190_v57 = vld [vmem:[%s9875_s17 + $0x13b0] sm:$0xff] }
 0x1d4   : > { %4954 = vmatpush2.bf16.msra.mxu0 %v8513_v2  ;;  %v1098_v2 = vld [vmem:[%s9875_s17 + $0x10d0] sm:$0xff] }
 0x1d5   : > { %4995 = vmatpush2.bf16.msra.mxu1 %v8641_v3  ;;  %4955 = vmatprep.subr.bf16.mxu0 %v8506_v4  ;;  %v1102_v3 = vld [vmem:[%s9875_s17 + $0x10f0] sm:$0xff]  ;;  %v587_v4 = vld [vmem:[%s9875_s17 + $0xd8] sm:$0xff] }
 0x1d6   : > { %4996 = vmatprep.subr.bf16.mxu1 %v8634_v5  ;;  %v591_v5 = vld [vmem:[%s9875_s17 + $0xf8] sm:$0xff]  ;;  %v8714_v7 = vcombine.high %v1098_v2, %v1102_v3 }
 0x1d7   : > { %v8204_v8 = vcombine.high %v587_v4, %v591_v5  ;;  %v8203_v18 = vcombine.low %v587_v4, %v591_v5  ;;  %v671_v4 = vld [vmem:[%s9875_s17 + $0x378] sm:$0xff]  ;;  %v8801_v5 = vcombine.low %v1186_v56, %v1190_v57 }
 0x1d8   : > { %4956 = vmatpush2.bf16.msra.mxu0 %v8505_v11  ;;  %v1094_v11 = vld [vmem:[%s9875_s17 + $0x10b0] sm:$0xff] }
 0x1d9   : > { %4997 = vmatpush2.bf16.msra.mxu1 %v8633_v13  ;;  %4957 = vmatprep.subr.bf16.mxu0 %v8498_v14  ;;  %v579_v13 = vld [vmem:[%s9875_s17 + $0x98] sm:$0xff]  ;;  %v8706_v19 = vcombine.high %v1090_v9, %v1094_v11 }
 0x1da   : > { %4998 = vmatprep.subr.bf16.mxu1 %v8626_v16  ;;  %v583_v14 = vld [vmem:[%s9875_s17 + $0xb8] sm:$0xff]  ;;  %v8713_v16 = vcombine.low %v1098_v2, %v1102_v3  ;;  %v1182_v2 = vld [vmem:[%s9875_s17 + $0x1370] sm:$0xff] }
 0x1db   : > { %v8196_v22 = vcombine.high %v579_v13, %v583_v14  ;;  %v8195_v55 = vcombine.low %v579_v13, %v583_v14  ;;  %v667_v3 = vld [vmem:[%s9875_s17 + $0x358] sm:$0xff] }
 0x1dc   : > { %4958 = vmatpush2.bf16.msra.mxu0 %v8497_v25  ;;  %v1086_v25 = vld [vmem:[%s9875_s17 + $0x1070] sm:$0xff]  ;;  %v663_v13 = vld [vmem:[%s9875_s17 + $0x338] sm:$0xff] }
 0x1dd   : > { %4999 = vmatpush2.bf16.msra.mxu1 %v8625_v54  ;;  %5009 = vmatprep.subr.bf16.mxu0 %v8746_v26  ;;  %v571_v54 = vld [vmem:[%s9875_s17 + $0x58] sm:$0xff]  ;;  %v8698_v29 = vcombine.high %v1082_v24, %v1086_v25 }
 0x1de   : > { %5050 = vmatprep.subr.bf16.mxu1 %v8236_v27  ;;  %v575_v26 = vld [vmem:[%s9875_s17 + $0x78] sm:$0xff]  ;;  %v8705_v27 = vcombine.low %v1090_v9, %v1094_v11  ;;  %v1174_v9 = vld [vmem:[%s9875_s17 + $0x1330] sm:$0xff] }
 0x1df   : > { %v10439_v43 = vpop.f32.mrf.mxu0  ;;  %4960 = vmatmul.mubr.bf16.vlgmr.msra.gmra.mxu0 %v10056_v37  ;;  %v8188_v31 = vcombine.high %v571_v54, %v575_v26  ;;  %v8187_v39 = vcombine.low %v571_v54, %v575_v26  ;;  %v659_v11 = vld [vmem:[%s9875_s17 + $0x318] sm:$0xff] }
 0x1e0   : > { %v10444_v20 = vpop.f32.mrf.mxu1  ;;  %5001 = vmatmul.mubr.bf16.vlgmr.msra.gmra.mxu1 %v10065_v41  ;;  %5010 = vmatpush1.bf16.msra.mxu0 %v8745_v33  ;;  %v1078_v33 = vld [vmem:[%s9875_s17 + $0x1030] sm:$0xff]  ;;  %v655_v54 = vld [vmem:[%s9875_s17 + $0x2f8] sm:$0xff] }
 0x1e1   : > { %5051 = vmatpush1.bf16.msra.mxu1 %v8235_v34  ;;  %v10447_v48 = vpop.f32.mrf.mxu0  ;;  %5011 = vmatprep.subr.bf16.mxu0 %v8738_v35  ;;  %v563_v34 = vld [vmem:[%s9875_s17 + $0x18] sm:$0xff]  ;;  %v8690_v42 = vcombine.high %v1074_v32, %v1078_v33 }
 0x1e2   : > { %v10449_v51 = vpop.f32.mrf.mxu1  ;;  %5052 = vmatprep.subr.bf16.mxu1 %v8228_v38  ;;  %5041 = vmatprep.mubr.bf16.mxu0 %v10071_v47  ;;  %v567_v35 = vld [vmem:[%s9875_s17 + $0x38] sm:$0xff]  ;;  %v8697_v38 = vcombine.low %v1082_v24, %v1086_v25  ;;  %v1166_v24 = vld [vmem:[%s9875_s17 + $0x12f0] sm:$0xff] }
 0x1e3   : > { %v4719_v40 = vpop.f32.mrf.mxu0  ;;  %5082 = vmatprep.mubr.bf16.mxu1 %v9916_v59  ;;  %v8721_v59 = vcombine.low %v1106_v53, %v1110_v36  ;;  %v8180_v44 = vcombine.high %v563_v34, %v567_v35  ;;  %v8179_v53 = vcombine.low %v563_v34, %v567_v35  ;;  %v651_v25 = vld [vmem:[%s9875_s17 + $0x2d8] sm:$0xff] }
 0x1e4   : > { %v4760_v58 = vpop.f32.mrf.mxu1  ;;  %5012 = vmatpush1.bf16.msra.mxu0 %v8737_v23  ;;  %v1198_v23 = vld [vmem:[%s9875_s17 + $0x13f0] sm:$0xff]  ;;  %v647_v34 = vld [vmem:[%s9875_s17 + $0x2b8] sm:$0xff] }
 0x1e5   : > { %5053 = vmatpush1.bf16.msra.mxu1 %v8227_v49  ;;  %v4720_v62 = vpop.f32.mrf.mxu0  ;;  %5013 = vmatprep.subr.bf16.mxu0 %v8730_v50  ;;  %v683_v49 = vld [vmem:[%s9875_s17 + $0x3d8] sm:$0xff]  ;;  %v8810_v36 = vcombine.high %v1194_v45, %v1198_v23 }
 0x1e6   : > { %v4761_v12 = vpop.f32.mrf.mxu1  ;;  %5054 = vmatprep.subr.bf16.mxu1 %v8220_v52  ;;  %v687_v50 = vld [vmem:[%s9875_s17 + $0x3f8] sm:$0xff]  ;;  %v8689_v52 = vcombine.low %v1074_v32, %v1078_v33  ;;  %v8809_v62 = vcombine.low %v1194_v45, %v1198_v23  ;;  %v1158_v32 = vld [vmem:[%s9875_s17 + $0x12b0] sm:$0xff] }
 0x1e7   : > { %v8300_v40 = vcombine.high %v683_v49, %v687_v50  ;;  %v675_v58 = vld [vmem:[%s9875_s17 + $0x398] sm:$0xff]  ;;  %v1150_v45 = vld [vmem:[%s9875_s17 + $0x1270] sm:$0xff] }
 0x1e8   : > { %5014 = vmatpush1.bf16.msra.mxu0 %v8729_v61  ;;  %v679_v61 = vld [vmem:[%s9875_s17 + $0x3b8] sm:$0xff] }
 0x1e9   : > { %5055 = vmatpush1.bf16.msra.mxu1 %v8219_v0  ;;  %5015 = vmatprep.subr.bf16.mxu0 %v8722_v46  ;;  %v8299_v0 = vcombine.low %v683_v49, %v687_v50  ;;  %v8802_v46 = vcombine.high %v1186_v56, %v1190_v57  ;;  %v8292_v12 = vcombine.high %v675_v58, %v679_v61  ;;  %v643_v33 = vld [vmem:[%s9875_s17 + $0x298] sm:$0xff]  ;;  %v1142_v56 = vld [vmem:[%s9875_s17 + $0x1230] sm:$0xff] }
 0x1ea   : > { %5056 = vmatprep.subr.bf16.mxu1 %v8212_v10  ;;  %v1178_v10 = vld [vmem:[%s9875_s17 + $0x1350] sm:$0xff]  ;;  %v635_v23 = vld [vmem:[%s9875_s17 + $0x258] sm:$0xff] }
 0x1eb   : > { %v8793_v14 = vcombine.low %v1178_v10, %v1182_v2  ;;  %v639_v49 = vld [vmem:[%s9875_s17 + $0x278] sm:$0xff] }
 0x1ec   : > { %5016 = vmatpush1.bf16.msra.mxu0 %v8721_v59  ;;  %v8291_v59 = vcombine.low %v675_v58, %v679_v61  ;;  %v627_v57 = vld [vmem:[%s9875_s17 + $0x218] sm:$0xff] }
 0x1ed   : > { %5057 = vmatpush1.bf16.msra.mxu1 %v8211_v6  ;;  %5017 = vmatprep.subr.bf16.mxu0 %v8714_v7  ;;  %v8794_v6 = vcombine.high %v1178_v10, %v1182_v2  ;;  %v8284_v7 = vcombine.high %v667_v3, %v671_v4  ;;  %v631_v58 = vld [vmem:[%s9875_s17 + $0x238] sm:$0xff] }
 0x1ee   : > { %5058 = vmatprep.subr.bf16.mxu1 %v8204_v8  ;;  %v1170_v8 = vld [vmem:[%s9875_s17 + $0x1310] sm:$0xff]  ;;  %v751_v10 = vld [vmem:[%s9875_s17 + $0x5f8] sm:$0xff] }
 0x1ef   : > { %v8785_v26 = vcombine.low %v1170_v8, %v1174_v9  ;;  %v875_v2 = vld [vmem:[%s9875_s17 + $0x9d8] sm:$0xff] }
 0x1f0   : > { %5018 = vmatpush1.bf16.msra.mxu0 %v8713_v16  ;;  %v8283_v16 = vcombine.low %v667_v3, %v671_v4  ;;  %v879_v3 = vld [vmem:[%s9875_s17 + $0x9f8] sm:$0xff] }
 0x1f1   : > { %5059 = vmatpush1.bf16.msra.mxu1 %v8203_v18  ;;  %5019 = vmatprep.subr.bf16.mxu0 %v8706_v19  ;;  %v8786_v18 = vcombine.high %v1170_v8, %v1174_v9  ;;  %v8276_v19 = vcombine.high %v659_v11, %v663_v13  ;;  %v739_v8 = vld [vmem:[%s9875_s17 + $0x598] sm:$0xff] }
 0x1f2   : > { %5060 = vmatprep.subr.bf16.mxu1 %v8196_v22  ;;  %v1162_v22 = vld [vmem:[%s9875_s17 + $0x12d0] sm:$0xff]  ;;  %v743_v9 = vld [vmem:[%s9875_s17 + $0x5b8] sm:$0xff] }
 0x1f3   : > { %v8777_v35 = vcombine.low %v1162_v22, %v1166_v24 }
 0x1f4   : > { %5020 = vmatpush1.bf16.msra.mxu0 %v8705_v27  ;;  %v8275_v27 = vcombine.low %v659_v11, %v663_v13  ;;  %v867_v11 = vld [vmem:[%s9875_s17 + $0x998] sm:$0xff] }
 0x1f5   : > { %5061 = vmatpush1.bf16.msra.mxu1 %v8195_v55  ;;  %5021 = vmatprep.subr.bf16.mxu0 %v8698_v29  ;;  %v8778_v55 = vcombine.high %v1162_v22, %v1166_v24  ;;  %v8268_v29 = vcombine.high %v651_v25, %v655_v54  ;;  %v871_v13 = vld [vmem:[%s9875_s17 + $0x9b8] sm:$0xff] }
 0x1f6   : > { %5062 = vmatprep.subr.bf16.mxu1 %v8188_v31  ;;  %v1154_v31 = vld [vmem:[%s9875_s17 + $0x1290] sm:$0xff]  ;;  %v731_v22 = vld [vmem:[%s9875_s17 + $0x558] sm:$0xff] }
 0x1f7   : > { %v8769_v50 = vcombine.low %v1154_v31, %v1158_v32  ;;  %v735_v24 = vld [vmem:[%s9875_s17 + $0x578] sm:$0xff] }
 0x1f8   : > { %5022 = vmatpush1.bf16.msra.mxu0 %v8697_v38  ;;  %v8267_v38 = vcombine.low %v651_v25, %v655_v54  ;;  %v859_v54 = vld [vmem:[%s9875_s17 + $0x958] sm:$0xff] }
 0x1f9   : > { %5063 = vmatpush1.bf16.msra.mxu1 %v8187_v39  ;;  %5023 = vmatprep.subr.bf16.mxu0 %v8690_v42  ;;  %v8770_v39 = vcombine.high %v1154_v31, %v1158_v32  ;;  %v8260_v42 = vcombine.high %v643_v33, %v647_v34  ;;  %v8483_v31 = vcombine.low %v867_v11, %v871_v13 }
 0x1fa   : > { %5064 = vmatprep.subr.bf16.mxu1 %v8180_v44  ;;  %v1146_v44 = vld [vmem:[%s9875_s17 + $0x1250] sm:$0xff]  ;;  %v8348_v32 = vcombine.high %v731_v22, %v735_v24 }
 0x1fb   : > { %v8761_v61 = vcombine.low %v1146_v44, %v1150_v45 }
 0x1fc   : > { %5024 = vmatpush1.bf16.msra.mxu0 %v8689_v52  ;;  %v8259_v52 = vcombine.low %v643_v33, %v647_v34 }
 0x1fd   : > { %5065 = vmatpush1.bf16.msra.mxu1 %v8179_v53  ;;  %5025 = vmatprep.subr.bf16.mxu0 %v8810_v36  ;;  %v8762_v53 = vcombine.high %v1146_v44, %v1150_v45  ;;  %v8252_v36 = vcombine.high %v635_v23, %v639_v49  ;;  %v851_v44 = vld [vmem:[%s9875_s17 + $0x918] sm:$0xff] }
 0x1fe   : > { %5066 = vmatprep.subr.bf16.mxu1 %v8300_v40  ;;  %v1138_v40 = vld [vmem:[%s9875_s17 + $0x1210] sm:$0xff]  ;;  %v855_v45 = vld [vmem:[%s9875_s17 + $0x938] sm:$0xff] }
 0x1ff   : > { %v8753_v4 = vcombine.low %v1138_v40, %v1142_v56 }
 0x200   : > { %5026 = vmatpush2.bf16.msra.mxu0 %v8809_v62  ;;  %v8251_v62 = vcombine.low %v635_v23, %v639_v49 }
 0x201   : > { %5067 = vmatpush2.bf16.msra.mxu1 %v8299_v0  ;;  %5027 = vmatprep.subr.bf16.mxu0 %v8802_v46  ;;  %v8754_v0 = vcombine.high %v1138_v40, %v1142_v56  ;;  %v8244_v46 = vcombine.high %v627_v57, %v631_v58 }
 0x202   : > { %5068 = vmatprep.subr.bf16.mxu1 %v8292_v12  ;;  %v747_v12 = vld [vmem:[%s9875_s17 + $0x5d8] sm:$0xff] }
 0x204   : > { %5028 = vmatpush2.bf16.msra.mxu0 %v8801_v5  ;;  %v8243_v5 = vcombine.low %v627_v57, %v631_v58  ;;  %v715_v57 = vld [vmem:[%s9875_s17 + $0x4d8] sm:$0xff] }
 0x205   : > { %5069 = vmatpush2.bf16.msra.mxu1 %v8291_v59  ;;  %5029 = vmatprep.subr.bf16.mxu0 %v8794_v6  ;;  %v8364_v59 = vcombine.high %v747_v12, %v751_v10  ;;  %v4716_v6 = vadd.f32 %v10439_v43, %v10370_v1  ;;  %v8484_v43 = vcombine.high %v867_v11, %v871_v13  ;;  %v719_v58 = vld [vmem:[%s9875_s17 + $0x4f8] sm:$0xff] }
 0x206   : > { %5070 = vmatprep.subr.bf16.mxu1 %v8284_v7  ;;  %v8492_v7 = vcombine.high %v875_v2, %v879_v3  ;;  %v703_v11 = vld [vmem:[%s9875_s17 + $0x478] sm:$0xff] }
 0x207   : > { %v4757_v1 = vadd.f32 %v10444_v20, %v4716_v6  ;;  %v549_v20 = vld [vmem:[#allocation2 + $0x18] sm:$0xff] }
 0x208   : > { %5030 = vmatpush2.bf16.msra.mxu0 %v8793_v14  ;;  %v4718_v14 = vadd.f32 %v10447_v48, %v10373_v15  ;;  %v827_v13 = vld [vmem:[%s9875_s17 + $0x858] sm:$0xff] }
 0x209   : > { %5071 = vmatpush2.bf16.msra.mxu1 %v8283_v16  ;;  %5031 = vmatprep.subr.bf16.mxu0 %v8786_v18  ;;  %v8363_v16 = vcombine.low %v747_v12, %v751_v10  ;;  %v8491_v18 = vcombine.low %v875_v2, %v879_v3  ;;  %v8332_v12 = vcombine.high %v715_v57, %v719_v58  ;;  %v707_v2 = vld [vmem:[%s9875_s17 + $0x498] sm:$0xff] }
 0x20a   : > { %5072 = vmatprep.subr.bf16.mxu1 %v8276_v19  ;;  %v8356_v19 = vcombine.high %v739_v8, %v743_v9  ;;  %v711_v3 = vld [vmem:[%s9875_s17 + $0x4b8] sm:$0xff] }
 0x20c   : > { %5032 = vmatpush2.bf16.msra.mxu0 %v8785_v26  ;;  %v863_v26 = vld [vmem:[%s9875_s17 + $0x978] sm:$0xff] }
 0x20d   : > { %5073 = vmatpush2.bf16.msra.mxu1 %v8275_v27  ;;  %5033 = vmatprep.subr.bf16.mxu0 %v8778_v55  ;;  %v4759_v27 = vadd.f32 %v10449_v51, %v4718_v14  ;;  %v8355_v55 = vcombine.low %v739_v8, %v743_v9  ;;  %v8476_v51 = vcombine.high %v859_v54, %v863_v26  ;;  %v699_v9 = vld [vmem:[%s9875_s17 + $0x458] sm:$0xff] }
 0x20e   : > { %5074 = vmatprep.subr.bf16.mxu1 %v8268_v29  ;;  %v831_v14 = vld [vmem:[%s9875_s17 + $0x878] sm:$0xff] }
 0x210   : > { %5034 = vmatpush2.bf16.msra.mxu0 %v8777_v35 }
 0x211   : > { %5075 = vmatpush2.bf16.msra.mxu1 %v8267_v38  ;;  %5035 = vmatprep.subr.bf16.mxu0 %v8770_v39  ;;  %v723_v38 = vld [vmem:[%s9875_s17 + $0x518] sm:$0xff] }
 0x212   : > { %5076 = vmatprep.subr.bf16.mxu1 %v8260_v42  ;;  %v727_v39 = vld [vmem:[%s9875_s17 + $0x538] sm:$0xff] }
 0x214   : > { %5036 = vmatpush2.bf16.msra.mxu0 %v8769_v50 }
 0x215   : > { %5077 = vmatpush2.bf16.msra.mxu1 %v8259_v52  ;;  %5037 = vmatprep.subr.bf16.mxu0 %v8762_v53  ;;  %v8347_v52 = vcombine.low %v731_v22, %v735_v24  ;;  %v695_v22 = vld [vmem:[%s9875_s17 + $0x438] sm:$0xff] }
 0x216   : > { %5078 = vmatprep.subr.bf16.mxu1 %v8252_v36  ;;  %v8475_v36 = vcombine.low %v859_v54, %v863_v26  ;;  %v819_v24 = vld [vmem:[%s9875_s17 + $0x818] sm:$0xff]  ;;  %v8315_v54 = vcombine.low %v699_v9, %v703_v11  ;;  %v8443_v26 = vcombine.low %v827_v13, %v831_v14 }
 0x218   : > { %5038 = vmatpush2.bf16.msra.mxu0 %v8761_v61  ;;  %v843_v61 = vld [vmem:[%s9875_s17 + $0x8d8] sm:$0xff] }
 0x219   : > { %5079 = vmatpush2.bf16.msra.mxu1 %v8251_v62  ;;  %5039 = vmatprep.subr.bf16.mxu0 %v8754_v0  ;;  %v847_v62 = vld [vmem:[%s9875_s17 + $0x8f8] sm:$0xff]  ;;  %v8339_v0 = vcombine.low %v723_v38, %v727_v39 }
 0x21a   : > { %5080 = vmatprep.subr.bf16.mxu1 %v8244_v46  ;;  %v8467_v46 = vcombine.low %v851_v44, %v855_v45  ;;  %v8460_v10 = vcombine.high %v843_v61, %v847_v62  ;;  %v8459_v6 = vcombine.low %v843_v61, %v847_v62 }
 0x21c   : > { %5040 = vmatpush2.bf16.msra.mxu0 %v8753_v4  ;;  %v835_v4 = vld [vmem:[%s9875_s17 + $0x898] sm:$0xff] }
 0x21d   : > { %5081 = vmatpush2.bf16.msra.mxu1 %v8243_v5  ;;  %5091 = vmatprep.subr.bf16.mxu0 %v8364_v59  ;;  %v839_v5 = vld [vmem:[%s9875_s17 + $0x8b8] sm:$0xff]  ;;  %v8331_v59 = vcombine.low %v715_v57, %v719_v58 }
 0x21e   : > { %5132 = vmatprep.subr.bf16.mxu1 %v8492_v7  ;;  %v8324_v7 = vcombine.high %v707_v2, %v711_v3  ;;  %v8452_v8 = vcombine.high %v835_v4, %v839_v5  ;;  %v915_v57 = vld [vmem:[%s9875_s17 + $0xb18] sm:$0xff] }
 0x21f   : > { %v4797_v25 = vpop.f32.mrf.mxu0  ;;  %5042 = vmatmul.mubr.bf16.vlgmr.msra.gmra.mxu0 %v10139_v63  ;;  %v919_v58 = vld [vmem:[%s9875_s17 + $0xb38] sm:$0xff] }
 0x220   : > { %v4798_v15 = vadd.f32 %v4797_v25, %v4757_v1  ;;  %v4838_v48 = vpop.f32.mrf.mxu1  ;;  %5083 = vmatmul.mubr.bf16.vlgmr.msra.gmra.mxu1 %v9966_v17  ;;  %5092 = vmatpush1.bf16.msra.mxu0 %v8363_v16  ;;  %v550_v17 = vld [vmem:[#allocation2 + $0x10] sm:$0xff]  ;;  %v8323_v16 = vcombine.low %v707_v2, %v711_v3  ;;  %v8444_v1 = vcombine.high %v827_v13, %v831_v14  ;;  %v823_v25 = vld [vmem:[%s9875_s17 + $0x838] sm:$0xff] }
 0x221   : > { %5133 = vmatpush1.bf16.msra.mxu1 %v8491_v18  ;;  %v4799_v29 = vpop.f32.mrf.mxu0  ;;  %5093 = vmatprep.subr.bf16.mxu0 %v8356_v19  ;;  %v8451_v18 = vcombine.low %v835_v4, %v839_v5  ;;  %v8316_v19 = vcombine.high %v699_v9, %v703_v11  ;;  %v907_v2 = vld [vmem:[%s9875_s17 + $0xad8] sm:$0xff]  ;;  %v8531_v5 = vcombine.low %v915_v57, %v919_v58 }
 0x222   : > { %v4839_v33 = vadd.f32 %v4838_v48, %v4798_v15  ;;  %v4800_v34 = vadd.f32 %v4799_v29, %v4759_v27  ;;  %v4840_v35 = vpop.f32.mrf.mxu1  ;;  %5134 = vmatprep.subr.bf16.mxu1 %v8484_v43  ;;  %5123 = vmatprep.mubr.bf16.mxu0 %v9920_v60  ;;  %v8340_v60 = vcombine.high %v723_v38, %v727_v39  ;;  %v691_v43 = vld [vmem:[%s9875_s17 + $0x418] sm:$0xff] }
 0x223   : > { %v4801_v42 = vpop.f32.mrf.mxu0  ;;  %5164 = vmatprep.mubr.bf16.mxu1 %v9984_v28  ;;  %v8468_v28 = vcombine.high %v851_v44, %v855_v45  ;;  %v8308_v27 = vcombine.high %v691_v43, %v695_v22  ;;  %v8436_v15 = vcombine.high %v819_v24, %v823_v25  ;;  %v811_v48 = vld [vmem:[%s9875_s17 + $0x7d8] sm:$0xff] }
 0x224   : > { %v5257_v23 = vadd.f32 %v4839_v33, %v549_v20  ;;  %v4841_v49 = vadd.f32 %v4840_v35, %v4800_v34  ;;  %v4842_v50 = vpop.f32.mrf.mxu1  ;;  %5094 = vmatpush1.bf16.msra.mxu0 %v8355_v55  ;;  %v815_v55 = vld [vmem:[%s9875_s17 + $0x7f8] sm:$0xff] }
 0x225   : > { %5135 = vmatpush1.bf16.msra.mxu1 %v8483_v31  ;;  %v4802_v53 = vpop.f32.mrf.mxu0  ;;  %5095 = vmatprep.subr.bf16.mxu0 %v8348_v32  ;;  %v939_v20 = vld [vmem:[%s9875_s17 + $0xbd8] sm:$0xff]  ;;  %v8307_v31 = vcombine.low %v691_v43, %v695_v22  ;;  %v8435_v32 = vcombine.low %v819_v24, %v823_v25  ;;  %v8428_v33 = vcombine.high %v811_v48, %v815_v55 }
 0x226   : > { %5265 = vst [vmem:[#allocation2 + $0x18] sm:$0xff] %v5257_v23  ;;  %v5258_v40 = vadd.f32 %v4841_v49, %v550_v17  ;;  %v4843_v56 = vpop.f32.mrf.mxu1  ;;  %5136 = vmatprep.subr.bf16.mxu1 %v8476_v51  ;;  %v943_v29 = vld [vmem:[%s9875_s17 + $0xbf8] sm:$0xff]  ;;  %v8427_v17 = vcombine.low %v811_v48, %v815_v55 }
 0x227   : > { %v8556_v34 = vcombine.high %v939_v20, %v943_v29  ;;  %v803_v35 = vld [vmem:[%s9875_s17 + $0x798] sm:$0xff]  ;;  %v8555_v42 = vcombine.low %v939_v20, %v943_v29 }
 0x228   : > { %5266 = vst [vmem:[#allocation2 + $0x10] sm:$0xff] %v5258_v40  ;;  %5096 = vmatpush1.bf16.msra.mxu0 %v8347_v52  ;;  %v807_v51 = vld [vmem:[%s9875_s17 + $0x7b8] sm:$0xff] }
 0x229   : > { %5137 = vmatpush1.bf16.msra.mxu1 %v8475_v36  ;;  %5097 = vmatprep.subr.bf16.mxu0 %v8340_v60  ;;  %v931_v38 = vld [vmem:[%s9875_s17 + $0xb98] sm:$0xff]  ;;  %v8420_v44 = vcombine.high %v803_v35, %v807_v51  ;;  %v8419_v53 = vcombine.low %v803_v35, %v807_v51 }
 0x22a   : > { %5138 = vmatprep.subr.bf16.mxu1 %v8468_v28  ;;  %v935_v39 = vld [vmem:[%s9875_s17 + $0xbb8] sm:$0xff] }
 0x22b   : > { %v8548_v45 = vcombine.high %v931_v38, %v935_v39  ;;  %v795_v23 = vld [vmem:[%s9875_s17 + $0x758] sm:$0xff]  ;;  %v8547_v36 = vcombine.low %v931_v38, %v935_v39 }
 0x22c   : > { %5098 = vmatpush1.bf16.msra.mxu0 %v8339_v0  ;;  %v799_v49 = vld [vmem:[%s9875_s17 + $0x778] sm:$0xff] }
 0x22d   : > { %5139 = vmatpush1.bf16.msra.mxu1 %v8467_v46  ;;  %5099 = vmatprep.subr.bf16.mxu0 %v8332_v12  ;;  %v923_v50 = vld [vmem:[%s9875_s17 + $0xb58] sm:$0xff]  ;;  %v8412_v60 = vcombine.high %v795_v23, %v799_v49  ;;  %v8411_v61 = vcombine.low %v795_v23, %v799_v49  ;;  %v8532_v46 = vcombine.high %v915_v57, %v919_v58 }
 0x22e   : > { %5140 = vmatprep.subr.bf16.mxu1 %v8460_v10  ;;  %v927_v52 = vld [vmem:[%s9875_s17 + $0xb78] sm:$0xff] }
 0x22f   : > { %v8540_v40 = vcombine.high %v923_v50, %v927_v52  ;;  %v787_v56 = vld [vmem:[%s9875_s17 + $0x718] sm:$0xff]  ;;  %v8539_v62 = vcombine.low %v923_v50, %v927_v52 }
 0x230   : > { %5100 = vmatpush1.bf16.msra.mxu0 %v8331_v59  ;;  %v791_v28 = vld [vmem:[%s9875_s17 + $0x738] sm:$0xff] }
 0x231   : > { %5141 = vmatpush1.bf16.msra.mxu1 %v8459_v6  ;;  %5101 = vmatprep.subr.bf16.mxu0 %v8324_v7  ;;  %v8404_v0 = vcombine.high %v787_v56, %v791_v28  ;;  %v779_v12 = vld [vmem:[%s9875_s17 + $0x6d8] sm:$0xff]  ;;  %v8403_v4 = vcombine.low %v787_v56, %v791_v28 }
 0x232   : > { %5142 = vmatprep.subr.bf16.mxu1 %v8452_v8  ;;  %v783_v10 = vld [vmem:[%s9875_s17 + $0x6f8] sm:$0xff] }
 0x233   : > { %v911_v3 = vld [vmem:[%s9875_s17 + $0xaf8] sm:$0xff]  ;;  %v8396_v59 = vcombine.high %v779_v12, %v783_v10  ;;  %v8395_v13 = vcombine.low %v779_v12, %v783_v10 }
 0x234   : > { %5102 = vmatpush1.bf16.msra.mxu0 %v8323_v16  ;;  %v8524_v6 = vcombine.high %v907_v2, %v911_v3  ;;  %v771_v7 = vld [vmem:[%s9875_s17 + $0x698] sm:$0xff]  ;;  %v8523_v14 = vcombine.low %v907_v2, %v911_v3 }
 0x235   : > { %5143 = vmatpush1.bf16.msra.mxu1 %v8451_v18  ;;  %5103 = vmatprep.subr.bf16.mxu0 %v8316_v19  ;;  %v775_v8 = vld [vmem:[%s9875_s17 + $0x6b8] sm:$0xff] }
 0x236   : > { %5144 = vmatprep.subr.bf16.mxu1 %v8444_v1  ;;  %v899_v9 = vld [vmem:[%s9875_s17 + $0xa98] sm:$0xff]  ;;  %v8388_v16 = vcombine.high %v771_v7, %v775_v8  ;;  %v8387_v24 = vcombine.low %v771_v7, %v775_v8 }
 0x237   : > { %v903_v11 = vld [vmem:[%s9875_s17 + $0xab8] sm:$0xff] }
 0x238   : > { %5104 = vmatpush1.bf16.msra.mxu0 %v8315_v54  ;;  %v8516_v18 = vcombine.high %v899_v9, %v903_v11  ;;  %v763_v19 = vld [vmem:[%s9875_s17 + $0x658] sm:$0xff]  ;;  %v8515_v25 = vcombine.low %v899_v9, %v903_v11 }
 0x239   : > { %5145 = vmatpush1.bf16.msra.mxu1 %v8443_v26  ;;  %5105 = vmatprep.subr.bf16.mxu0 %v8308_v27  ;;  %v767_v1 = vld [vmem:[%s9875_s17 + $0x678] sm:$0xff] }
 0x23a   : > { %5146 = vmatprep.subr.bf16.mxu1 %v8436_v15  ;;  %v891_v43 = vld [vmem:[%s9875_s17 + $0xa58] sm:$0xff]  ;;  %v8380_v54 = vcombine.high %v763_v19, %v767_v1  ;;  %v8379_v20 = vcombine.low %v763_v19, %v767_v1 }
 0x23b   : > { %v895_v22 = vld [vmem:[%s9875_s17 + $0xa78] sm:$0xff] }
 0x23c   : > { %5106 = vmatpush1.bf16.msra.mxu0 %v8307_v31  ;;  %v8508_v26 = vcombine.high %v891_v43, %v895_v22  ;;  %v755_v27 = vld [vmem:[%s9875_s17 + $0x618] sm:$0xff]  ;;  %v8507_v29 = vcombine.low %v891_v43, %v895_v22 }
 0x23d   : > { %5147 = vmatpush1.bf16.msra.mxu1 %v8435_v32  ;;  %5107 = vmatprep.subr.bf16.mxu0 %v8428_v33  ;;  %v759_v15 = vld [vmem:[%s9875_s17 + $0x638] sm:$0xff] }
 0x23e   : > { %5148 = vmatprep.subr.bf16.mxu1 %v8556_v34  ;;  %v883_v48 = vld [vmem:[%s9875_s17 + $0xa18] sm:$0xff]  ;;  %v8372_v31 = vcombine.high %v755_v27, %v759_v15  ;;  %v8371_v38 = vcombine.low %v755_v27, %v759_v15 }
 0x23f   : > { %v887_v55 = vld [vmem:[%s9875_s17 + $0xa38] sm:$0xff] }
 0x240   : > { %5108 = vmatpush2.bf16.msra.mxu0 %v8427_v17  ;;  %v8500_v32 = vcombine.high %v883_v48, %v887_v55  ;;  %v1003_v33 = vld [vmem:[%s9875_s17 + $0xdd8] sm:$0xff]  ;;  %v8499_v39 = vcombine.low %v883_v48, %v887_v55 }
 0x241   : > { %5149 = vmatpush2.bf16.msra.mxu1 %v8555_v42  ;;  %5109 = vmatprep.subr.bf16.mxu0 %v8420_v44  ;;  %v1007_v34 = vld [vmem:[%s9875_s17 + $0xdf8] sm:$0xff] }
 0x242   : > { %5150 = vmatprep.subr.bf16.mxu1 %v8548_v45  ;;  %v1131_v35 = vld [vmem:[%s9875_s17 + $0x11d8] sm:$0xff]  ;;  %v8620_v17 = vcombine.high %v1003_v33, %v1007_v34  ;;  %v8619_v50 = vcombine.low %v1003_v33, %v1007_v34 }
 0x243   : > { %v1135_v51 = vld [vmem:[%s9875_s17 + $0x11f8] sm:$0xff] }
 0x244   : > { %5110 = vmatpush2.bf16.msra.mxu0 %v8419_v53  ;;  %v8748_v42 = vcombine.high %v1131_v35, %v1135_v51  ;;  %v995_v44 = vld [vmem:[%s9875_s17 + $0xd98] sm:$0xff]  ;;  %v8747_v52 = vcombine.low %v1131_v35, %v1135_v51 }
 0x245   : > { %5151 = vmatpush2.bf16.msra.mxu1 %v8547_v36  ;;  %5111 = vmatprep.subr.bf16.mxu0 %v8412_v60  ;;  %v999_v45 = vld [vmem:[%s9875_s17 + $0xdb8] sm:$0xff] }
 0x246   : > { %5152 = vmatprep.subr.bf16.mxu1 %v8540_v40  ;;  %v1123_v23 = vld [vmem:[%s9875_s17 + $0x1198] sm:$0xff]  ;;  %v8612_v53 = vcombine.high %v995_v44, %v999_v45 }
 0x247   : > { %v1127_v49 = vld [vmem:[%s9875_s17 + $0x11b8] sm:$0xff] }
 0x248   : > { %5112 = vmatpush2.bf16.msra.mxu0 %v8411_v61  ;;  %v8740_v36 = vcombine.high %v1123_v23, %v1127_v49  ;;  %v987_v60 = vld [vmem:[%s9875_s17 + $0xd58] sm:$0xff]  ;;  %v8611_v61 = vcombine.low %v995_v44, %v999_v45 }
 0x249   : > { %5153 = vmatpush2.bf16.msra.mxu1 %v8539_v62  ;;  %5113 = vmatprep.subr.bf16.mxu0 %v8404_v0  ;;  %v991_v40 = vld [vmem:[%s9875_s17 + $0xd78] sm:$0xff] }
 0x24a   : > { %5154 = vmatprep.subr.bf16.mxu1 %v8532_v46  ;;  %v1115_v28 = vld [vmem:[%s9875_s17 + $0x1158] sm:$0xff]  ;;  %v8739_v46 = vcombine.low %v1123_v23, %v1127_v49  ;;  %v8604_v12 = vcombine.high %v987_v60, %v991_v40  ;;  %v8603_v7 = vcombine.low %v987_v60, %v991_v40 }
 0x24b   : > { %v1119_v57 = vld [vmem:[%s9875_s17 + $0x1178] sm:$0xff] }
 0x24c   : > { %5114 = vmatpush2.bf16.msra.mxu0 %v8403_v4  ;;  %v979_v2 = vld [vmem:[%s9875_s17 + $0xd18] sm:$0xff]  ;;  %v8731_v9 = vcombine.low %v1115_v28, %v1119_v57 }
 0x24d   : > { %5155 = vmatpush2.bf16.msra.mxu1 %v8531_v5  ;;  %5115 = vmatprep.subr.bf16.mxu0 %v8396_v59  ;;  %v983_v3 = vld [vmem:[%s9875_s17 + $0xd38] sm:$0xff] }
 0x24e   : > { %5156 = vmatprep.subr.bf16.mxu1 %v8524_v6  ;;  %v1107_v5 = vld [vmem:[%s9875_s17 + $0x1118] sm:$0xff]  ;;  %v8596_v11 = vcombine.high %v979_v2, %v983_v3 }
 0x24f   : > { %v1111_v59 = vld [vmem:[%s9875_s17 + $0x1138] sm:$0xff] }
 0x250   : > { %5116 = vmatpush2.bf16.msra.mxu0 %v8395_v13  ;;  %v8724_v13 = vcombine.high %v1107_v5, %v1111_v59  ;;  %v1103_v19 = vld [vmem:[%s9875_s17 + $0x10f8] sm:$0xff]  ;;  %v8723_v1 = vcombine.low %v1107_v5, %v1111_v59 }
 0x251   : > { %5157 = vmatpush2.bf16.msra.mxu1 %v8523_v14  ;;  %5117 = vmatprep.subr.bf16.mxu0 %v8388_v16  ;;  %v971_v14 = vld [vmem:[%s9875_s17 + $0xcd8] sm:$0xff] }
 0x252   : > { %5158 = vmatprep.subr.bf16.mxu1 %v8516_v18  ;;  %v975_v16 = vld [vmem:[%s9875_s17 + $0xcf8] sm:$0xff] }
 0x253   : > { %v1099_v18 = vld [vmem:[%s9875_s17 + $0x10d8] sm:$0xff]  ;;  %v8588_v43 = vcombine.high %v971_v14, %v975_v16  ;;  %v8587_v27 = vcombine.low %v971_v14, %v975_v16 }
 0x254   : > { %5118 = vmatpush2.bf16.msra.mxu0 %v8387_v24  ;;  %v8716_v22 = vcombine.high %v1099_v18, %v1103_v19  ;;  %v963_v24 = vld [vmem:[%s9875_s17 + $0xc98] sm:$0xff]  ;;  %v8715_v15 = vcombine.low %v1099_v18, %v1103_v19 }
 0x255   : > { %5159 = vmatpush2.bf16.msra.mxu1 %v8515_v25  ;;  %5119 = vmatprep.subr.bf16.mxu0 %v8380_v54  ;;  %v967_v25 = vld [vmem:[%s9875_s17 + $0xcb8] sm:$0xff] }
 0x256   : > { %5160 = vmatprep.subr.bf16.mxu1 %v8508_v26  ;;  %v1091_v54 = vld [vmem:[%s9875_s17 + $0x1098] sm:$0xff]  ;;  %v8580_v48 = vcombine.high %v963_v24, %v967_v25  ;;  %v8579_v33 = vcombine.low %v963_v24, %v967_v25 }
 0x257   : > { %v1095_v26 = vld [vmem:[%s9875_s17 + $0x10b8] sm:$0xff] }
 0x258   : > { %5120 = vmatpush2.bf16.msra.mxu0 %v8379_v20  ;;  %v8708_v55 = vcombine.high %v1091_v54, %v1095_v26  ;;  %v955_v20 = vld [vmem:[%s9875_s17 + $0xc58] sm:$0xff]  ;;  %v8707_v34 = vcombine.low %v1091_v54, %v1095_v26 }
 0x259   : > { %5161 = vmatpush2.bf16.msra.mxu1 %v8507_v29  ;;  %5121 = vmatprep.subr.bf16.mxu0 %v8372_v31  ;;  %v959_v29 = vld [vmem:[%s9875_s17 + $0xc78] sm:$0xff] }
 0x25a   : > { %5162 = vmatprep.subr.bf16.mxu1 %v8500_v32  ;;  %v1083_v31 = vld [vmem:[%s9875_s17 + $0x1058] sm:$0xff]  ;;  %v8572_v35 = vcombine.high %v955_v20, %v959_v29  ;;  %v8571_v44 = vcombine.low %v955_v20, %v959_v29 }
 0x25b   : > { %v1087_v32 = vld [vmem:[%s9875_s17 + $0x1078] sm:$0xff] }
 0x25c   : > { %5122 = vmatpush2.bf16.msra.mxu0 %v8371_v38  ;;  %v8700_v51 = vcombine.high %v1083_v31, %v1087_v32  ;;  %v947_v38 = vld [vmem:[%s9875_s17 + $0xc18] sm:$0xff]  ;;  %v8699_v45 = vcombine.low %v1083_v31, %v1087_v32 }
 0x25d   : > { %5163 = vmatpush2.bf16.msra.mxu1 %v8499_v39  ;;  %5173 = vmatprep.subr.bf16.mxu0 %v8620_v17  ;;  %v951_v39 = vld [vmem:[%s9875_s17 + $0xc38] sm:$0xff] }
 0x25e   : > { %5214 = vmatprep.subr.bf16.mxu1 %v8748_v42  ;;  %v1075_v17 = vld [vmem:[%s9875_s17 + $0x1018] sm:$0xff]  ;;  %v8564_v23 = vcombine.high %v947_v38, %v951_v39  ;;  %v8563_v60 = vcombine.low %v947_v38, %v951_v39 }
 0x25f   : > { %v4879_v56 = vpop.f32.mrf.mxu0  ;;  %5124 = vmatmul.mubr.bf16.vlgmr.msra.gmra.mxu0 %v9975_v21  ;;  %v8732_v21 = vcombine.high %v1115_v28, %v1119_v57  ;;  %v1079_v42 = vld [vmem:[%s9875_s17 + $0x1038] sm:$0xff] }
 0x260   : > { %v4920_v58 = vpop.f32.mrf.mxu1  ;;  %5165 = vmatmul.mubr.bf16.vlgmr.msra.gmra.mxu1 %v10056_v37  ;;  %5174 = vmatpush1.bf16.msra.mxu0 %v8619_v50  ;;  %v8692_v49 = vcombine.high %v1075_v17, %v1079_v42  ;;  %v1067_v50 = vld [vmem:[%s9875_s17 + $0xfd8] sm:$0xff]  ;;  %v8691_v40 = vcombine.low %v1075_v17, %v1079_v42 }
 0x261   : > { %v10593_v62 = vadd.f32 %v4920_v58, %v4879_v56  ;;  %5215 = vmatpush1.bf16.msra.mxu1 %v8747_v52  ;;  %v4881_v0 = vpop.f32.mrf.mxu0  ;;  %5175 = vmatprep.subr.bf16.mxu0 %v8612_v53  ;;  %v1071_v52 = vld [vmem:[%s9875_s17 + $0xff8] sm:$0xff] }
 0x262   : > { %v4922_v10 = vpop.f32.mrf.mxu1  ;;  %5216 = vmatprep.subr.bf16.mxu1 %v8740_v36  ;;  %5205 = vmatprep.mubr.bf16.mxu0 %v9991_v30  ;;  %v1195_v53 = vld [vmem:[%s9875_s17 + $0x13d8] sm:$0xff]  ;;  %v8684_v56 = vcombine.high %v1067_v50, %v1071_v52 }
 0x263   : > { %v10598_v4 = vadd.f32 %v4922_v10, %v4881_v0  ;;  %v4883_v37 = vpop.f32.mrf.mxu0  ;;  %5246 = vmatprep.mubr.bf16.mxu1 %v10071_v47  ;;  %v8595_v47 = vcombine.low %v979_v2, %v983_v3  ;;  %v1199_v36 = vld [vmem:[%s9875_s17 + $0x13f8] sm:$0xff] }
 0x264   : > { %v4924_v6 = vpop.f32.mrf.mxu1  ;;  %5176 = vmatpush1.bf16.msra.mxu0 %v8611_v61  ;;  %v8812_v28 = vcombine.high %v1195_v53, %v1199_v36  ;;  %v1059_v57 = vld [vmem:[%s9875_s17 + $0xf98] sm:$0xff] }
 0x265   : > { %5217 = vmatpush1.bf16.msra.mxu1 %v8739_v46  ;;  %v4884_v8 = vpop.f32.mrf.mxu0  ;;  %5177 = vmatprep.subr.bf16.mxu0 %v8604_v12  ;;  %v1063_v58 = vld [vmem:[%s9875_s17 + $0xfb8] sm:$0xff]  ;;  %v8683_v46 = vcombine.low %v1067_v50, %v1071_v52  ;;  %v8811_v12 = vcombine.low %v1195_v53, %v1199_v36 }
 0x266   : > { %v4925_v30 = vpop.f32.mrf.mxu1  ;;  %5218 = vmatprep.subr.bf16.mxu1 %v8732_v21  ;;  %v1187_v61 = vld [vmem:[%s9875_s17 + $0x1398] sm:$0xff]  ;;  %v8676_v10 = vcombine.high %v1059_v57, %v1063_v58  ;;  %v8675_v59 = vcombine.low %v1059_v57, %v1063_v58 }
 0x267   : > { %v1191_v0 = vld [vmem:[%s9875_s17 + $0x13b8] sm:$0xff] }
 0x268   : > { %5178 = vmatpush1.bf16.msra.mxu0 %v8603_v7  ;;  %v8804_v21 = vcombine.high %v1187_v61, %v1191_v0  ;;  %v1051_v2 = vld [vmem:[%s9875_s17 + $0xf58] sm:$0xff]  ;;  %v8803_v6 = vcombine.low %v1187_v61, %v1191_v0 }
 0x269   : > { %5219 = vmatpush1.bf16.msra.mxu1 %v8731_v9  ;;  %5179 = vmatprep.subr.bf16.mxu0 %v8596_v11  ;;  %v1055_v3 = vld [vmem:[%s9875_s17 + $0xf78] sm:$0xff] }
 0x26a   : > { %5220 = vmatprep.subr.bf16.mxu1 %v8724_v13  ;;  %v1179_v37 = vld [vmem:[%s9875_s17 + $0x1358] sm:$0xff]  ;;  %v8668_v7 = vcombine.high %v1051_v2, %v1055_v3  ;;  %v8667_v14 = vcombine.low %v1051_v2, %v1055_v3  ;;  %v551_v3 = vld [vmem:[#allocation2 + $0x8] sm:$0xff] }
 0x26b   : > { %v1183_v5 = vld [vmem:[%s9875_s17 + $0x1378] sm:$0xff] }
 0x26c   : > { %5180 = vmatpush1.bf16.msra.mxu0 %v8595_v47  ;;  %v8796_v8 = vcombine.high %v1179_v37, %v1183_v5  ;;  %v1043_v9 = vld [vmem:[%s9875_s17 + $0xf18] sm:$0xff]  ;;  %v8795_v16 = vcombine.low %v1179_v37, %v1183_v5 }
 0x26d   : > { %5221 = vmatpush1.bf16.msra.mxu1 %v8723_v1  ;;  %5181 = vmatprep.subr.bf16.mxu0 %v8588_v43  ;;  %v1047_v11 = vld [vmem:[%s9875_s17 + $0xf38] sm:$0xff] }
 0x26e   : > { %5222 = vmatprep.subr.bf16.mxu1 %v8716_v22  ;;  %v1171_v30 = vld [vmem:[%s9875_s17 + $0x1318] sm:$0xff]  ;;  %v8660_v18 = vcombine.high %v1043_v9, %v1047_v11  ;;  %v8659_v24 = vcombine.low %v1043_v9, %v1047_v11 }
 0x26f   : > { %v1175_v13 = vld [vmem:[%s9875_s17 + $0x1338] sm:$0xff] }
 0x270   : > { %5182 = vmatpush1.bf16.msra.mxu0 %v8587_v27  ;;  %v8788_v19 = vcombine.high %v1171_v30, %v1175_v13  ;;  %v1035_v47 = vld [vmem:[%s9875_s17 + $0xed8] sm:$0xff]  ;;  %v8787_v25 = vcombine.low %v1171_v30, %v1175_v13 }
 0x271   : > { %5223 = vmatpush1.bf16.msra.mxu1 %v8715_v15  ;;  %5183 = vmatprep.subr.bf16.mxu0 %v8580_v48  ;;  %v1039_v1 = vld [vmem:[%s9875_s17 + $0xef8] sm:$0xff] }
 0x272   : > { %5224 = vmatprep.subr.bf16.mxu1 %v8708_v55  ;;  %v1163_v43 = vld [vmem:[%s9875_s17 + $0x12d8] sm:$0xff]  ;;  %v8652_v54 = vcombine.high %v1035_v47, %v1039_v1  ;;  %v8651_v20 = vcombine.low %v1035_v47, %v1039_v1 }
 0x273   : > { %v1167_v22 = vld [vmem:[%s9875_s17 + $0x12f8] sm:$0xff] }
 0x274   : > { %5184 = vmatpush1.bf16.msra.mxu0 %v8579_v33  ;;  %v8780_v26 = vcombine.high %v1163_v43, %v1167_v22  ;;  %v1027_v27 = vld [vmem:[%s9875_s17 + $0xe98] sm:$0xff]  ;;  %v8779_v29 = vcombine.low %v1163_v43, %v1167_v22 }
 0x275   : > { %5225 = vmatpush1.bf16.msra.mxu1 %v8707_v34  ;;  %5185 = vmatprep.subr.bf16.mxu0 %v8572_v35  ;;  %v1031_v15 = vld [vmem:[%s9875_s17 + $0xeb8] sm:$0xff] }
 0x276   : > { %5226 = vmatprep.subr.bf16.mxu1 %v8700_v51  ;;  %v1155_v48 = vld [vmem:[%s9875_s17 + $0x1298] sm:$0xff]  ;;  %v8644_v31 = vcombine.high %v1027_v27, %v1031_v15  ;;  %v8643_v38 = vcombine.low %v1027_v27, %v1031_v15 }
 0x277   : > { %v1159_v55 = vld [vmem:[%s9875_s17 + $0x12b8] sm:$0xff] }
 0x278   : > { %5186 = vmatpush1.bf16.msra.mxu0 %v8571_v44  ;;  %v8772_v32 = vcombine.high %v1155_v48, %v1159_v55  ;;  %v1019_v33 = vld [vmem:[%s9875_s17 + $0xe58] sm:$0xff]  ;;  %v8771_v39 = vcombine.low %v1155_v48, %v1159_v55  ;;  %v553_v55 = vld [vmem:[#allocation2 + $0x28] sm:$0xff] }
 0x279   : > { %5227 = vmatpush1.bf16.msra.mxu1 %v8699_v45  ;;  %5187 = vmatprep.subr.bf16.mxu0 %v8564_v23  ;;  %v1023_v34 = vld [vmem:[%s9875_s17 + $0xe78] sm:$0xff] }
 0x27a   : > { %5228 = vmatprep.subr.bf16.mxu1 %v8692_v49  ;;  %v1147_v35 = vld [vmem:[%s9875_s17 + $0x1258] sm:$0xff]  ;;  %v8636_v17 = vcombine.high %v1019_v33, %v1023_v34  ;;  %v8635_v50 = vcombine.low %v1019_v33, %v1023_v34 }
 0x27b   : > { %v1151_v51 = vld [vmem:[%s9875_s17 + $0x1278] sm:$0xff] }
 0x27c   : > { %5188 = vmatpush1.bf16.msra.mxu0 %v8563_v60  ;;  %v8764_v42 = vcombine.high %v1147_v35, %v1151_v51  ;;  %v1011_v44 = vld [vmem:[%s9875_s17 + $0xe18] sm:$0xff]  ;;  %v8763_v52 = vcombine.low %v1147_v35, %v1151_v51 }
 0x27d   : > { %5229 = vmatpush1.bf16.msra.mxu1 %v8691_v40  ;;  %5189 = vmatprep.subr.bf16.mxu0 %v8684_v56  ;;  %v1015_v45 = vld [vmem:[%s9875_s17 + $0xe38] sm:$0xff] }
 0x27e   : > { %5230 = vmatprep.subr.bf16.mxu1 %v8812_v28  ;;  %v1139_v23 = vld [vmem:[%s9875_s17 + $0x1218] sm:$0xff]  ;;  %v8628_v53 = vcombine.high %v1011_v44, %v1015_v45  ;;  %v8627_v60 = vcombine.low %v1011_v44, %v1015_v45 }
 0x27f   : > { %v1143_v49 = vld [vmem:[%s9875_s17 + $0x1238] sm:$0xff] }
 0x280   : > { %5190 = vmatpush2.bf16.msra.mxu0 %v8683_v46  ;;  %v8756_v36 = vcombine.high %v1139_v23, %v1143_v49  ;;  %v8755_v40 = vcombine.low %v1139_v23, %v1143_v49  ;;  %v554_v33 = vld [vmem:[#allocation2 + $0x38] sm:$0xff] }
 0x281   : > { %5231 = vmatpush2.bf16.msra.mxu1 %v8811_v12  ;;  %5191 = vmatprep.subr.bf16.mxu0 %v8676_v10 }
 0x282   : > { %5232 = vmatprep.subr.bf16.mxu1 %v8804_v21 }
 0x284   : > { %5192 = vmatpush2.bf16.msra.mxu0 %v8675_v59 }
 0x285   : > { %5233 = vmatpush2.bf16.msra.mxu1 %v8803_v6  ;;  %5193 = vmatprep.subr.bf16.mxu0 %v8668_v7 }
 0x286   : > { %5234 = vmatprep.subr.bf16.mxu1 %v8796_v8 }
 0x288   : > { %5194 = vmatpush2.bf16.msra.mxu0 %v8667_v14 }
 0x289   : > { %5235 = vmatpush2.bf16.msra.mxu1 %v8795_v16  ;;  %5195 = vmatprep.subr.bf16.mxu0 %v8660_v18 }
 0x28a   : > { %5236 = vmatprep.subr.bf16.mxu1 %v8788_v19 }
 0x28c   : > { %5196 = vmatpush2.bf16.msra.mxu0 %v8659_v24 }
 0x28d   : > { %5237 = vmatpush2.bf16.msra.mxu1 %v8787_v25  ;;  %5197 = vmatprep.subr.bf16.mxu0 %v8652_v54 }
 0x28e   : > { %5238 = vmatprep.subr.bf16.mxu1 %v8780_v26 }
 0x290   : > { %5198 = vmatpush2.bf16.msra.mxu0 %v8651_v20 }
 0x291   : > { %5239 = vmatpush2.bf16.msra.mxu1 %v8779_v29  ;;  %5199 = vmatprep.subr.bf16.mxu0 %v8644_v31 }
 0x292   : > { %5240 = vmatprep.subr.bf16.mxu1 %v8772_v32 }
 0x294   : > { %5200 = vmatpush2.bf16.msra.mxu0 %v8643_v38 }
 0x295   : > { %5241 = vmatpush2.bf16.msra.mxu1 %v8771_v39  ;;  %5201 = vmatprep.subr.bf16.mxu0 %v8636_v17 }
 0x296   : > { %5242 = vmatprep.subr.bf16.mxu1 %v8764_v42 }
 0x298   : > { %5202 = vmatpush2.bf16.msra.mxu0 %v8635_v50 }
 0x299   : > { %5243 = vmatpush2.bf16.msra.mxu1 %v8763_v52  ;;  %5203 = vmatprep.subr.bf16.mxu0 %v8628_v53 }
 0x29a   : > { %5244 = vmatprep.subr.bf16.mxu1 %v8756_v36 }
 0x29c   : > { %5204 = vmatpush2.bf16.msra.mxu0 %v8627_v60 }
 0x29d   : > { %5245 = vmatpush2.bf16.msra.mxu1 %v8755_v40 }
 0x29f   : > { %v4961_v56 = vpop.f32.mrf.mxu0  ;;  %5206 = vmatmul.mubr.bf16.vlgmr.msra.gmra.mxu0 %v10065_v41  ;;  %v552_v41 = vld [vmem:[#allocation2 + $0x20] sm:$0xff] }
 0x2a0   : > { %v5002_v28 = vpop.f32.mrf.mxu1  ;;  %5247 = vmatmul.mubr.bf16.vlgmr.msra.gmra.mxu1 %v10139_v63  ;;  %v4962_v10 = vadd.f32 %v4961_v56, %v10593_v62 }
 0x2a1   : > { %v4963_v57 = vpop.f32.mrf.mxu0 }
 0x2a2   : > { %v5004_v58 = vpop.f32.mrf.mxu1  ;;  %v4964_v21 = vadd.f32 %v4963_v57, %v10598_v4  ;;  %v5003_v2 = vadd.f32 %v5002_v28, %v4962_v10 }
 0x2a3   : > { %v4965_v61 = vpop.f32.mrf.mxu0 }
 0x2a4   : > { %v5006_v0 = vpop.f32.mrf.mxu1  ;;  %v5005_v5 = vadd.f32 %v5004_v58, %v4964_v21 }
 0x2a5   : > { %v4966_v46 = vpop.f32.mrf.mxu0 }
 0x2a6   : > { %v5007_v12 = vpop.f32.mrf.mxu1 }
 0x2df   : > { %v5043_v37 = vpop.f32.mrf.mxu0 }
 0x2e0   : > { %v5044_v59 = vadd.f32 %v5043_v37, %v5003_v2  ;;  %v5084_v6 = vpop.f32.mrf.mxu1 }
 0x2e1   : > { %v5045_v7 = vpop.f32.mrf.mxu0 }
 0x2e2   : > { %v5259_v8 = vadd.f32 %v5044_v59, %v551_v3  ;;  %v5046_v63 = vadd.f32 %v5045_v7, %v5005_v5  ;;  %v5086_v9 = vpop.f32.mrf.mxu1 }
 0x2e3   : > { %v5047_v11 = vpop.f32.mrf.mxu0 }
 0x2e4   : > { %5267 = vst [vmem:[#allocation2 + $0x8] sm:$0xff] %v5259_v8  ;;  %v5260_v30 = vadd.f32 %v5046_v63, %v552_v41  ;;  %v5088_v13 = vpop.f32.mrf.mxu1 }
 0x2e5   : > { %v5048_v14 = vpop.f32.mrf.mxu0 }
 0x2e6   : > { %5268 = vst [vmem:[#allocation2 + $0x20] sm:$0xff] %v5260_v30  ;;  %v5089_v62 = vpop.f32.mrf.mxu1 }
 0x31f   : > { %v5125_v16 = vpop.f32.mrf.mxu0 }
 0x320   : > { %v5166_v4 = vpop.f32.mrf.mxu1  ;;  %v5126_v24 = vadd.f32 %v5125_v16, %v5084_v6 }
 0x321   : > { %v5127_v18 = vpop.f32.mrf.mxu0 }
 0x322   : > { %v5168_v19 = vpop.f32.mrf.mxu1  ;;  %v5128_v25 = vadd.f32 %v5127_v18, %v5086_v9  ;;  %v5167_v54 = vadd.f32 %v5166_v4, %v5126_v24 }
 0x323   : > { %v5129_v47 = vpop.f32.mrf.mxu0 }
 0x324   : > { %v5170_v1 = vpop.f32.mrf.mxu1  ;;  %v5169_v27 = vadd.f32 %v5168_v19, %v5128_v25 }
 0x325   : > { %v5130_v43 = vpop.f32.mrf.mxu0 }
 0x326   : > { %v5171_v22 = vpop.f32.mrf.mxu1 }
 0x35f   : > { %v5207_v26 = vpop.f32.mrf.mxu0 }
 0x360   : > { %v5208_v15 = vadd.f32 %v5207_v26, %v5167_v54  ;;  %v5248_v48 = vpop.f32.mrf.mxu1 }
 0x361   : > { %v5209_v20 = vpop.f32.mrf.mxu0 }
 0x362   : > { %v5249_v29 = vadd.f32 %v5248_v48, %v5208_v15  ;;  %v5210_v31 = vadd.f32 %v5209_v20, %v5169_v27  ;;  %v5250_v32 = vpop.f32.mrf.mxu1 }
 0x363   : > { %v5211_v34 = vpop.f32.mrf.mxu0 }
 0x364   : > { %v5261_v35 = vadd.f32 %v5249_v29, %v553_v55  ;;  %v5251_v51 = vadd.f32 %v5250_v32, %v5210_v31  ;;  %v5252_v38 = vpop.f32.mrf.mxu1  ;;  %5274 = sbr.rel (%p8813_p6) target bundleno = 2166 (0x876), region = 92 }
 0x365   : > { %v5212_v39 = vpop.f32.mrf.mxu0 }
 0x366   : > { %5269 = vst [vmem:[#allocation2 + $0x28] sm:$0xff] %v5261_v35  ;;  %v5262_v17 = vadd.f32 %v5251_v51, %v554_v33  ;;  %v5253_v42 = vpop.f32.mrf.mxu1 }
 0x368   : > { %5270 = vst [vmem:[#allocation2 + $0x38] sm:$0xff] %v5262_v17 }
 0x369   : > { %v9307_v44 = vld [vmem:[%s11768_s2 + $0x78] sm:$0xff]   ;;  %v9768_v45 = vmov 0.0   ;;  %vm5449_vm0 = vcmask 1045504   ;;  %v9309_v49 = vld [vmem:[%s11768_s2 + $0x90] sm:$0x3f]   ;;  %vm9769_vm1 = vmmov 0   ;;  %v5544_v20 = vlaneseq }
 0x36a   : > { %9236 = vmatprep.subr.bf16.mxu1 %v9768_v45  ;;  %v9308_v23 = vld [vmem:[%s11768_s2 + $0x38] sm:$0xff]   ;;  %9149 = vmatprep.subr.bf16.mxu0 %v9307_v44  ;;  %v9310_v50 = vld [vmem:[%s11768_s2 + $0x70] sm:$0xff]   ;;  %v5451_v52 = vsel %vm5449_vm0, %v9309_v49, 0  ;;  %v9312_v36 = vld [vmem:[%s11768_s2 + $0x88] sm:$0xff]   ;;  %vm5445_vm2 = vcmask 359424   ;;  %vm8000_vm3 = vcmask 523264  }
 0x36b   : > { %9150 = vmatpush3.bf16.msra.mxu0 %v9308_v23  ;;  %v9311_v53 = vld [vmem:[%s11768_s2 + $0x30] sm:$0xff]   ;;  %9242 = vmatprep.mubr.msk.bf16.mxu1 %vm9769_vm1, %v9768_v45  ;;  %v9313_v60 = vld [vmem:[%s11768_s2 + $0x68] sm:$0xff]   ;;  %v9315_v56 = vld [vmem:[%s11768_s2 + $0x80] sm:$0xff]   ;;  %v10817_v34 = vshrl.u32 %v5544_v20, 7  ;;  %vm8069_vm4 = vcmask 261120   ;;  %vm8113_vm5 = vcmask 220160  }
 0x36c   : > { %9237 = vmatpush3.bf16.msra.mxu1 %v5451_v52  ;;  %9151 = vmatprep.subr.bf16.mxu0 %v9310_v50  ;;  %v9314_v40 = vld [vmem:[%s11768_s2 + $0x28] sm:$0xff]   ;;  %v9316_v28 = vld [vmem:[%s11768_s2 + $0x60] sm:$0xff]   ;;  %v9322_v46 = vld [vmem:[%s11768_s2 + $0x58] sm:$0xff]  }
 0x36d   : > { %9238 = vmatprep.subr.bf16.mxu1 %v9768_v45  ;;  %v9317_v57 = vld [vmem:[%s11772_s6 + $0xe0] ss:$16 sps:$4 sm:$0xff]   ;;  %v9319_v58 = vld [vmem:[%s11772_s6 + $0xe4] ss:$16 sps:$4 sm:$0xff]   ;;  %v9321_v0 = vld [vmem:[%s11785_s18 + $0x8] ss:$0 sps:$4 sm:$0xff]  }
 0x36e   : > { %v9320_v61 = vld [vmem:[%s11768_s2 + $0x20] sm:$0xff]   ;;  %v9326_v21 = vld [vmem:[%s11768_s2 + $0x18] sm:$0xff]   ;;  %v9327_v2 = vld [vmem:[%s11768_s2 + $0x50] sm:$0xff]   ;;  %v5550_v17 = vsub.s32 1, %v10817_v34  ;;  %v5562_v44 = vsub.s32 4, %v10817_v34  ;;  %v5570_v23 = vsub.s32 6, %v10817_v34 }
 0x36f   : > { %9152 = vmatpush3.bf16.msra.mxu0 %v9311_v53  ;;  %v9323_v12 = vld [vmem:[%s11772_s6 + $0xc0] ss:$16 sps:$4 sm:$0xff]   ;;  %v9325_v10 = vld [vmem:[%s11772_s6 + $0xc4] ss:$16 sps:$4 sm:$0xff]   ;;  %v9332_v5 = vld [vmem:[%s11768_s2 + $0x48] sm:$0xff]  }
 0x370   : > { %9153 = vmatprep.subr.bf16.mxu0 %v9313_v60  ;;  %9239 = vmatpush3.bf16.msra.mxu1 %v9312_v36  ;;  %v9330_v3 = vld [vmem:[%s11772_s6 + $0xa4] ss:$16 sps:$4 sm:$0xff]   ;;  %v9328_v59 = vld [vmem:[%s11772_s6 + $0xa0] ss:$16 sps:$4 sm:$0xff]   ;;  %v9336_v41 = vld [vmem:[%s11768_s2 + $0x8] sm:$0xff]  }
 0x371   : > { %9240 = vmatprep.subr.bf16.mxu1 %v9768_v45  ;;  %v9331_v37 = vld [vmem:[%s11768_s2 + $0x10] sm:$0xff]   ;;  %v9337_v7 = vld [vmem:[%s11768_s2 + $0x40] sm:$0xff]  }
 0x372   : > { %v9335_v6 = vld [vmem:[%s11772_s6 + $0x84] ss:$16 sps:$4 sm:$0xff]   ;;  %v9333_v8 = vld [vmem:[%s11772_s6 + $0x80] ss:$16 sps:$4 sm:$0xff]  }
 0x373   : > { %9154 = vmatpush3.bf16.msra.mxu0 %v9314_v40  ;;  %v9340_v63 = vld [vmem:[%s11772_s6 + $0x64] ss:$16 sps:$4 sm:$0xff]   ;;  %v9338_v13 = vld [vmem:[%s11772_s6 + $0x60] ss:$16 sps:$4 sm:$0xff]  }
 0x374   : > { %9155 = vmatprep.subr.bf16.mxu0 %v9316_v28  ;;  %9241 = vmatpush3.bf16.msra.mxu1 %v9315_v56  ;;  %v5275_v9 = vld [vmem:[%s11785_s18] sm:$0xff] }
 0x375   : > { %7166 = vmatprep.subr.bf16.mxu1 %v9319_v58  ;;  %v9341_v11 = vld [vmem:[%s11768_s2] sm:$0xff]   ;;  %v8816_v30 = vcombine.high %v5275_v9, %v5275_v9  ;;  %v8815_v62 = vcombine.low %v5275_v9, %v5275_v9 }
 0x376   : > { %v9349_v14 = vld [vmem:[%s11772_s6 + $0x2e4] ss:$16 sps:$4 sm:$0xff]   ;;  %v9347_v4 = vld [vmem:[%s11772_s6 + $0x2e0] ss:$16 sps:$4 sm:$0xff]  }
 0x377   : > { %9156 = vmatpush3.bf16.msra.mxu0 %v9320_v61  ;;  %9243 = vmatmul.mubr.msk.bf16.vlgmr.msra.gmra.mxu1 %vm5445_vm2, %v9321_v0  ;;  %v9346_v16 = vld [vmem:[%s11772_s6 + $0x44] ss:$16 sps:$4 sm:$0xff]   ;;  %v9344_v19 = vld [vmem:[%s11772_s6 + $0x40] ss:$16 sps:$4 sm:$0xff]   ;;  %v5546_v0 = vsub.s32 0, %v10817_v34 }
 0x378   : > { %9157 = vmatprep.subr.bf16.mxu0 %v9322_v46  ;;  %7167 = vmatpush1.bf16.msra.mxu1 %v9317_v57  ;;  %v9355_v18 = vld [vmem:[%s11772_s6 + $0x2c4] ss:$16 sps:$4 sm:$0xff]   ;;  %v9353_v1 = vld [vmem:[%s11772_s6 + $0x2c0] ss:$16 sps:$4 sm:$0xff]  }
 0x379   : > { %7168 = vmatprep.subr.bf16.mxu1 %v9325_v10  ;;  %5485 = vmatprep.mubr.bf16.mxu0 %v8816_v30  ;;  %v9352_v47 = vld [vmem:[%s11772_s6 + $0x24] ss:$16 sps:$4 sm:$0xff]   ;;  %v9350_v22 = vld [vmem:[%s11772_s6 + $0x20] ss:$16 sps:$4 sm:$0xff]  }
 0x37a   : > { %v9361_v43 = vld [vmem:[%s11772_s6 + $0x2a4] ss:$16 sps:$4 sm:$0xff]   ;;  %v9359_v25 = vld [vmem:[%s11772_s6 + $0x2a0] ss:$16 sps:$4 sm:$0xff]  }
 0x37b   : > { %9158 = vmatpush3.bf16.msra.mxu0 %v9326_v21  ;;  %v9358_v24 = vld [vmem:[%s11772_s6 + $0x4] ss:$16 sps:$4 sm:$0xff]   ;;  %v9356_v26 = vld [vmem:[%s11772_s6] ss:$16 sps:$4 sm:$0xff]  }
 0x37c   : > { %9159 = vmatprep.subr.bf16.mxu0 %v9327_v2  ;;  %7169 = vmatpush1.bf16.msra.mxu1 %v9323_v12  ;;  %v9367_v54 = vld [vmem:[%s11772_s6 + $0x284] ss:$16 sps:$4 sm:$0xff]   ;;  %v9365_v15 = vld [vmem:[%s11772_s6 + $0x280] ss:$16 sps:$4 sm:$0xff]  }
 0x37d   : > { %7170 = vmatprep.subr.bf16.mxu1 %v9330_v3  ;;  %v9364_v27 = vld [vmem:[%s11772_s6 + $0x1e4] ss:$16 sps:$4 sm:$0xff]   ;;  %v9362_v55 = vld [vmem:[%s11772_s6 + $0x1e0] ss:$16 sps:$4 sm:$0xff]   ;;  %v5558_v3 = vsub.s32 3, %v10817_v34 }
 0x37e   : > { %v9373_v48 = vld [vmem:[%s11772_s6 + $0x264] ss:$16 sps:$4 sm:$0xff]   ;;  %v9371_v31 = vld [vmem:[%s11772_s6 + $0x260] ss:$16 sps:$4 sm:$0xff]  }
 0x37f   : > { %9160 = vmatpush3.bf16.msra.mxu0 %v9331_v37  ;;  %v9370_v29 = vld [vmem:[%s11772_s6 + $0x1c4] ss:$16 sps:$4 sm:$0xff]   ;;  %v9368_v33 = vld [vmem:[%s11772_s6 + $0x1c0] ss:$16 sps:$4 sm:$0xff]  }
 0x380   : > { %9161 = vmatprep.subr.bf16.mxu0 %v9332_v5  ;;  %7171 = vmatpush1.bf16.msra.mxu1 %v9328_v59  ;;  %v9379_v32 = vld [vmem:[%s11772_s6 + $0x244] ss:$16 sps:$4 sm:$0xff]   ;;  %v9377_v51 = vld [vmem:[%s11772_s6 + $0x240] ss:$16 sps:$4 sm:$0xff]  }
 0x381   : > { %7172 = vmatprep.subr.bf16.mxu1 %v9335_v6  ;;  %v9376_v35 = vld [vmem:[%s11772_s6 + $0x1a4] ss:$16 sps:$4 sm:$0xff]   ;;  %v9374_v39 = vld [vmem:[%s11772_s6 + $0x1a0] ss:$16 sps:$4 sm:$0xff]  }
 0x382   : > { %v9385_v38 = vld [vmem:[%s11772_s6 + $0x224] ss:$16 sps:$4 sm:$0xff]   ;;  %v9383_v49 = vld [vmem:[%s11772_s6 + $0x220] ss:$16 sps:$4 sm:$0xff]  }
 0x383   : > { %9162 = vmatpush3.bf16.msra.mxu0 %v9336_v41  ;;  %v9382_v42 = vld [vmem:[%s11772_s6 + $0x184] ss:$16 sps:$4 sm:$0xff]   ;;  %v9380_v36 = vld [vmem:[%s11772_s6 + $0x180] ss:$16 sps:$4 sm:$0xff]  }
 0x384   : > { %9163 = vmatprep.subr.bf16.mxu0 %v9337_v7  ;;  %7173 = vmatpush1.bf16.msra.mxu1 %v9333_v8  ;;  %v9391_v50 = vld [vmem:[%s11772_s6 + $0x204] ss:$16 sps:$4 sm:$0xff]   ;;  %v9389_v57 = vld [vmem:[%s11772_s6 + $0x200] ss:$16 sps:$4 sm:$0xff]  }
 0x385   : > { %7174 = vmatprep.subr.bf16.mxu1 %v9340_v63  ;;  %v5535_v52 = vld [vmem:[#allocation2] sm:$0xff]  ;;  %v5534_v6 = vld [vmem:[#allocation2 + $0x30] sm:$0xff] }
 0x386   : > { %v10846_v53 = vld [vmem:[%s11771_s5] sm:$0xff] }
 0x387   : > { %9164 = vmatpush3.bf16.msra.mxu0 %v9341_v11  ;;  %v5551_v60 = vrot.slane %v10846_v53, %v5550_v17  ;;  %v9388_v40 = vld [vmem:[%s11772_s6 + $0x164] ss:$16 sps:$4 sm:$0xff]   ;;  %v10858_v56 = vrot.slane %v10846_v53, %v5562_v44  ;;  %v10861_v28 = vrot.slane %v10846_v53, %v5570_v23  ;;  %v9386_v46 = vld [vmem:[%s11772_s6 + $0x160] ss:$16 sps:$4 sm:$0xff]   ;;  %v5547_v59 = vrot.slane %v10846_v53, %v5546_v0 }
 0x388   : > { %7207 = vmatprep.subr.bf16.mxu0 %v9349_v14  ;;  %7175 = vmatpush1.bf16.msra.mxu1 %v9338_v13  ;;  %v9397_v61 = vld [vmem:[%s11772_s6 + $0x3e4] ss:$16 sps:$4 sm:$0xff]   ;;  %v9395_v21 = vld [vmem:[%s11772_s6 + $0x3e0] ss:$16 sps:$4 sm:$0xff]   ;;  %v5559_v8 = vrot.slane %v10846_v53, %v5558_v3 }
 0x389   : > { %7176 = vmatprep.subr.bf16.mxu1 %v9346_v16  ;;  %v5585_v58 = vadd.f32 %v5551_v60, %v5535_v52  ;;  %v9394_v10 = vld [vmem:[%s11772_s6 + $0x144] ss:$16 sps:$4 sm:$0xff]   ;;  %v9392_v37 = vld [vmem:[%s11772_s6 + $0x140] ss:$16 sps:$4 sm:$0xff]   ;;  %v5584_v9 = vadd.f32 %v5547_v59, %v5534_v6 }
 0x38a   : > { %5486 = vmatmul.mubr.bf16.vlgmr.msra.gmra.mxu0 %v8815_v62  ;;  %v9403_v5 = vld [vmem:[%s11772_s6 + $0x3c4] ss:$16 sps:$4 sm:$0xff]   ;;  %v9401_v7 = vld [vmem:[%s11772_s6 + $0x3c0] ss:$16 sps:$4 sm:$0xff]  }
 0x38b   : > { %7208 = vmatpush1.bf16.msra.mxu0 %v9347_v4  ;;  %v5593_v12 = vmax.f32 %v5585_v58, 0.0  ;;  %v9400_v41 = vld [vmem:[%s11772_s6 + $0x124] ss:$16 sps:$4 sm:$0xff]   ;;  %v9398_v11 = vld [vmem:[%s11772_s6 + $0x120] ss:$16 sps:$4 sm:$0xff]   ;;  %v5592_v4 = vmax.f32 %v5584_v9, 0.0 }
 0x38c   : > { %7209 = vmatprep.subr.bf16.mxu0 %v9355_v18  ;;  %7177 = vmatpush1.bf16.msra.mxu1 %v9344_v19  ;;  %v9409_v63 = vld [vmem:[%s11772_s6 + $0x3a4] ss:$16 sps:$4 sm:$0xff]   ;;  %v9407_v14 = vld [vmem:[%s11772_s6 + $0x3a0] ss:$16 sps:$4 sm:$0xff]  }
 0x38d   : > { %7178 = vmatprep.subr.bf16.mxu1 %v9352_v47  ;;  %v10879_v2 = vpack.c.bf16 %v5593_v12, %v5593_v12  ;;  %v9406_v30 = vld [vmem:[%s11772_s6 + $0x104] ss:$16 sps:$4 sm:$0xff]   ;;  %v9404_v18 = vld [vmem:[%s11772_s6 + $0x100] ss:$16 sps:$4 sm:$0xff]  }
 0x38e   : > { %v5537_v13 = vld [vmem:[#allocation2 + $0x10] sm:$0xff] }
 0x38f   : > { %7210 = vmatpush1.bf16.msra.mxu0 %v9353_v1  ;;  %7198 = vmatprep.mubr.bf16.mxu1 %v10879_v2  ;;  %v5587_v62 = vadd.f32 %v5559_v8, %v5537_v13  ;;  %v9412_v16 = vld [vmem:[%s11772_s6 + $0x384] ss:$16 sps:$4 sm:$0xff]   ;;  %v9410_v1 = vld [vmem:[%s11772_s6 + $0x380] ss:$16 sps:$4 sm:$0xff]   ;;  %v5574_v13 = vsub.s32 7, %v10817_v34 }
 0x390   : > { %7211 = vmatprep.subr.bf16.mxu0 %v9361_v43  ;;  %7179 = vmatpush1.bf16.msra.mxu1 %v9350_v22  ;;  %v9415_v47 = vld [vmem:[%s11772_s6 + $0x4e4] ss:$16 sps:$4 sm:$0xff]   ;;  %v10927_v22 = vpack.c.bf16 %v5592_v4, %v5592_v4  ;;  %v9437_v52 = vld [vmem:[%s11772_s6 + $0x460] ss:$16 sps:$4 sm:$0xff]  }
 0x391   : > { %7180 = vmatprep.subr.bf16.mxu1 %v9358_v24  ;;  %v5595_v19 = vmax.f32 %v5587_v62, 0.0  ;;  %v9418_v24 = vld [vmem:[%s11772_s6 + $0x364] ss:$16 sps:$4 sm:$0xff]   ;;  %v9458_v62 = vld [vmem:[%s11772_s6 + $0x5e0] ss:$16 sps:$4 sm:$0xff]  }
 0x392   : > { %v9427_v20 = vld [vmem:[%s11772_s6 + $0x4a4] ss:$16 sps:$4 sm:$0xff]   ;;  %v9467_v4 = vld [vmem:[%s11772_s6 + $0x660] ss:$16 sps:$4 sm:$0xff]  }
 0x393   : > { %7212 = vmatpush1.bf16.msra.mxu0 %v9359_v25  ;;  %v10925_v43 = vpack.c.bf16 %v5595_v19, %v5595_v19  ;;  %v9413_v25 = vld [vmem:[%s11772_s6 + $0x4e0] ss:$16 sps:$4 sm:$0xff]   ;;  %v9439_v44 = vld [vmem:[%s11772_s6 + $0x464] ss:$16 sps:$4 sm:$0xff]  }
 0x394   : > { %7213 = vmatprep.subr.bf16.mxu0 %v9367_v54  ;;  %7181 = vmatpush1.bf16.msra.mxu1 %v9356_v26  ;;  %v9421_v54 = vld [vmem:[%s11772_s6 + $0x4c4] ss:$16 sps:$4 sm:$0xff]   ;;  %v5554_v26 = vsub.s32 2, %v10817_v34 }
 0x395   : > { %7182 = vmatprep.subr.bf16.mxu1 %v9364_v27  ;;  %7239 = vmatprep.mubr.bf16.mxu0 %v10925_v43  ;;  %v9416_v27 = vld [vmem:[%s11772_s6 + $0x360] ss:$16 sps:$4 sm:$0xff]   ;;  %v9451_v58 = vld [vmem:[%s11772_s6 + $0x6c4] ss:$16 sps:$4 sm:$0xff]  }
 0x396   : > { %v9448_v12 = vld [vmem:[%s11772_s6 + $0x424] ss:$16 sps:$4 sm:$0xff]  }
 0x397   : > { %7214 = vmatpush1.bf16.msra.mxu0 %v9365_v15  ;;  %v9424_v15 = vld [vmem:[%s11772_s6 + $0x344] ss:$16 sps:$4 sm:$0xff]  }
 0x398   : > { %7215 = vmatprep.subr.bf16.mxu0 %v9373_v48  ;;  %7183 = vmatpush2.bf16.msra.mxu1 %v9362_v55  ;;  %v9419_v48 = vld [vmem:[%s11772_s6 + $0x4c0] ss:$16 sps:$4 sm:$0xff]   ;;  %v9454_v6 = vld [vmem:[%s11772_s6 + $0x404] ss:$16 sps:$4 sm:$0xff]  }
 0x399   : > { %7184 = vmatprep.subr.bf16.mxu1 %v9370_v29  ;;  %v9422_v55 = vld [vmem:[%s11772_s6 + $0x340] ss:$16 sps:$4 sm:$0xff]   ;;  %v5555_v29 = vrot.slane %v10846_v53, %v5554_v26  ;;  %v9463_v8 = vld [vmem:[%s11772_s6 + $0x684] ss:$16 sps:$4 sm:$0xff]  }
 0x39a   : > { %v9475_v19 = vld [vmem:[%s11772_s6 + $0x644] ss:$16 sps:$4 sm:$0xff]  }
 0x39b   : > { %7216 = vmatpush1.bf16.msra.mxu0 %v9371_v31  ;;  %v5536_v31 = vld [vmem:[#allocation2 + $0x18] sm:$0xff] }
 0x39c   : > { %7217 = vmatprep.subr.bf16.mxu0 %v9379_v32  ;;  %7185 = vmatpush2.bf16.msra.mxu1 %v9368_v33  ;;  %v9430_v32 = vld [vmem:[%s11772_s6 + $0x324] ss:$16 sps:$4 sm:$0xff]   ;;  %v9425_v33 = vld [vmem:[%s11772_s6 + $0x4a0] ss:$16 sps:$4 sm:$0xff]  }
 0x39d   : > { %7186 = vmatprep.subr.bf16.mxu1 %v9376_v35  ;;  %v9433_v35 = vld [vmem:[%s11772_s6 + $0x484] ss:$16 sps:$4 sm:$0xff]  }
 0x39f   : > { %7218 = vmatpush1.bf16.msra.mxu0 %v9377_v51  ;;  %v5586_v51 = vadd.f32 %v5555_v29, %v5536_v31  ;;  %v9487_v29 = vld [vmem:[%s11772_s6 + $0x604] ss:$16 sps:$4 sm:$0xff]   ;;  %v9476_v31 = vld [vmem:[%s11772_s6 + $0x580] ss:$16 sps:$4 sm:$0xff]  }
 0x3a0   : > { %7219 = vmatprep.subr.bf16.mxu0 %v9385_v38  ;;  %7187 = vmatpush2.bf16.msra.mxu1 %v9374_v39  ;;  %v9428_v38 = vld [vmem:[%s11772_s6 + $0x320] ss:$16 sps:$4 sm:$0xff]   ;;  %v9436_v39 = vld [vmem:[%s11772_s6 + $0x304] ss:$16 sps:$4 sm:$0xff]  }
 0x3a1   : > { %7188 = vmatprep.subr.bf16.mxu1 %v9382_v42  ;;  %v9431_v42 = vld [vmem:[%s11772_s6 + $0x480] ss:$16 sps:$4 sm:$0xff]   ;;  %v5594_v23 = vmax.f32 %v5586_v51, 0.0 }
 0x3a2   : > { %v9482_v51 = vld [vmem:[%s11772_s6 + $0x560] ss:$16 sps:$4 sm:$0xff]  }
 0x3a3   : > { %7220 = vmatpush1.bf16.msra.mxu0 %v9383_v49  ;;  %v9434_v49 = vld [vmem:[%s11772_s6 + $0x300] ss:$16 sps:$4 sm:$0xff]   ;;  %v10990_v60 = vpack.c.bf16 %v5594_v23, %v5594_v23  ;;  %v5538_v23 = vld [vmem:[#allocation2 + $0x8] sm:$0xff] }
 0x3a4   : > { %7221 = vmatprep.subr.bf16.mxu0 %v9391_v50  ;;  %7189 = vmatpush2.bf16.msra.mxu1 %v9380_v36  ;;  %v9445_v50 = vld [vmem:[%s11772_s6 + $0x6e4] ss:$16 sps:$4 sm:$0xff]   ;;  %v5566_v36 = vsub.s32 5, %v10817_v34 }
 0x3a5   : > { %7190 = vmatprep.subr.bf16.mxu1 %v9388_v40  ;;  %v9442_v40 = vld [vmem:[%s11772_s6 + $0x444] ss:$16 sps:$4 sm:$0xff]  }
 0x3a7   : > { %7222 = vmatpush1.bf16.msra.mxu0 %v9389_v57  ;;  %v9443_v57 = vld [vmem:[%s11772_s6 + $0x6e0] ss:$16 sps:$4 sm:$0xff]  }
 0x3a8   : > { %7223 = vmatprep.subr.bf16.mxu0 %v9397_v61  ;;  %7191 = vmatpush2.bf16.msra.mxu1 %v9386_v46  ;;  %v9440_v61 = vld [vmem:[%s11772_s6 + $0x440] ss:$16 sps:$4 sm:$0xff]   ;;  %v5567_v46 = vrot.slane %v10846_v53, %v5566_v36  ;;  %v5588_v36 = vadd.f32 %v10858_v56, %v5538_v23  ;;  %v9508_v56 = vld [vmem:[%s11772_s6 + $0x784] ss:$16 sps:$4 sm:$0xff]   ;;  %v9571_v23 = vld [vmem:[%s11772_s6 + $0x24c] ss:$16 sps:$4 sm:$0xff]  }
 0x3a9   : > { %7192 = vmatprep.subr.bf16.mxu1 %v9394_v10  ;;  %v9449_v10 = vld [vmem:[%s11772_s6 + $0x6c0] ss:$16 sps:$4 sm:$0xff]  }
 0x3ab   : > { %7224 = vmatpush2.bf16.msra.mxu0 %v9395_v21  ;;  %v9457_v21 = vld [vmem:[%s11772_s6 + $0x6a4] ss:$16 sps:$4 sm:$0xff]  }
 0x3ac   : > { %7225 = vmatprep.subr.bf16.mxu0 %v9403_v5  ;;  %7193 = vmatpush2.bf16.msra.mxu1 %v9392_v37  ;;  %v5539_v37 = vld [vmem:[#allocation2 + $0x20] sm:$0xff] }
 0x3ad   : > { %7194 = vmatprep.subr.bf16.mxu1 %v9400_v41  ;;  %v9446_v5 = vld [vmem:[%s11772_s6 + $0x420] ss:$16 sps:$4 sm:$0xff]   ;;  %v5589_v59 = vadd.f32 %v5567_v46, %v5539_v37  ;;  %v9514_v37 = vld [vmem:[%s11772_s6 + $0x764] ss:$16 sps:$4 sm:$0xff]  }
 0x3ae   : > { %v9455_v41 = vld [vmem:[%s11772_s6 + $0x6a0] ss:$16 sps:$4 sm:$0xff]  }
 0x3af   : > { %7226 = vmatpush2.bf16.msra.mxu0 %v9401_v7  ;;  %v5597_v7 = vmax.f32 %v5589_v59, 0.0  ;;  %v9500_v46 = vld [vmem:[%s11772_s6 + $0x500] ss:$16 sps:$4 sm:$0xff]   ;;  %v9517_v59 = vld [vmem:[%s11772_s6 + $0xcc] ss:$16 sps:$4 sm:$0xff]  }
 0x3b0   : > { %7227 = vmatprep.subr.bf16.mxu0 %v9409_v63  ;;  %7195 = vmatpush2.bf16.msra.mxu1 %v9398_v11  ;;  %v9452_v63 = vld [vmem:[%s11772_s6 + $0x400] ss:$16 sps:$4 sm:$0xff]   ;;  %v9460_v11 = vld [vmem:[%s11772_s6 + $0x5e4] ss:$16 sps:$4 sm:$0xff]  }
 0x3b1   : > { %7196 = vmatprep.subr.bf16.mxu1 %v9406_v30  ;;  %v11030_v9 = vpack.c.bf16 %v5597_v7, %v5597_v7  ;;  %v9461_v30 = vld [vmem:[%s11772_s6 + $0x680] ss:$16 sps:$4 sm:$0xff]   ;;  %v9515_v7 = vld [vmem:[%s11772_s6 + $0xc8] ss:$16 sps:$4 sm:$0xff]  }
 0x3b3   : > { %7228 = vmatpush2.bf16.msra.mxu0 %v9407_v14  ;;  %v9469_v14 = vld [vmem:[%s11772_s6 + $0x664] ss:$16 sps:$4 sm:$0xff]  }
 0x3b4   : > { %7229 = vmatprep.subr.bf16.mxu0 %v9412_v16  ;;  %7197 = vmatpush2.bf16.msra.mxu1 %v9404_v18  ;;  %v9466_v16 = vld [vmem:[%s11772_s6 + $0x5c4] ss:$16 sps:$4 sm:$0xff]   ;;  %v5575_v18 = vrot.slane %v10846_v53, %v5574_v13  ;;  %v9473_v53 = vld [vmem:[%s11772_s6 + $0x640] ss:$16 sps:$4 sm:$0xff]   ;;  %v9521_v13 = vld [vmem:[%s11772_s6 + $0xa8] ss:$16 sps:$4 sm:$0xff]  }
 0x3b5   : > { %7248 = vmatprep.subr.bf16.mxu1 %v9415_v47  ;;  %v9464_v47 = vld [vmem:[%s11772_s6 + $0x5c0] ss:$16 sps:$4 sm:$0xff]  }
 0x3b7   : > { %7230 = vmatpush2.bf16.msra.mxu0 %v9410_v1  ;;  %7199 = vmatmul.mubr.bf16.vlgmr.msra.gmra.mxu1 %v10927_v22  ;;  %v9472_v1 = vld [vmem:[%s11772_s6 + $0x5a4] ss:$16 sps:$4 sm:$0xff]  }
 0x3b8   : > { %7231 = vmatprep.subr.bf16.mxu0 %v9418_v24  ;;  %7249 = vmatpush1.bf16.msra.mxu1 %v9413_v25  ;;  %v5541_v24 = vld [vmem:[#allocation2 + $0x38] sm:$0xff] }
 0x3b9   : > { %7250 = vmatprep.subr.bf16.mxu1 %v9421_v54  ;;  %7280 = vmatprep.mubr.bf16.mxu1 %v11030_v9  ;;  %v5591_v25 = vadd.f32 %v5575_v18, %v5541_v24  ;;  %v9481_v54 = vld [vmem:[%s11772_s6 + $0x624] ss:$16 sps:$4 sm:$0xff]  }
 0x3bb   : > { %7232 = vmatpush2.bf16.msra.mxu0 %v9416_v27  ;;  %v9470_v27 = vld [vmem:[%s11772_s6 + $0x5a0] ss:$16 sps:$4 sm:$0xff]  }
 0x3bc   : > { %7233 = vmatprep.subr.bf16.mxu0 %v9424_v15  ;;  %7251 = vmatpush1.bf16.msra.mxu1 %v9419_v48  ;;  %v5599_v15 = vmax.f32 %v5591_v25, 0.0  ;;  %v9478_v48 = vld [vmem:[%s11772_s6 + $0x584] ss:$16 sps:$4 sm:$0xff]   ;;  %v9539_v25 = vld [vmem:[%s11772_s6 + $0x2e8] ss:$16 sps:$4 sm:$0xff]  }
 0x3bd   : > { %7252 = vmatprep.subr.bf16.mxu1 %v9427_v20 }
 0x3be   : > { %v11077_v20 = vpack.c.bf16 %v5599_v15, %v5599_v15  ;;  %v9544_v15 = vld [vmem:[%s11772_s6 + $0x2c] ss:$16 sps:$4 sm:$0xff]  }
 0x3bf   : > { %7234 = vmatpush2.bf16.msra.mxu0 %v9422_v55  ;;  %v9479_v55 = vld [vmem:[%s11772_s6 + $0x620] ss:$16 sps:$4 sm:$0xff]  }
 0x3c0   : > { %7235 = vmatprep.subr.bf16.mxu0 %v9430_v32  ;;  %7253 = vmatpush1.bf16.msra.mxu1 %v9425_v33  ;;  %v9484_v32 = vld [vmem:[%s11772_s6 + $0x564] ss:$16 sps:$4 sm:$0xff]   ;;  %v9485_v33 = vld [vmem:[%s11772_s6 + $0x600] ss:$16 sps:$4 sm:$0xff]  }
 0x3c1   : > { %7254 = vmatprep.subr.bf16.mxu1 %v9433_v35  ;;  %v9493_v35 = vld [vmem:[%s11772_s6 + $0x7e4] ss:$16 sps:$4 sm:$0xff]  }
 0x3c3   : > { %7236 = vmatpush2.bf16.msra.mxu0 %v9428_v38  ;;  %v9490_v38 = vld [vmem:[%s11772_s6 + $0x544] ss:$16 sps:$4 sm:$0xff]  }
 0x3c4   : > { %7237 = vmatprep.subr.bf16.mxu0 %v9436_v39  ;;  %7255 = vmatpush1.bf16.msra.mxu1 %v9431_v42  ;;  %v9491_v39 = vld [vmem:[%s11772_s6 + $0x7e0] ss:$16 sps:$4 sm:$0xff]   ;;  %v9499_v42 = vld [vmem:[%s11772_s6 + $0x7c4] ss:$16 sps:$4 sm:$0xff]  }
 0x3c5   : > { %7256 = vmatprep.subr.bf16.mxu1 %v9439_v44  ;;  %v9488_v44 = vld [vmem:[%s11772_s6 + $0x540] ss:$16 sps:$4 sm:$0xff]  }
 0x3c7   : > { %7238 = vmatpush2.bf16.msra.mxu0 %v9434_v49  ;;  %v9496_v49 = vld [vmem:[%s11772_s6 + $0x524] ss:$16 sps:$4 sm:$0xff]  }
 0x3c8   : > { %7289 = vmatprep.subr.bf16.mxu0 %v9445_v50  ;;  %7257 = vmatpush1.bf16.msra.mxu1 %v9437_v52  ;;  %v9497_v50 = vld [vmem:[%s11772_s6 + $0x7c0] ss:$16 sps:$4 sm:$0xff]   ;;  %v9505_v52 = vld [vmem:[%s11772_s6 + $0x7a4] ss:$16 sps:$4 sm:$0xff]  }
 0x3c9   : > { %7258 = vmatprep.subr.bf16.mxu1 %v9442_v40  ;;  %v9494_v40 = vld [vmem:[%s11772_s6 + $0x520] ss:$16 sps:$4 sm:$0xff]  }
 0x3ca   : > { %7240 = vmatmul.mubr.bf16.vlgmr.msra.gmra.mxu0 %v10990_v60 }
 0x3cb   : > { %7290 = vmatpush1.bf16.msra.mxu0 %v9443_v57  ;;  %7321 = vmatprep.mubr.bf16.mxu0 %v11077_v20  ;;  %v9502_v57 = vld [vmem:[%s11772_s6 + $0x504] ss:$16 sps:$4 sm:$0xff]  }
 0x3cc   : > { %7291 = vmatprep.subr.bf16.mxu0 %v9451_v58  ;;  %7259 = vmatpush1.bf16.msra.mxu1 %v9440_v61  ;;  %v9503_v58 = vld [vmem:[%s11772_s6 + $0x7a0] ss:$16 sps:$4 sm:$0xff]   ;;  %v5596_v61 = vmax.f32 %v5588_v36, 0.0  ;;  %v9577_v36 = vld [vmem:[%s11772_s6 + $0x22c] ss:$16 sps:$4 sm:$0xff]  }
 0x3cd   : > { %7260 = vmatprep.subr.bf16.mxu1 %v9448_v12  ;;  %v9511_v12 = vld [vmem:[%s11772_s6 + $0xec] ss:$16 sps:$4 sm:$0xff]  }
 0x3cf   : > { %7292 = vmatpush1.bf16.msra.mxu0 %v9449_v10  ;;  %v9506_v10 = vld [vmem:[%s11772_s6 + $0x780] ss:$16 sps:$4 sm:$0xff]  }
 0x3d0   : > { %7293 = vmatprep.subr.bf16.mxu0 %v9457_v21  ;;  %7261 = vmatpush1.bf16.msra.mxu1 %v9446_v5  ;;  %v11141_v21 = vpack.c.bf16 %v5596_v61, %v5596_v61  ;;  %v9509_v5 = vld [vmem:[%s11772_s6 + $0xe8] ss:$16 sps:$4 sm:$0xff]   ;;  %v9583_v61 = vld [vmem:[%s11772_s6 + $0x20c] ss:$16 sps:$4 sm:$0xff]  }
 0x3d1   : > { %7262 = vmatprep.subr.bf16.mxu1 %v9454_v6  ;;  %v9512_v6 = vld [vmem:[%s11772_s6 + $0x760] ss:$16 sps:$4 sm:$0xff]  }
 0x3d3   : > { %7294 = vmatpush1.bf16.msra.mxu0 %v9455_v41  ;;  %v9520_v41 = vld [vmem:[%s11772_s6 + $0x744] ss:$16 sps:$4 sm:$0xff]  }
 0x3d4   : > { %7295 = vmatprep.subr.bf16.mxu0 %v9463_v8  ;;  %7263 = vmatpush1.bf16.msra.mxu1 %v9452_v63  ;;  %v9518_v8 = vld [vmem:[%s11772_s6 + $0x740] ss:$16 sps:$4 sm:$0xff]   ;;  %v9523_v63 = vld [vmem:[%s11772_s6 + $0xac] ss:$16 sps:$4 sm:$0xff]  }
 0x3d5   : > { %7264 = vmatprep.subr.bf16.mxu1 %v9460_v11  ;;  %v5540_v11 = vld [vmem:[#allocation2 + $0x28] sm:$0xff] }
 0x3d7   : > { %7296 = vmatpush1.bf16.msra.mxu0 %v9461_v30  ;;  %v9526_v30 = vld [vmem:[%s11772_s6 + $0x724] ss:$16 sps:$4 sm:$0xff]  }
 0x3d8   : > { %7297 = vmatprep.subr.bf16.mxu0 %v9469_v14  ;;  %7265 = vmatpush2.bf16.msra.mxu1 %v9458_v62  ;;  %v5590_v14 = vadd.f32 %v10861_v28, %v5540_v11  ;;  %v9524_v62 = vld [vmem:[%s11772_s6 + $0x720] ss:$16 sps:$4 sm:$0xff]   ;;  %v9535_v28 = vld [vmem:[%s11772_s6 + $0x6c] ss:$16 sps:$4 sm:$0xff]  }
 0x3d9   : > { %7266 = vmatprep.subr.bf16.mxu1 %v9466_v16  ;;  %v9532_v16 = vld [vmem:[%s11772_s6 + $0x704] ss:$16 sps:$4 sm:$0xff]   ;;  %v9598_v11 = vld [vmem:[%s11772_s6 + $0x10c] ss:$16 sps:$4 sm:$0xff]  }
 0x3da   : > { %v5598_v18 = vmax.f32 %v5590_v14, 0.0  ;;  %v9596_v14 = vld [vmem:[%s11772_s6 + $0x108] ss:$16 sps:$4 sm:$0xff]  }
 0x3db   : > { %7298 = vmatpush1.bf16.msra.mxu0 %v9467_v4  ;;  %v9527_v4 = vld [vmem:[%s11772_s6 + $0x88] ss:$16 sps:$4 sm:$0xff]  }
 0x3dc   : > { %7299 = vmatprep.subr.bf16.mxu0 %v9475_v19  ;;  %7267 = vmatpush2.bf16.msra.mxu1 %v9464_v47  ;;  %v9530_v19 = vld [vmem:[%s11772_s6 + $0x700] ss:$16 sps:$4 sm:$0xff]   ;;  %v9541_v47 = vld [vmem:[%s11772_s6 + $0x2ec] ss:$16 sps:$4 sm:$0xff]   ;;  %v11200_v24 = vpack.c.bf16 %v5598_v18, %v5598_v18 }
 0x3dd   : > { %7268 = vmatprep.subr.bf16.mxu1 %v9472_v1  ;;  %v9533_v1 = vld [vmem:[%s11772_s6 + $0x68] ss:$16 sps:$4 sm:$0xff]   ;;  %v9613_v18 = vld [vmem:[%s11772_s6 + $0x4cc] ss:$16 sps:$4 sm:$0xff]  }
 0x3df   : > { %7300 = vmatpush1.bf16.msra.mxu0 %v9473_v53  ;;  %v9538_v53 = vld [vmem:[%s11772_s6 + $0x4c] ss:$16 sps:$4 sm:$0xff]  }
 0x3e0   : > { %7301 = vmatprep.subr.bf16.mxu0 %v9481_v54  ;;  %7269 = vmatpush2.bf16.msra.mxu1 %v9470_v27  ;;  %v9547_v54 = vld [vmem:[%s11772_s6 + $0x2cc] ss:$16 sps:$4 sm:$0xff]   ;;  %v9536_v27 = vld [vmem:[%s11772_s6 + $0x48] ss:$16 sps:$4 sm:$0xff]  }
 0x3e1   : > { %7270 = vmatprep.subr.bf16.mxu1 %v9478_v48  ;;  %v9545_v48 = vld [vmem:[%s11772_s6 + $0x2c8] ss:$16 sps:$4 sm:$0xff]  }
 0x3e3   : > { %7302 = vmatpush1.bf16.msra.mxu0 %v9479_v55  ;;  %v9553_v55 = vld [vmem:[%s11772_s6 + $0x2ac] ss:$16 sps:$4 sm:$0xff]  }
 0x3e4   : > { %7303 = vmatprep.subr.bf16.mxu0 %v9487_v29  ;;  %7271 = vmatpush2.bf16.msra.mxu1 %v9476_v31  ;;  %v9542_v29 = vld [vmem:[%s11772_s6 + $0x28] ss:$16 sps:$4 sm:$0xff]   ;;  %v9550_v31 = vld [vmem:[%s11772_s6 + $0xc] ss:$16 sps:$4 sm:$0xff]  }
 0x3e5   : > { %7272 = vmatprep.subr.bf16.mxu1 %v9484_v32  ;;  %v9559_v32 = vld [vmem:[%s11772_s6 + $0x28c] ss:$16 sps:$4 sm:$0xff]  }
 0x3e7   : > { %7304 = vmatpush1.bf16.msra.mxu0 %v9485_v33  ;;  %v9548_v33 = vld [vmem:[%s11772_s6 + $0x8] ss:$16 sps:$4 sm:$0xff]  }
 0x3e8   : > { %7305 = vmatprep.subr.bf16.mxu0 %v9493_v35  ;;  %7273 = vmatpush2.bf16.msra.mxu1 %v9482_v51  ;;  %v9556_v35 = vld [vmem:[%s11772_s6 + $0x1ec] ss:$16 sps:$4 sm:$0xff]   ;;  %v9557_v51 = vld [vmem:[%s11772_s6 + $0x288] ss:$16 sps:$4 sm:$0xff]  }
 0x3e9   : > { %7274 = vmatprep.subr.bf16.mxu1 %v9490_v38  ;;  %v9565_v38 = vld [vmem:[%s11772_s6 + $0x26c] ss:$16 sps:$4 sm:$0xff]  }
 0x3eb   : > { %7306 = vmatpush2.bf16.msra.mxu0 %v9491_v39  ;;  %v9554_v39 = vld [vmem:[%s11772_s6 + $0x1e8] ss:$16 sps:$4 sm:$0xff]  }
 0x3ec   : > { %7307 = vmatprep.subr.bf16.mxu0 %v9499_v42  ;;  %7275 = vmatpush2.bf16.msra.mxu1 %v9488_v44  ;;  %v9562_v42 = vld [vmem:[%s11772_s6 + $0x1cc] ss:$16 sps:$4 sm:$0xff]   ;;  %v9563_v44 = vld [vmem:[%s11772_s6 + $0x268] ss:$16 sps:$4 sm:$0xff]  }
 0x3ed   : > { %7276 = vmatprep.subr.bf16.mxu1 %v9496_v49  ;;  %v9560_v49 = vld [vmem:[%s11772_s6 + $0x1c8] ss:$16 sps:$4 sm:$0xff]  }
 0x3ef   : > { %7308 = vmatpush2.bf16.msra.mxu0 %v9497_v50  ;;  %v9568_v50 = vld [vmem:[%s11772_s6 + $0x1ac] ss:$16 sps:$4 sm:$0xff]  }
 0x3f0   : > { %7309 = vmatprep.subr.bf16.mxu0 %v9505_v52  ;;  %7277 = vmatpush2.bf16.msra.mxu1 %v9494_v40  ;;  %v9569_v52 = vld [vmem:[%s11772_s6 + $0x248] ss:$16 sps:$4 sm:$0xff]  }
 0x3f1   : > { %7278 = vmatprep.subr.bf16.mxu1 %v9502_v57  ;;  %v9566_v40 = vld [vmem:[%s11772_s6 + $0x1a8] ss:$16 sps:$4 sm:$0xff]   ;;  %v9574_v57 = vld [vmem:[%s11772_s6 + $0x18c] ss:$16 sps:$4 sm:$0xff]  }
 0x3f3   : > { %7310 = vmatpush2.bf16.msra.mxu0 %v9503_v58  ;;  %v9575_v58 = vld [vmem:[%s11772_s6 + $0x228] ss:$16 sps:$4 sm:$0xff]  }
 0x3f4   : > { %7311 = vmatprep.subr.bf16.mxu0 %v9508_v56  ;;  %7279 = vmatpush2.bf16.msra.mxu1 %v9500_v46  ;;  %v9572_v56 = vld [vmem:[%s11772_s6 + $0x188] ss:$16 sps:$4 sm:$0xff]   ;;  %v9580_v46 = vld [vmem:[%s11772_s6 + $0x16c] ss:$16 sps:$4 sm:$0xff]  }
 0x3f5   : > { %7330 = vmatprep.subr.bf16.mxu1 %v9511_v12  ;;  %v9581_v12 = vld [vmem:[%s11772_s6 + $0x208] ss:$16 sps:$4 sm:$0xff]  }
 0x3f7   : > { %7312 = vmatpush2.bf16.msra.mxu0 %v9506_v10  ;;  %7281 = vmatmul.mubr.bf16.vlgmr.msra.gmra.mxu1 %v11141_v21  ;;  %v9589_v10 = vld [vmem:[%s11772_s6 + $0x3ec] ss:$16 sps:$4 sm:$0xff]  }
 0x3f8   : > { %7313 = vmatprep.subr.bf16.mxu0 %v9514_v37  ;;  %7331 = vmatpush1.bf16.msra.mxu1 %v9509_v5  ;;  %v9578_v37 = vld [vmem:[%s11772_s6 + $0x168] ss:$16 sps:$4 sm:$0xff]   ;;  %v9586_v5 = vld [vmem:[%s11772_s6 + $0x14c] ss:$16 sps:$4 sm:$0xff]  }
 0x3f9   : > { %7362 = vmatprep.mubr.bf16.mxu1 %v10879_v2  ;;  %7332 = vmatprep.subr.bf16.mxu1 %v9517_v59  ;;  %v9529_v2 = vld [vmem:[%s11772_s6 + $0x8c] ss:$16 sps:$4 sm:$0xff]   ;;  %v9587_v59 = vld [vmem:[%s11772_s6 + $0x3e8] ss:$16 sps:$4 sm:$0xff]  }
 0x3fb   : > { %7314 = vmatpush2.bf16.msra.mxu0 %v9512_v6  ;;  %v9595_v6 = vld [vmem:[%s11772_s6 + $0x3cc] ss:$16 sps:$4 sm:$0xff]  }
 0x3fc   : > { %7315 = vmatprep.subr.bf16.mxu0 %v9520_v41  ;;  %7333 = vmatpush1.bf16.msra.mxu1 %v9515_v7  ;;  %v9584_v41 = vld [vmem:[%s11772_s6 + $0x148] ss:$16 sps:$4 sm:$0xff]   ;;  %v9592_v7 = vld [vmem:[%s11772_s6 + $0x12c] ss:$16 sps:$4 sm:$0xff]  }
 0x3fd   : > { %7334 = vmatprep.subr.bf16.mxu1 %v9523_v63  ;;  %v9593_v63 = vld [vmem:[%s11772_s6 + $0x3c8] ss:$16 sps:$4 sm:$0xff]  }
 0x3ff   : > { %7316 = vmatpush2.bf16.msra.mxu0 %v9518_v8  ;;  %v9590_v8 = vld [vmem:[%s11772_s6 + $0x128] ss:$16 sps:$4 sm:$0xff]  }
 0x400   : > { %7317 = vmatprep.subr.bf16.mxu0 %v9526_v30  ;;  %7335 = vmatpush1.bf16.msra.mxu1 %v9521_v13  ;;  %v9601_v30 = vld [vmem:[%s11772_s6 + $0x3ac] ss:$16 sps:$4 sm:$0xff]   ;;  %v9599_v13 = vld [vmem:[%s11772_s6 + $0x3a8] ss:$16 sps:$4 sm:$0xff]  }
 0x401   : > { %7336 = vmatprep.subr.bf16.mxu1 %v9529_v2  ;;  %v9604_v2 = vld [vmem:[%s11772_s6 + $0x38c] ss:$16 sps:$4 sm:$0xff]  }
 0x403   : > { %7318 = vmatpush2.bf16.msra.mxu0 %v9524_v62  ;;  %v9607_v62 = vld [vmem:[%s11772_s6 + $0x4ec] ss:$16 sps:$4 sm:$0xff]  }
 0x404   : > { %7319 = vmatprep.subr.bf16.mxu0 %v9532_v16  ;;  %7337 = vmatpush1.bf16.msra.mxu1 %v9527_v4  ;;  %v9602_v16 = vld [vmem:[%s11772_s6 + $0x388] ss:$16 sps:$4 sm:$0xff]   ;;  %v9610_v4 = vld [vmem:[%s11772_s6 + $0x36c] ss:$16 sps:$4 sm:$0xff]  }
 0x405   : > { %7338 = vmatprep.subr.bf16.mxu1 %v9535_v28  ;;  %v9605_v28 = vld [vmem:[%s11772_s6 + $0x4e8] ss:$16 sps:$4 sm:$0xff]  }
 0x407   : > { %7320 = vmatpush2.bf16.msra.mxu0 %v9530_v19  ;;  %v9608_v19 = vld [vmem:[%s11772_s6 + $0x368] ss:$16 sps:$4 sm:$0xff]  }
 0x408   : > { %7371 = vmatprep.subr.bf16.mxu0 %v9541_v47  ;;  %7339 = vmatpush1.bf16.msra.mxu1 %v9533_v1  ;;  %v9611_v47 = vld [vmem:[%s11772_s6 + $0x4c8] ss:$16 sps:$4 sm:$0xff]   ;;  %v9616_v1 = vld [vmem:[%s11772_s6 + $0x34c] ss:$16 sps:$4 sm:$0xff]  }
 0x409   : > { %7340 = vmatprep.subr.bf16.mxu1 %v9538_v53 }
 0x40a   : > { %7322 = vmatmul.mubr.bf16.vlgmr.msra.gmra.mxu0 %v11200_v24 }
 0x40b   : > { %7372 = vmatpush1.bf16.msra.mxu0 %v9539_v25  ;;  %7403 = vmatprep.mubr.bf16.mxu0 %v10925_v43  ;;  %v9551_v43 = vld [vmem:[%s11772_s6 + $0x2a8] ss:$16 sps:$4 sm:$0xff]   ;;  %v9619_v25 = vld [vmem:[%s11772_s6 + $0x4ac] ss:$16 sps:$4 sm:$0xff]  }
 0x40c   : > { %7373 = vmatprep.subr.bf16.mxu0 %v9547_v54  ;;  %7341 = vmatpush1.bf16.msra.mxu1 %v9536_v27  ;;  %v9617_v27 = vld [vmem:[%s11772_s6 + $0x4a8] ss:$16 sps:$4 sm:$0xff]  }
 0x40d   : > { %7342 = vmatprep.subr.bf16.mxu1 %v9544_v15  ;;  %v9622_v15 = vld [vmem:[%s11772_s6 + $0x32c] ss:$16 sps:$4 sm:$0xff]  }
 0x40f   : > { %7374 = vmatpush1.bf16.msra.mxu0 %v9545_v48 }
 0x410   : > { %7375 = vmatprep.subr.bf16.mxu0 %v9553_v55  ;;  %7343 = vmatpush1.bf16.msra.mxu1 %v9542_v29  ;;  %v9625_v55 = vld [vmem:[%s11772_s6 + $0x48c] ss:$16 sps:$4 sm:$0xff]  }
 0x411   : > { %7344 = vmatprep.subr.bf16.mxu1 %v9550_v31  ;;  %v9628_v29 = vld [vmem:[%s11772_s6 + $0x30c] ss:$16 sps:$4 sm:$0xff]  }
 0x413   : > { %7376 = vmatpush1.bf16.msra.mxu0 %v9551_v43  ;;  %v9623_v43 = vld [vmem:[%s11772_s6 + $0x488] ss:$16 sps:$4 sm:$0xff]  }
 0x414   : > { %7377 = vmatprep.subr.bf16.mxu0 %v9559_v32  ;;  %7345 = vmatpush1.bf16.msra.mxu1 %v9548_v33  ;;  %v9631_v32 = vld [vmem:[%s11772_s6 + $0x46c] ss:$16 sps:$4 sm:$0xff]   ;;  %v9626_v33 = vld [vmem:[%s11772_s6 + $0x308] ss:$16 sps:$4 sm:$0xff]  }
 0x415   : > { %7346 = vmatprep.subr.bf16.mxu1 %v9556_v35  ;;  %v9637_v35 = vld [vmem:[%s11772_s6 + $0x6ec] ss:$16 sps:$4 sm:$0xff]  }
 0x417   : > { %7378 = vmatpush1.bf16.msra.mxu0 %v9557_v51  ;;  %v9629_v51 = vld [vmem:[%s11772_s6 + $0x468] ss:$16 sps:$4 sm:$0xff]  }
 0x418   : > { %7379 = vmatprep.subr.bf16.mxu0 %v9565_v38  ;;  %7347 = vmatpush2.bf16.msra.mxu1 %v9554_v39  ;;  %v9634_v38 = vld [vmem:[%s11772_s6 + $0x44c] ss:$16 sps:$4 sm:$0xff]   ;;  %v9635_v39 = vld [vmem:[%s11772_s6 + $0x6e8] ss:$16 sps:$4 sm:$0xff]  }
 0x419   : > { %7348 = vmatprep.subr.bf16.mxu1 %v9562_v42  ;;  %v9643_v42 = vld [vmem:[%s11772_s6 + $0x6cc] ss:$16 sps:$4 sm:$0xff]  }
 0x41b   : > { %7380 = vmatpush1.bf16.msra.mxu0 %v9563_v44  ;;  %v9632_v44 = vld [vmem:[%s11772_s6 + $0x448] ss:$16 sps:$4 sm:$0xff]  }
 0x41c   : > { %7381 = vmatprep.subr.bf16.mxu0 %v9571_v23  ;;  %7349 = vmatpush2.bf16.msra.mxu1 %v9560_v49  ;;  %v9640_v23 = vld [vmem:[%s11772_s6 + $0x42c] ss:$16 sps:$4 sm:$0xff]   ;;  %v9641_v49 = vld [vmem:[%s11772_s6 + $0x6c8] ss:$16 sps:$4 sm:$0xff]  }
 0x41d   : > { %7350 = vmatprep.subr.bf16.mxu1 %v9568_v50 }
 0x41f   : > { %7382 = vmatpush1.bf16.msra.mxu0 %v9569_v52  ;;  %v8814_v52 = vld [vmem:[%s11769_s3] ss:$0 sm:$0xff] }
 0x420   : > { %7383 = vmatprep.subr.bf16.mxu0 %v9577_v36  ;;  %7351 = vmatpush2.bf16.msra.mxu1 %v9566_v40  ;;  %v9649_v40 = vld [vmem:[%s11772_s6 + $0x6ac] ss:$16 sps:$4 sm:$0xff]  }
 0x421   : > { %7352 = vmatprep.subr.bf16.mxu1 %v9574_v57 }
 0x423   : > { %7384 = vmatpush1.bf16.msra.mxu0 %v9575_v58 }
 0x424   : > { %7385 = vmatprep.subr.bf16.mxu0 %v9583_v61  ;;  %7353 = vmatpush2.bf16.msra.mxu1 %v9572_v56  ;;  %v9646_v61 = vld [vmem:[%s11772_s6 + $0x40c] ss:$16 sps:$4 sm:$0xff]  }
 0x425   : > { %7354 = vmatprep.subr.bf16.mxu1 %v9580_v46 }
 0x427   : > { %7386 = vmatpush1.bf16.msra.mxu0 %v9581_v12  ;;  %v9655_v12 = vld [vmem:[%s11772_s6 + $0x68c] ss:$16 sps:$4 sm:$0xff]  }
 0x428   : > { %7387 = vmatprep.subr.bf16.mxu0 %v9589_v10  ;;  %7355 = vmatpush2.bf16.msra.mxu1 %v9578_v37  ;;  %v9644_v37 = vld [vmem:[%s11772_s6 + $0x408] ss:$16 sps:$4 sm:$0xff]  }
 0x429   : > { %7356 = vmatprep.subr.bf16.mxu1 %v9586_v5  ;;  %v9652_v5 = vld [vmem:[%s11772_s6 + $0x5ec] ss:$16 sps:$4 sm:$0xff]  }
 0x42b   : > { %7388 = vmatpush2.bf16.msra.mxu0 %v9587_v59  ;;  %v9653_v59 = vld [vmem:[%s11772_s6 + $0x688] ss:$16 sps:$4 sm:$0xff]  }
 0x42c   : > { %7389 = vmatprep.subr.bf16.mxu0 %v9595_v6  ;;  %7357 = vmatpush2.bf16.msra.mxu1 %v9584_v41  ;;  %v9661_v6 = vld [vmem:[%s11772_s6 + $0x66c] ss:$16 sps:$4 sm:$0xff]   ;;  %v9650_v41 = vld [vmem:[%s11772_s6 + $0x5e8] ss:$16 sps:$4 sm:$0xff]  }
 0x42d   : > { %7358 = vmatprep.subr.bf16.mxu1 %v9592_v7  ;;  %v9658_v7 = vld [vmem:[%s11772_s6 + $0x5cc] ss:$16 sps:$4 sm:$0xff]  }
 0x42f   : > { %7390 = vmatpush2.bf16.msra.mxu0 %v9593_v63  ;;  %v9667_v63 = vld [vmem:[%s11772_s6 + $0x64c] ss:$16 sps:$4 sm:$0xff]  }
 0x430   : > { %7391 = vmatprep.subr.bf16.mxu0 %v9601_v30  ;;  %7359 = vmatpush2.bf16.msra.mxu1 %v9590_v8  ;;  %v9659_v8 = vld [vmem:[%s11772_s6 + $0x668] ss:$16 sps:$4 sm:$0xff]   ;;  %v9664_v30 = vld [vmem:[%s11772_s6 + $0x5ac] ss:$16 sps:$4 sm:$0xff]  }
 0x431   : > { %7360 = vmatprep.subr.bf16.mxu1 %v9598_v11  ;;  %v9656_v11 = vld [vmem:[%s11772_s6 + $0x5c8] ss:$16 sps:$4 sm:$0xff]  }
 0x433   : > { %7392 = vmatpush2.bf16.msra.mxu0 %v9599_v13  ;;  %v9665_v13 = vld [vmem:[%s11772_s6 + $0x648] ss:$16 sps:$4 sm:$0xff]  }
 0x434   : > { %7393 = vmatprep.subr.bf16.mxu0 %v9604_v2  ;;  %7361 = vmatpush2.bf16.msra.mxu1 %v9596_v14  ;;  %v9673_v2 = vld [vmem:[%s11772_s6 + $0x62c] ss:$16 sps:$4 sm:$0xff]   ;;  %v9662_v14 = vld [vmem:[%s11772_s6 + $0x5a8] ss:$16 sps:$4 sm:$0xff]  }
 0x435   : > { %7412 = vmatprep.subr.bf16.mxu1 %v9607_v62  ;;  %v9670_v62 = vld [vmem:[%s11772_s6 + $0x58c] ss:$16 sps:$4 sm:$0xff]  }
 0x437   : > { %7394 = vmatpush2.bf16.msra.mxu0 %v9602_v16  ;;  %7363 = vmatmul.mubr.bf16.vlgmr.msra.gmra.mxu1 %v10927_v22  ;;  %v5527_v53 = vpop.f32.mrf.mxu1  ;;  %v9614_v22 = vld [vmem:[%s11772_s6 + $0x348] ss:$16 sps:$4 sm:$0xff]  }
 0x438   : > { %7395 = vmatprep.subr.bf16.mxu0 %v9610_v4  ;;  %7413 = vmatpush1.bf16.msra.mxu1 %v9605_v28  ;;  %v9671_v16 = vld [vmem:[%s11772_s6 + $0x628] ss:$16 sps:$4 sm:$0xff]   ;;  %v9679_v4 = vld [vmem:[%s11772_s6 + $0x60c] ss:$16 sps:$4 sm:$0xff]  }
 0x439   : > { %7444 = vmatprep.mubr.bf16.mxu1 %v11030_v9  ;;  %7414 = vmatprep.subr.bf16.mxu1 %v9613_v18  ;;  %v9244_v54 = vpop.f32.mrf.mxu1  ;;  %v9620_v9 = vld [vmem:[%s11772_s6 + $0x328] ss:$16 sps:$4 sm:$0xff]   ;;  %v9676_v18 = vld [vmem:[%s11772_s6 + $0x56c] ss:$16 sps:$4 sm:$0xff]  }
 0x43a   : > { %v9668_v28 = vld [vmem:[%s11772_s6 + $0x588] ss:$16 sps:$4 sm:$0xff]   ;;  %v9691_v54 = vld [vmem:[%s11772_s6 + $0x7cc] ss:$16 sps:$4 sm:$0xff]  }
 0x43b   : > { %7396 = vmatpush2.bf16.msra.mxu0 %v9608_v19  ;;  %v5530_v48 = vpop.f32.mrf.mxu1  ;;  %v9677_v19 = vld [vmem:[%s11772_s6 + $0x608] ss:$16 sps:$4 sm:$0xff]  }
 0x43c   : > { %7397 = vmatprep.subr.bf16.mxu0 %v9616_v1  ;;  %7415 = vmatpush1.bf16.msra.mxu1 %v9611_v47  ;;  %v9685_v47 = vld [vmem:[%s11772_s6 + $0x7ec] ss:$16 sps:$4 sm:$0xff]   ;;  %v9674_v1 = vld [vmem:[%s11772_s6 + $0x568] ss:$16 sps:$4 sm:$0xff]  }
 0x43d   : > { %7416 = vmatprep.subr.bf16.mxu1 %v9619_v25  ;;  %v9245_v31 = vpop.f32.mrf.mxu1  ;;  %v9683_v25 = vld [vmem:[%s11772_s6 + $0x7e8] ss:$16 sps:$4 sm:$0xff]   ;;  %v9697_v48 = vld [vmem:[%s11772_s6 + $0x7ac] ss:$16 sps:$4 sm:$0xff]  }
 0x43e   : > { %v9700_v31 = vld [vmem:[%s11772_s6 + $0x78c] ss:$16 sps:$4 sm:$0xff]  }
 0x43f   : > { %7398 = vmatpush2.bf16.msra.mxu0 %v9614_v22  ;;  %v9680_v22 = vld [vmem:[%s11772_s6 + $0x548] ss:$16 sps:$4 sm:$0xff]  }
 0x440   : > { %7399 = vmatprep.subr.bf16.mxu0 %v9622_v15  ;;  %7417 = vmatpush1.bf16.msra.mxu1 %v9617_v27  ;;  %v9688_v27 = vld [vmem:[%s11772_s6 + $0x52c] ss:$16 sps:$4 sm:$0xff]   ;;  %v9689_v15 = vld [vmem:[%s11772_s6 + $0x7c8] ss:$16 sps:$4 sm:$0xff]  }
 0x441   : > { %7418 = vmatprep.subr.bf16.mxu1 %v9625_v55  ;;  %v9694_v55 = vld [vmem:[%s11772_s6 + $0x50c] ss:$16 sps:$4 sm:$0xff]  }
 0x443   : > { %7400 = vmatpush2.bf16.msra.mxu0 %v9620_v9  ;;  %v9686_v9 = vld [vmem:[%s11772_s6 + $0x528] ss:$16 sps:$4 sm:$0xff]  }
 0x444   : > { %7401 = vmatprep.subr.bf16.mxu0 %v9628_v29  ;;  %7419 = vmatpush1.bf16.msra.mxu1 %v9623_v43  ;;  %v9695_v29 = vld [vmem:[%s11772_s6 + $0x7a8] ss:$16 sps:$4 sm:$0xff]  }
 0x445   : > { %7420 = vmatprep.subr.bf16.mxu1 %v9631_v32  ;;  %v9692_v43 = vld [vmem:[%s11772_s6 + $0x508] ss:$16 sps:$4 sm:$0xff]  }
 0x446   : > { %v9713_v32 = vld [vmem:[%s11774_s8 + $0x78] sm:$0xff]  }
 0x447   : > { %7402 = vmatpush2.bf16.msra.mxu0 %v9626_v33  ;;  %v9698_v33 = vld [vmem:[%s11772_s6 + $0x788] ss:$16 sps:$4 sm:$0xff]  }
 0x448   : > { %7453 = vmatprep.subr.bf16.mxu0 %v9637_v35  ;;  %7421 = vmatpush1.bf16.msra.mxu1 %v9629_v51  ;;  %v9703_v35 = vld [vmem:[%s11772_s6 + $0x76c] ss:$16 sps:$4 sm:$0xff]  }
 0x449   : > { %7422 = vmatprep.subr.bf16.mxu1 %v9634_v38  ;;  %v9714_v51 = vld [vmem:[%s11774_s8 + $0x38] sm:$0xff]   ;;  %v9715_v38 = vld [vmem:[%s11774_s8 + $0x70] sm:$0xff]  }
 0x44a   : > { %v9165_v50 = vpop.f32.mrf.mxu0  ;;  %7404 = vmatmul.mubr.bf16.vlgmr.msra.gmra.mxu0 %v10990_v60  ;;  %v9638_v60 = vld [vmem:[%s11772_s6 + $0x428] ss:$16 sps:$4 sm:$0xff]  }
 0x44b   : > { %7454 = vmatpush1.bf16.msra.mxu0 %v9635_v39  ;;  %7485 = vmatprep.mubr.bf16.mxu0 %v11077_v20  ;;  %v9647_v20 = vld [vmem:[%s11772_s6 + $0x6a8] ss:$16 sps:$4 sm:$0xff]  }
 0x44c   : > { %v9166_v36 = vpop.f32.mrf.mxu0  ;;  %7455 = vmatprep.subr.bf16.mxu0 %v9643_v42  ;;  %7423 = vmatpush1.bf16.msra.mxu1 %v9632_v44  ;;  %v9701_v39 = vld [vmem:[%s11772_s6 + $0x768] ss:$16 sps:$4 sm:$0xff]   ;;  %v9706_v42 = vld [vmem:[%s11772_s6 + $0x74c] ss:$16 sps:$4 sm:$0xff]  }
 0x44d   : > { %v9167_v57 = vadd.f32 %v9166_v36, %v9165_v50  ;;  %7424 = vmatprep.subr.bf16.mxu1 %v9640_v23  ;;  %v9716_v23 = vld [vmem:[%s11774_s8 + $0x30] sm:$0xff]   ;;  %v9717_v50 = vld [vmem:[%s11774_s8 + $0x68] sm:$0xff]  }
 0x44e   : > { %v9168_v58 = vpop.f32.mrf.mxu0 }
 0x44f   : > { %v5488_v56 = vadd.f32 %v9167_v57, %v8814_v52  ;;  %7456 = vmatpush1.bf16.msra.mxu0 %v9641_v49  ;;  %v9709_v52 = vld [vmem:[%s11772_s6 + $0x72c] ss:$16 sps:$4 sm:$0xff]   ;;  %v9707_v58 = vld [vmem:[%s11772_s6 + $0x728] ss:$16 sps:$4 sm:$0xff]  }
 0x450   : > { %v9169_v46 = vpop.f32.mrf.mxu0  ;;  %7457 = vmatprep.subr.bf16.mxu0 %v9649_v40  ;;  %7425 = vmatpush1.bf16.msra.mxu1 %v9638_v60  ;;  %v9718_v40 = vld [vmem:[%s11774_s8 + $0x28] sm:$0xff]   ;;  %v9719_v60 = vld [vmem:[%s11774_s8 + $0x60] sm:$0xff]  }
 0x451   : > { %v11436_v10 = vadd.f32 %v5527_v53, %v5488_v56  ;;  %7426 = vmatprep.subr.bf16.mxu1 %v9646_v61  ;;  %v9682_v53 = vld [vmem:[%s11772_s6 + $0x54c] ss:$16 sps:$4 sm:$0xff]   ;;  %v9720_v56 = vld [vmem:[%s11774_s8 + $0x20] sm:$0xff]   ;;  %v9710_v46 = vld [vmem:[%s11772_s6 + $0x708] ss:$16 sps:$4 sm:$0xff]  }
 0x452   : > { %v9712_v61 = vld [vmem:[%s11772_s6 + $0x70c] ss:$16 sps:$4 sm:$0xff]  }
 0x453   : > { %7458 = vmatpush1.bf16.msra.mxu0 %v9647_v20  ;;  %v9721_v20 = vld [vmem:[%s11774_s8 + $0x58] sm:$0xff]  }
 0x454   : > { %7459 = vmatprep.subr.bf16.mxu0 %v9655_v12  ;;  %7427 = vmatpush1.bf16.msra.mxu1 %v9644_v37  ;;  %v9722_v12 = vld [vmem:[%s11774_s8 + $0x18] sm:$0xff]   ;;  %v9723_v37 = vld [vmem:[%s11774_s8 + $0x50] sm:$0xff]  }
 0x455   : > { %7428 = vmatprep.subr.bf16.mxu1 %v9652_v5  ;;  %v9724_v5 = vld [vmem:[%s11774_s8 + $0x10] sm:$0xff]  }
 0x457   : > { %7460 = vmatpush1.bf16.msra.mxu0 %v9653_v59 }
 0x458   : > { %7461 = vmatprep.subr.bf16.mxu0 %v9661_v6  ;;  %7429 = vmatpush2.bf16.msra.mxu1 %v9650_v41  ;;  %v9725_v6 = vld [vmem:[%s11774_s8 + $0x48] sm:$0xff]  }
 0x459   : > { %7430 = vmatprep.subr.bf16.mxu1 %v9658_v7  ;;  %v9726_v7 = vld [vmem:[%s11774_s8 + $0x8] sm:$0xff]  }
 0x45b   : > { %7462 = vmatpush1.bf16.msra.mxu0 %v9659_v8 }
 0x45c   : > { %7463 = vmatprep.subr.bf16.mxu0 %v9667_v63  ;;  %7431 = vmatpush2.bf16.msra.mxu1 %v9656_v11  ;;  %v9727_v63 = vld [vmem:[%s11774_s8 + $0x40] sm:$0xff]  }
 0x45d   : > { %7432 = vmatprep.subr.bf16.mxu1 %v9664_v30  ;;  %v9730_v30 = vld [vmem:[%s11774_s8 + $0xb8] sm:$0xff]  }
 0x45f   : > { %7464 = vmatpush1.bf16.msra.mxu0 %v9665_v13  ;;  %v9728_v13 = vld [vmem:[%s11774_s8] sm:$0xff]  }
 0x460   : > { %7465 = vmatprep.subr.bf16.mxu0 %v9673_v2  ;;  %7433 = vmatpush2.bf16.msra.mxu1 %v9662_v14  ;;  %v9731_v14 = vld [vmem:[%s11774_s8 + $0xf0] sm:$0xff]  }
 0x461   : > { %7434 = vmatprep.subr.bf16.mxu1 %v9670_v62  ;;  %v9732_v62 = vld [vmem:[%s11774_s8 + $0xb0] sm:$0xff]  }
 0x463   : > { %7466 = vmatpush1.bf16.msra.mxu0 %v9671_v16 }
 0x464   : > { %7467 = vmatprep.subr.bf16.mxu0 %v9679_v4  ;;  %7435 = vmatpush2.bf16.msra.mxu1 %v9668_v28  ;;  %v9733_v4 = vld [vmem:[%s11774_s8 + $0xe8] sm:$0xff]  }
 0x465   : > { %7436 = vmatprep.subr.bf16.mxu1 %v9676_v18  ;;  %v9734_v28 = vld [vmem:[%s11774_s8 + $0xa8] sm:$0xff]   ;;  %v11640_v18 = vld [vmem:[%s11773_s7] sm:$0xf] }
 0x467   : > { %7468 = vmatpush1.bf16.msra.mxu0 %v9677_v19 }
 0x468   : > { %7469 = vmatprep.subr.bf16.mxu0 %v9685_v47  ;;  %7437 = vmatpush2.bf16.msra.mxu1 %v9674_v1  ;;  %v9735_v47 = vld [vmem:[%s11774_s8 + $0xe0] sm:$0xff]  }
 0x469   : > { %7438 = vmatprep.subr.bf16.mxu1 %v9682_v53  ;;  %v5869_v53 = vrot.slane %v11640_v18, %v5546_v0  ;;  %v9738_v0 = vld [vmem:[%s11774_s8 + $0x98] sm:$0xff]  }
 0x46b   : > { %7470 = vmatpush2.bf16.msra.mxu0 %v9683_v25  ;;  %v9736_v25 = vld [vmem:[%s11774_s8 + $0xa0] sm:$0xff]  }
 0x46c   : > { %7471 = vmatprep.subr.bf16.mxu0 %v9691_v54  ;;  %7439 = vmatpush2.bf16.msra.mxu1 %v9680_v22  ;;  %v9737_v54 = vld [vmem:[%s11774_s8 + $0xd8] sm:$0xff]   ;;  %v5873_v22 = vrot.slane %v11640_v18, %v5550_v17  ;;  %v9740_v17 = vld [vmem:[%s11774_s8 + $0x90] sm:$0xff]  }
 0x46d   : > { %7440 = vmatprep.subr.bf16.mxu1 %v9688_v27 }
 0x46f   : > { %7472 = vmatpush2.bf16.msra.mxu0 %v9689_v15  ;;  %v9739_v15 = vld [vmem:[%s11774_s8 + $0xd0] sm:$0xff]  }
 0x470   : > { %7473 = vmatprep.subr.bf16.mxu0 %v9697_v48  ;;  %7441 = vmatpush2.bf16.msra.mxu1 %v9686_v9 }
 0x471   : > { %7442 = vmatprep.subr.bf16.mxu1 %v9694_v55 }
 0x473   : > { %7474 = vmatpush2.bf16.msra.mxu0 %v9695_v29 }
 0x474   : > { %7475 = vmatprep.subr.bf16.mxu0 %v9700_v31  ;;  %7443 = vmatpush2.bf16.msra.mxu1 %v9692_v43 }
 0x475   : > { %9175 = vmatprep.subr.bf16.mxu1 %v9713_v32 }
 0x477   : > { %7476 = vmatpush2.bf16.msra.mxu0 %v9698_v33  ;;  %7445 = vmatmul.mubr.bf16.vlgmr.msra.gmra.mxu1 %v11141_v21  ;;  %v11559_v44 = vpop.f32.mrf.mxu1  ;;  %v9704_v21 = vld [vmem:[%s11772_s6 + $0x748] ss:$16 sps:$4 sm:$0xff]  }
 0x478   : > { %7477 = vmatprep.subr.bf16.mxu0 %v9703_v35  ;;  %9176 = vmatpush3.bf16.msra.mxu1 %v9714_v51  ;;  %v7201_v27 = vadd.f32 %v11559_v44, %v5869_v53  ;;  %v9741_v35 = vld [vmem:[%s11774_s8 + $0xc8] sm:$0xff]  }
 0x479   : > { %v11564_v49 = vpop.f32.mrf.mxu1  ;;  %9177 = vmatprep.subr.bf16.mxu1 %v9715_v38  ;;  %v9742_v38 = vld [vmem:[%s11774_s8 + $0x88] sm:$0xff]  }
 0x47a   : > { %v7203_v48 = vadd.f32 %v11564_v49, %v5873_v22  ;;  %v9743_v49 = vld [vmem:[%s11774_s8 + $0xc0] sm:$0xff]  }
 0x47b   : > { %7478 = vmatpush2.bf16.msra.mxu0 %v9701_v39  ;;  %v7204_v36 = vpop.f32.mrf.mxu1 }
 0x47c   : > { %7479 = vmatprep.subr.bf16.mxu0 %v9706_v42  ;;  %9178 = vmatpush3.bf16.msra.mxu1 %v9716_v23 }
 0x47d   : > { %v7205_v57 = vpop.f32.mrf.mxu1  ;;  %9179 = vmatprep.subr.bf16.mxu1 %v9717_v50 }
 0x47f   : > { %7480 = vmatpush2.bf16.msra.mxu0 %v9704_v21  ;;  %v9744_v21 = vld [vmem:[%s11774_s8 + $0x80] sm:$0xff]  }
 0x480   : > { %7481 = vmatprep.subr.bf16.mxu0 %v9709_v52  ;;  %9180 = vmatpush3.bf16.msra.mxu1 %v9718_v40 }
 0x481   : > { %9181 = vmatprep.subr.bf16.mxu1 %v9719_v60 }
 0x483   : > { %7482 = vmatpush2.bf16.msra.mxu0 %v9707_v58 }
 0x484   : > { %7483 = vmatprep.subr.bf16.mxu0 %v9712_v61  ;;  %9182 = vmatpush3.bf16.msra.mxu1 %v9720_v56 }
 0x485   : > { %9183 = vmatprep.subr.bf16.mxu1 %v9721_v20 }
 0x487   : > { %7484 = vmatpush2.bf16.msra.mxu0 %v9710_v46  ;;  %v9745_v46 = vld [vmem:[%s11776_s10 + $0x38] sm:$0xff]  }
 0x488   : > { %9184 = vmatpush3.bf16.msra.mxu1 %v9722_v12  ;;  %v9746_v12 = vld [vmem:[%s11776_s10 + $0x30] sm:$0xff]  }
 0x489   : > { %9185 = vmatprep.subr.bf16.mxu1 %v9723_v37  ;;  %v9747_v37 = vld [vmem:[%s11776_s10 + $0x28] sm:$0xff]  }
 0x48a   : > { %v7241_v59 = vpop.f32.mrf.mxu0  ;;  %7486 = vmatmul.mubr.bf16.vlgmr.msra.gmra.mxu0 %v11200_v24  ;;  %v9729_v24 = vld [vmem:[%s11774_s8 + $0xf8] sm:$0xff]  }
 0x48b   : > { %9197 = vmatprep.subr.bf16.mxu0 %v9729_v24  ;;  %v7242_v9 = vadd.f32 %v7241_v59, %v7201_v27  ;;  %v9749_v59 = vld [vmem:[%s11776_s10 + $0x18] sm:$0xff]  }
 0x48c   : > { %v7243_v41 = vpop.f32.mrf.mxu0  ;;  %9186 = vmatpush3.bf16.msra.mxu1 %v9724_v5  ;;  %9198 = vmatpush3.bf16.msra.mxu0 %v9730_v30  ;;  %v9748_v5 = vld [vmem:[%s11776_s10 + $0x20] sm:$0xff]  }
 0x48d   : > { %9187 = vmatprep.subr.bf16.mxu1 %v9725_v6  ;;  %9199 = vmatprep.subr.bf16.mxu0 %v9731_v14  ;;  %v7244_v55 = vadd.f32 %v7243_v41, %v7203_v48  ;;  %v9752_v48 = vld [vmem:[%s11776_s10] sm:$0xff]  }
 0x48e   : > { %v7245_v8 = vpop.f32.mrf.mxu0 }
 0x490   : > { %v7246_v11 = vpop.f32.mrf.mxu0  ;;  %9188 = vmatpush3.bf16.msra.mxu1 %v9726_v7  ;;  %9200 = vmatpush3.bf16.msra.mxu0 %v9732_v62 }
 0x491   : > { %9189 = vmatprep.subr.bf16.mxu1 %v9727_v63  ;;  %9201 = vmatprep.subr.bf16.mxu0 %v9733_v4  ;;  %v5877_v63 = vrot.slane %v11640_v18, %v5554_v26  ;;  %v5881_v11 = vrot.slane %v11640_v18, %v5558_v3  ;;  %v9750_v3 = vld [vmem:[%s11776_s10 + $0x10] sm:$0xff]  }
 0x494   : > { %9190 = vmatpush3.bf16.msra.mxu1 %v9728_v13  ;;  %9202 = vmatpush3.bf16.msra.mxu0 %v9734_v28 }
 0x495   : > { %9246 = vmatprep.subr.bf16.mxu1 %v9768_v45  ;;  %9203 = vmatprep.subr.bf16.mxu0 %v9735_v47 }
 0x498   : > { %9204 = vmatpush3.bf16.msra.mxu0 %v9736_v25 }
 0x499   : > { %9205 = vmatprep.subr.bf16.mxu0 %v9737_v54 }
 0x49c   : > { %9206 = vmatpush3.bf16.msra.mxu0 %v9738_v0  ;;  %v9751_v0 = vld [vmem:[%s11776_s10 + $0x8] sm:$0xff]  }
 0x49d   : > { %9207 = vmatprep.subr.bf16.mxu0 %v9739_v15 }
 0x4a0   : > { %9208 = vmatpush3.bf16.msra.mxu0 %v9740_v17  ;;  %v9754_v17 = vld [vmem:[%s11778_s12 + $0x10] sm:$0xff]  }
 0x4a1   : > { %9209 = vmatprep.subr.bf16.mxu0 %v9741_v35 }
 0x4a4   : > { %9210 = vmatpush3.bf16.msra.mxu0 %v9742_v38 }
 0x4a5   : > { %9211 = vmatprep.subr.bf16.mxu0 %v9743_v49  ;;  %v9127_v49 = vld [vmem:[%s11777_s11] ss:$0 sm:$0xff] }
 0x4a8   : > { %9212 = vmatpush3.bf16.msra.mxu0 %v9744_v21  ;;  %v5533_v21 = vmax.f32 %v11436_v10, 0.0 }
 0x4a9   : > { %9266 = vmatprep.subr.bf16.mxu0 %v9768_v45 }
 0x4b7   : > { %v7282_v2 = vpop.f32.mrf.mxu1 }
 0x4b8   : > { %v7283_v29 = vadd.f32 %v7282_v2, %v7242_v9  ;;  %v9753_v9 = vld [vmem:[%s11778_s12 + $0x18] sm:$0xff]  }
 0x4b9   : > { %v7284_v16 = vpop.f32.mrf.mxu1 }
 0x4ba   : > { %v7285_v43 = vadd.f32 %v7284_v16, %v7244_v55  ;;  %v9094_v55 = vld [vmem:[%s11775_s9] ss:$0 sm:$0xff] }
 0x4bb   : > { %v7286_v19 = vpop.f32.mrf.mxu1 }
 0x4bd   : > { %v7287_v1 = vpop.f32.mrf.mxu1 }
 0x4ca   : > { %v7323_v31 = vpop.f32.mrf.mxu0 }
 0x4cb   : > { %v7324_v32 = vadd.f32 %v7323_v31, %v7283_v29 }
 0x4cc   : > { %v7325_v33 = vpop.f32.mrf.mxu0 }
 0x4cd   : > { %v7326_v51 = vadd.f32 %v7325_v33, %v7285_v43  ;;  %v7494_v39 = vmax.f32 %v7324_v32, 0.0 }
 0x4ce   : > { %v7327_v42 = vpop.f32.mrf.mxu0 }
 0x4cf   : > { %v7495_v44 = vmax.f32 %v7326_v51, 0.0  ;;  %v7498_v52 = vpack.c.bf16 %v7494_v39, %v7494_v39  ;;  %v9755_v42 = vld [vmem:[%s11778_s12 + $0x8] sm:$0xff]  }
 0x4d0   : > { %v7328_v23 = vpop.f32.mrf.mxu0 }
 0x4d1   : > { %v7499_v50 = vpack.c.bf16 %v7495_v44, %v7495_v44  ;;  %v9756_v44 = vld [vmem:[%s11778_s12] sm:$0xff]   ;;  %v9757_v23 = vld [vmem:[%s11780_s14 + $0x8] sm:$0xff]  }
 0x4d3   : > { %7797 = vmatprep.mubr.bf16.mxu1 %v7499_v50 }
 0x4d4   : > { %7798 = vmatmul.mubr.bf16.vlgmr.msra.gmra.mxu1 %v7498_v52 }
 0x4d5   : > { %9262 = vmatprep.mubr.msk.bf16.mxu1 %vm9769_vm1, %v9768_v45  ;;  %9247 = vmatpush3.bf16.msra.mxu1 %v9745_v46 }
 0x4d6   : > { %9248 = vmatprep.subr.bf16.mxu1 %v9768_v45 }
 0x4d9   : > { %9249 = vmatpush3.bf16.msra.mxu1 %v9746_v12 }
 0x4da   : > { %9250 = vmatprep.subr.bf16.mxu1 %v9768_v45 }
 0x4dd   : > { %9251 = vmatpush3.bf16.msra.mxu1 %v9747_v37 }
 0x4de   : > { %9252 = vmatprep.subr.bf16.mxu1 %v9768_v45 }
 0x4e1   : > { %9253 = vmatpush3.bf16.msra.mxu1 %v9748_v5 }
 0x4e2   : > { %9254 = vmatprep.subr.bf16.mxu1 %v9768_v45 }
 0x4e5   : > { %9255 = vmatpush3.bf16.msra.mxu1 %v9749_v59 }
 0x4e6   : > { %9256 = vmatprep.subr.bf16.mxu1 %v9768_v45 }
 0x4e9   : > { %9257 = vmatpush3.bf16.msra.mxu1 %v9750_v3 }
 0x4ea   : > { %9258 = vmatprep.subr.bf16.mxu1 %v9768_v45 }
 0x4ed   : > { %9259 = vmatpush3.bf16.msra.mxu1 %v9751_v0 }
 0x4ee   : > { %9260 = vmatprep.subr.bf16.mxu1 %v9768_v45 }
 0x4f1   : > { %9261 = vmatpush3.bf16.msra.mxu1 %v9752_v48 }
 0x4f2   : > { %9278 = vmatprep.subr.bf16.mxu1 %v9768_v45 }
 0x4f7   : > { %v7364_v36 = vpop.f32.mrf.mxu1 }
 0x4f8   : > { %v7365_v24 = vadd.f32 %v7364_v36, %v5877_v63 }
 0x4f9   : > { %v7366_v40 = vpop.f32.mrf.mxu1 }
 0x4fa   : > { %v7367_v30 = vadd.f32 %v7366_v40, %v5881_v11 }
 0x4fb   : > { %v7368_v57 = vpop.f32.mrf.mxu1 }
 0x4fd   : > { %v7369_v60 = vpop.f32.mrf.mxu1 }
 0x50a   : > { %v7405_v58 = vpop.f32.mrf.mxu0 }
 0x50b   : > { %v7406_v13 = vadd.f32 %v7405_v58, %v7365_v24 }
 0x50c   : > { %v7407_v61 = vpop.f32.mrf.mxu0 }
 0x50d   : > { %v7408_v2 = vadd.f32 %v7407_v61, %v7367_v30 }
 0x50e   : > { %v7409_v56 = vpop.f32.mrf.mxu0 }
 0x50f   : > { %v9136_v56 = vld [vmem:[%s11779_s13] ss:$0 sm:$0xff] }
 0x510   : > { %v7410_v20 = vpop.f32.mrf.mxu0 }
 0x537   : > { %v7446_v6 = vpop.f32.mrf.mxu1 }
 0x538   : > { %v7447_v14 = vadd.f32 %v7446_v6, %v7406_v13  ;;  %v9142_v6 = vld [vmem:[%s11781_s15] ss:$0 sm:$0xff] }
 0x539   : > { %v7448_v41 = vpop.f32.mrf.mxu1 }
 0x53a   : > { %v7449_v16 = vadd.f32 %v7448_v41, %v7408_v2 }
 0x53b   : > { %v7450_v7 = vpop.f32.mrf.mxu1 }
 0x53d   : > { %v7451_v8 = vpop.f32.mrf.mxu1 }
 0x54a   : > { %v7487_v62 = vpop.f32.mrf.mxu0 }
 0x54b   : > { %v7488_v4 = vadd.f32 %v7487_v62, %v7447_v14 }
 0x54c   : > { %v7489_v28 = vpop.f32.mrf.mxu0 }
 0x54d   : > { %v7490_v19 = vadd.f32 %v7489_v28, %v7449_v16  ;;  %v7496_v47 = vmax.f32 %v7488_v4, 0.0 }
 0x54e   : > { %v7491_v1 = vpop.f32.mrf.mxu0 }
 0x54f   : > { %v7497_v53 = vmax.f32 %v7490_v19, 0.0  ;;  %v7500_v26 = vpack.c.bf16 %v7496_v47, %v7496_v47 }
 0x550   : > { %v7492_v25 = vpop.f32.mrf.mxu0 }
 0x551   : > { %v7501_v54 = vpack.c.bf16 %v7497_v53, %v7497_v53 }
 0x553   : > { %7837 = vmatprep.mubr.bf16.mxu0 %v7501_v54 }
 0x554   : > { %7838 = vmatmul.mubr.bf16.vlgmr.msra.gmra.mxu0 %v7500_v26 }
 0x555   : > { %9274 = vmatprep.mubr.msk.bf16.mxu0 %vm9769_vm1, %v9768_v45  ;;  %9267 = vmatpush3.bf16.msra.mxu0 %v9753_v9 }
 0x556   : > { %9268 = vmatprep.subr.bf16.mxu0 %v9768_v45 }
 0x559   : > { %9269 = vmatpush3.bf16.msra.mxu0 %v9754_v17 }
 0x55a   : > { %9270 = vmatprep.subr.bf16.mxu0 %v9768_v45 }
 0x55d   : > { %9271 = vmatpush3.bf16.msra.mxu0 %v9755_v42 }
 0x55e   : > { %9272 = vmatprep.subr.bf16.mxu0 %v9768_v45 }
 0x561   : > { %9273 = vmatpush3.bf16.msra.mxu0 %v9756_v44 }
 0x594   : > { %v9191_v34 = vpop.f32.mrf.mxu1 }
 0x596   : > { %v9192_v18 = vpop.f32.mrf.mxu1 }
 0x597   : > { %v9193_v22 = vadd.f32 %v9192_v18, %v9191_v34 }
 0x598   : > { %v9194_v27 = vpop.f32.mrf.mxu1 }
 0x599   : > { %v7800_v43 = vadd.f32 %v9193_v22, %v9094_v55 }
 0x59a   : > { %v9195_v15 = vpop.f32.mrf.mxu1 }
 0x614   : > { %v9213_v29 = vpop.f32.mrf.mxu0 }
 0x616   : > { %v9214_v31 = vpop.f32.mrf.mxu0 }
 0x617   : > { %v9215_v32 = vadd.f32 %v9214_v31, %v9213_v29 }
 0x618   : > { %v9216_v33 = vpop.f32.mrf.mxu0 }
 0x619   : > { %v7840_v35 = vadd.f32 %v9215_v32, %v7800_v43 }
 0x61a   : > { %v9217_v51 = vpop.f32.mrf.mxu0 }
 0x61b   : > { %v7845_v38 = vmax.f32 %v7840_v35, 0.0 }
 0x61d   : > { %v7846_v39 = vpack.c.bf16 %v7845_v38, %v7845_v38 }
 0x61f   : > { %9263 = vmatmul.mubr.bf16.vlgmr.msra.gmra.mxu1 %v7846_v39 }
 0x620   : > { %9282 = vmatprep.mubr.msk.bf16.mxu1 %vm9769_vm1, %v9768_v45  ;;  %9279 = vmatpush3.bf16.msra.mxu1 %v9757_v23 }
 0x621   : > { %9280 = vmatprep.subr.bf16.mxu1 %v9768_v45  ;;  %v9758_v45 = vld [vmem:[%s11780_s14] sm:$0xff]  }
 0x624   : > { %9281 = vmatpush3.bf16.msra.mxu1 %v9758_v45 }
 0x6df   : > { %v7952_v50 = vpop.f32.mrf.mxu1 }
 0x6e0   : > { %v7953_v52 = vadd.f32 %v9127_v49, %v7952_v50 }
 0x6e1   : > { %v9264_v36 = vpop.f32.mrf.mxu1 }
 0x6e2   : > { %v7958_v40 = vadd.f32 %v7953_v52, %v5533_v21 }
 0x6e3   : > { %v7955_v57 = vpop.f32.mrf.mxu1 }
 0x6e4   : > { %v7959_v60 = vmax.f32 %v7958_v40, 0.0 }
 0x6e5   : > { %v9265_v58 = vpop.f32.mrf.mxu1 }
 0x6e6   : > { %v7960_v61 = vpack.c.bf16 %v7959_v60, %v7959_v60 }
 0x6e8   : > { %9275 = vmatmul.mubr.msk.bf16.vlgmr.msra.gmra.mxu0 %vm8000_vm3, %v7960_v61 }
 0x7a8   : > { %v8038_v20 = vpop.f32.mrf.mxu0 }
 0x7a9   : > { %v8039_v10 = vadd.f32 %v9136_v56, %v8038_v20 }
 0x7aa   : > { %v9276_v46 = vpop.f32.mrf.mxu0 }
 0x7ab   : > { %v8044_v12 = vmax.f32 %v8039_v10, 0.0 }
 0x7ac   : > { %v8041_v37 = vpop.f32.mrf.mxu0 }
 0x7ad   : > { %v8045_v5 = vpack.c.bf16 %v8044_v12, %v8044_v12 }
 0x7ae   : > { %v9277_v59 = vpop.f32.mrf.mxu0 }
 0x7af   : > { %9283 = vmatmul.mubr.msk.bf16.vlgmr.msra.gmra.mxu1 %vm8069_vm4, %v8045_v5 }
 0x86f   : > { %v8107_v41 = vpop.f32.mrf.mxu1 }
 0x870   : > { %v8108_v7 = vadd.f32 %v9142_v6, %v8107_v41 }
 0x871   : > { %v9284_v8 = vpop.f32.mrf.mxu1 }
 0x872   : > { %8114 = vst.msk [vmem:[%s11782_s16] sm:$0xff] %vm8113_vm5, %v8108_v7 }
 0x873   : > { %v8110_v63 = vpop.f32.mrf.mxu1 }
 0x875   : > { %v9285_v11 = vpop.f32.mrf.mxu1 }
 0x876 PF: > { %s26_s21 = sadd.s32 1, %s9765_s21  }
 0x877   : > { %p23_p7 = scmp.ge.s32.totalorder %s26_s21, 5  }
 0x879   :  { %25 = sbr.rel (!%p23_p7) target bundleno = 2 (0x2), region = 121 }

</bundles_post_ra>
